<compile_context>
chip_gen: v7x
topology: tpu7x:2x2x1
jax: 0.10.0
libtpu: 0.0.40
codegen_flags: <defaults>
</compile_context>

<pallas_src>
import functools
import math

import jax
import jax.numpy as jnp
from jax.experimental import pallas as pl
from jax.experimental.pallas import tpu as pltpu

_LANES = 128
_INNER_ROWS = 1024  # rows per inner chunk; must be a multiple of 128


def _round_up(n: int, m: int) -> int:
    return ((n + m - 1) // m) * m


def _mlp_kernel(x_ref, w1_ref, b1_ref, w2_ref, p_ref, a_ref, b2_ref, o_ref,
                *, rows_per_block, inner_rows, n_valid_rows):
    """One batch tile: layer1 -> ReLU -> layer2 -> lane-dense relayout -> sigmoid."""
    gc = inner_rows // _LANES              # output rows produced per chunk
    nchunks = rows_per_block // inner_rows

    # Hoisted, VMEM-resident operands (index_map is constant across the grid).
    w1 = w1_ref[...]                       # (D, Hp)   compute dtype (bf16 or f32)
    b1 = b1_ref[...]                       # (1, Hp)   f32
    w2 = w2_ref[...]                       # (Hp, 1)   f32
    p_mat = p_ref[...]                     # (inner_rows, 128) f32, tiled eye(128)
    a_mat = a_ref[...]                     # (gc, inner_rows)  f32, group-sum matrix
    b2 = b2_ref[0, 0]                      # scalar from SMEM

    block_row0 = pl.program_id(0) * rows_per_block

    def body(c, carry):
        r0 = pl.multiple_of(c * inner_rows, inner_rows)
        # Stream f32 x; cast to the compute dtype (bf16 by default) in-kernel
        # so the wrapper never makes an extra HBM pass over x.
        xc = x_ref[pl.ds(r0, inner_rows), :].astype(w1.dtype)      # (RC, D)

        # Layer 1 on the MXU, f32 accumulation; bias + ReLU on the VPU.
        h = jnp.dot(xc, w1, preferred_element_type=jnp.float32)    # (RC, Hp)
        h = jnp.maximum(h + b1, 0.0)

        # Layer 2 (N=1, tiny).
        y = jnp.dot(h, w2, preferred_element_type=jnp.float32)     # (RC, 1)

        # Mask rows past the true batch size (garbage rows of a partial last
        # block) BEFORE the relayout matmul mixes rows of a 128-group.
        ridx = block_row0 + r0 + jax.lax.broadcasted_iota(jnp.int32,
                                                          (inner_rows, 1), 0)
        y = jnp.where(ridx < n_valid_rows, y, 0.0)

        # Lane-dense relayout (exact):  O[g, j] = y[g*128 + j]  =  A @ (y * P)
        m = y * p_mat                                              # (RC, 128)
        o = jnp.dot(a_mat, m, preferred_element_type=jnp.float32)  # (gc, 128)

        g0 = pl.multiple_of(c * gc, gc)
        o_ref[pl.ds(g0, gc), :] = jax.nn.sigmoid(o + b2)           # dense store
        return carry

    jax.lax.fori_loop(0, nchunks, body, 0)


def mlp_regressor_forward(x, w1, b1, w2, b2, *, block_b=16384,
                          use_bf16_compute=True):
    """Pallas forward pass of MLPRegressorTorch.

    Args:
      x:  (B, D)  float32
      w1: (D, H)  float32   (transpose of torch Linear weight)
      b1: (H,)    float32
      w2: (H, 1)  float32
      b2: (1,)    float32
      block_b:          batch rows per grid step (rounded to a 1024 multiple).
      use_bf16_compute: cast x / W1 to bf16 inside the kernel (f32 MXU accum).
    Returns:
      (B, 1) float32 in [0, 1]
    """
    x = jnp.asarray(x, jnp.float32)
    w1 = jnp.asarray(w1, jnp.float32)
    b1 = jnp.asarray(b1, jnp.float32)
    w2 = jnp.asarray(w2, jnp.float32)
    b2 = jnp.asarray(b2, jnp.float32)

    B, D = x.shape
    H = w1.shape[1]

    # Lane-align the hidden dim (100 -> 128). Zero padding is exact.
    Hp = _round_up(H, _LANES)
    if Hp != H:
        w1 = jnp.pad(w1, ((0, 0), (0, Hp - H)))
        b1 = jnp.pad(b1, (0, Hp - H))
        w2 = jnp.pad(w2, ((0, Hp - H), (0, 0)))
    b1_2d = b1.reshape(1, Hp)
    b2_2d = b2.reshape(1, 1)

    compute_dtype = jnp.bfloat16 if use_bf16_compute else jnp.float32
    w1_in = w1.astype(compute_dtype)        # tiny; x itself is cast in-kernel

    # Batch tile selection. Large inputs are never copied/padded: the grid is
    # cdiv(B, TB) and the partial last block is masked in-kernel. Only inputs
    # smaller than one tile are zero-padded (negligible copy).
    rc = _INNER_ROWS
    TB = max(rc, _round_up(block_b, rc))
    cap = _round_up(B, rc)
    if cap < TB:
        TB = cap
    x_in = x
    Bx = B
    if B < TB:
        x_in = jnp.pad(x, ((0, TB - B), (0, 0)))
        Bx = TB
    num_blocks = pl.cdiv(Bx, TB)
    out_rows = pl.cdiv(Bx, _LANES)
    gc = rc // _LANES

    # Constant 0/1 matrices for the MXU-based lane-dense relayout.
    eye = jnp.eye(_LANES, dtype=jnp.float32)
    p_mat = jnp.tile(eye, (gc, 1))                                  # (rc, 128)
    a_mat = jnp.repeat(jnp.eye(gc, dtype=jnp.float32), _LANES, axis=1)  # (gc, rc)

    kernel = functools.partial(
        _mlp_kernel,
        rows_per_block=TB,
        inner_rows=rc,
        n_valid_rows=B,
    )

    cost = pl.CostEstimate(
        flops=2 * B * D * Hp + 2 * B * Hp + 2 * B * _LANES,
        transcendentals=B,
        bytes_accessed=B * D * 4 + B * 4 + (D * Hp + 2 * Hp + 1) * 4,
    )

    out = pl.pallas_call(
        kernel,
        out_shape=jax.ShapeDtypeStruct((out_rows, _LANES), jnp.float32),
        grid=(num_blocks,),
        in_specs=[
            pl.BlockSpec((TB, D), lambda i: (i, 0)),             # x: streamed f32 tiles
            pl.BlockSpec((D, Hp), lambda i: (0, 0)),             # w1: VMEM-resident
            pl.BlockSpec((1, Hp), lambda i: (0, 0)),             # b1
            pl.BlockSpec((Hp, 1), lambda i: (0, 0)),             # w2
            pl.BlockSpec((rc, _LANES), lambda i: (0, 0)),        # P (relayout const)
            pl.BlockSpec((gc, rc), lambda i: (0, 0)),            # A (relayout const)
            pl.BlockSpec(memory_space=pltpu.MemorySpace.SMEM),   # b2 scalar
        ],
        out_specs=pl.BlockSpec((TB // _LANES, _LANES), lambda i: (i, 0)),
        compiler_params=pltpu.CompilerParams(
            dimension_semantics=("parallel",),
            vmem_limit_bytes=40 * 1024 * 1024,
        ),
        cost_estimate=cost,
    )(x_in, w1_in, b1_2d, w2, p_mat, a_mat, b2_2d)

    # (out_rows, 128) row-major == batch order; reshape in HBM is free.
    return out.reshape(-1, 1)[:B]


def init_params(key, input_dim, hidden_dim):
    """Deterministic PyTorch-style Linear init: U(-1/sqrt(fan_in), 1/sqrt(fan_in))."""
    k1, k2, k3, k4 = jax.random.split(key, 4)
    bound1 = 1.0 / math.sqrt(input_dim)
    w1 = jax.random.uniform(k1, (input_dim, hidden_dim), jnp.float32,
                            minval=-bound1, maxval=bound1)
    b1 = jax.random.uniform(k2, (hidden_dim,), jnp.float32,
                            minval=-bound1, maxval=bound1)
    bound2 = 1.0 / math.sqrt(hidden_dim)
    w2 = jax.random.uniform(k3, (hidden_dim, 1), jnp.float32,
                            minval=-bound2, maxval=bound2)
    b2 = jax.random.uniform(k4, (1,), jnp.float32,
                            minval=-bound2, maxval=bound2)
    return w1, b1, w2, b2


def reference_forward(x, w1, b1, w2, b2):
    h = jnp.maximum(x @ w1 + b1, 0.0)
    return jax.nn.sigmoid(h @ w2 + b2)


if __name__ == "__main__":
    key = jax.random.PRNGKey(0)
    kx, kp = jax.random.split(key)

    input_dim = 32
    hidden_dim = 100     # MLPRegressorTorch default layer_dims=(100,)
    w1, b1, w2, b2 = init_params(kp, input_dim, hidden_dim)

    # Case 1: exact f32 path.  B chosen so the grid has 2 blocks, the last
    # block is partial (in-kernel row masking exercised) and the inner loop
    # runs 2 chunks per block.
    B1 = 2496
    x1 = jax.random.normal(kx, (B1, input_dim), jnp.float32)
    ref1 = reference_forward(x1, w1, b1, w2, b2)
    out1 = mlp_regressor_forward(x1, w1, b1, w2, b2,
                                 block_b=2048, use_bf16_compute=False)
    out1 = jax.block_until_ready(out1)
    assert out1.shape == (B1, 1)
    assert jnp.allclose(out1, ref1, atol=2e-5, rtol=1e-5)

    # Case 2: default bf16 fast path, tiny batch -> single zero-padded block.
    B2 = 40
    x2 = jax.random.normal(jax.random.PRNGKey(1), (B2, input_dim), jnp.float32)
    ref2 = reference_forward(x2, w1, b1, w2, b2)
    out2 = mlp_regressor_forward(x2, w1, b1, w2, b2)
    out2 = jax.block_until_ready(out2)
    assert out2.shape == (B2, 1)
    assert jnp.allclose(out2, ref2, atol=1e-2, rtol=0)

    print("KERNEL_OK")
</pallas_src>

<mosaic_0001>
module attributes {stable_mosaic.version = 11 : i64} {
  func.func @_mlp_kernel(%arg0: i32, %arg1: memref<2048x32xf32, #tpu.memory_space<vmem>>, %arg2: memref<32x128xf32, #tpu.memory_space<vmem>>, %arg3: memref<1x128xf32, #tpu.memory_space<vmem>>, %arg4: memref<128x1xf32, #tpu.memory_space<vmem>>, %arg5: memref<1024x128xf32, #tpu.memory_space<vmem>>, %arg6: memref<8x1024xf32, #tpu.memory_space<vmem>>, %arg7: memref<1x1xf32, #tpu.memory_space<smem>>, %arg8: memref<16x128xf32, #tpu.memory_space<vmem>>) attributes {dimension_semantics = [#tpu.dimension_semantics<parallel>], iteration_bounds = array<i64: 2>, scalar_prefetch = 0 : i64, scratch_operands = 0 : i64, tpu.core_type = #tpu.core_type<tc>, window_params = [{transform_indices = @transform_0, window_bounds = array<i64: 2048, 32>}, {pipeline_mode = #tpu.pipeline_mode<synchronous>, transform_indices = @transform_1, window_bounds = array<i64: 32, 128>}, {pipeline_mode = #tpu.pipeline_mode<synchronous>, transform_indices = @transform_2, window_bounds = array<i64: 1, 128>}, {pipeline_mode = #tpu.pipeline_mode<synchronous>, transform_indices = @transform_3, window_bounds = array<i64: 128, 1>}, {pipeline_mode = #tpu.pipeline_mode<synchronous>, transform_indices = @transform_4, window_bounds = array<i64: 1024, 128>}, {pipeline_mode = #tpu.pipeline_mode<synchronous>, transform_indices = @transform_5, window_bounds = array<i64: 8, 1024>}, {transform_indices = @transform_6, window_bounds = array<i64: 1, 1>}, {transform_indices = @transform_7, window_bounds = array<i64: 16, 128>}]} {
    %c0 = arith.constant 0 : index
    %c0_0 = arith.constant 0 : index
    %0 = vector.load %arg2[%c0, %c0_0] : memref<32x128xf32, #tpu.memory_space<vmem>>, vector<32x128xf32>
    %c0_1 = arith.constant 0 : index
    %c0_2 = arith.constant 0 : index
    %1 = vector.load %arg3[%c0_1, %c0_2] : memref<1x128xf32, #tpu.memory_space<vmem>>, vector<1x128xf32>
    %c0_3 = arith.constant 0 : index
    %c0_4 = arith.constant 0 : index
    %2 = vector.load %arg4[%c0_3, %c0_4] : memref<128x1xf32, #tpu.memory_space<vmem>>, vector<128x1xf32>
    %c0_5 = arith.constant 0 : index
    %c0_6 = arith.constant 0 : index
    %3 = vector.load %arg5[%c0_5, %c0_6] : memref<1024x128xf32, #tpu.memory_space<vmem>>, vector<1024x128xf32>
    %c0_7 = arith.constant 0 : index
    %c0_8 = arith.constant 0 : index
    %4 = vector.load %arg6[%c0_7, %c0_8] : memref<8x1024xf32, #tpu.memory_space<vmem>>, vector<8x1024xf32>
    %c0_9 = arith.constant 0 : index
    %c0_10 = arith.constant 0 : index
    %5 = memref.load %arg7[%c0_9, %c0_10] : memref<1x1xf32, #tpu.memory_space<smem>>
    %c2048_i32 = arith.constant 2048 : i32
    %6 = arith.muli %arg0, %c2048_i32 : i32
    %c0_i32 = arith.constant 0 : i32
    %c2_i32 = arith.constant 2 : i32
    %7 = arith.addi %c0_i32, %c2_i32 : i32
    %c1_i32 = arith.constant 1 : i32
    scf.for %arg9 = %c0_i32 to %7 step %c1_i32  : i32 {
      %c1024_i32 = arith.constant 1024 : i32
      %8 = arith.muli %arg9, %c1024_i32 : i32
      %9 = tpu.assume_multiple %8, 1024 : i32
      %10 = arith.index_cast %9 : i32 to index
      %c0_12 = arith.constant 0 : index
      %11 = vector.load %arg1[%10, %c0_12] : memref<2048x32xf32, #tpu.memory_space<vmem>>, vector<1024x32xf32>
      %cst = arith.constant dense<0.000000e+00> : vector<1024x128xf32>
      %12 = tpu.matmul %11, %0, %cst {dimension_numbers = #tpu.dot_dimension_numbers<[1], [0], [0], [1], [0, 0, 1, 1], [], []>} : vector<1024x32xf32>, vector<32x128xf32>, vector<1024x128xf32> -> vector<1024x128xf32>
      %13 = vector.broadcast %1 : vector<1x128xf32> to vector<1024x128xf32>
      %14 = arith.addf %12, %13 : vector<1024x128xf32>
      %cst_13 = arith.constant 0.000000e+00 : f32
      %15 = vector.broadcast %cst_13 : f32 to vector<1024x128xf32>
      %16 = arith.maximumf %14, %15 : vector<1024x128xf32>
      %cst_14 = arith.constant dense<0.000000e+00> : vector<1024x1xf32>
      %17 = tpu.matmul %16, %2, %cst_14 {dimension_numbers = #tpu.dot_dimension_numbers<[1], [0], [0], [1], [0, 0, 1, 1], [], []>} : vector<1024x128xf32>, vector<128x1xf32>, vector<1024x1xf32> -> vector<1024x1xf32>
      %18 = arith.addi %6, %9 : i32
      %19 = tpu.iota {dimensions = array<i32: 0>} : vector<1024x1xi32>
      %20 = vector.broadcast %18 : i32 to vector<1024x1xi32>
      %21 = arith.addi %20, %19 : vector<1024x1xi32>
      %c2496_i32 = arith.constant 2496 : i32
      %22 = vector.broadcast %c2496_i32 : i32 to vector<1024x1xi32>
      %23 = arith.cmpi slt, %21, %22 : vector<1024x1xi32>
      %cst_15 = arith.constant 0.000000e+00 : f32
      %24 = vector.broadcast %cst_15 : f32 to vector<1024x1xf32>
      %25 = arith.select %23, %17, %24 : vector<1024x1xi1>, vector<1024x1xf32>
      %26 = vector.broadcast %25 : vector<1024x1xf32> to vector<1024x128xf32>
      %27 = arith.mulf %26, %3 : vector<1024x128xf32>
      %cst_16 = arith.constant dense<0.000000e+00> : vector<8x128xf32>
      %28 = tpu.matmul %4, %27, %cst_16 {dimension_numbers = #tpu.dot_dimension_numbers<[1], [0], [0], [1], [0, 0, 1, 1], [], []>} : vector<8x1024xf32>, vector<1024x128xf32>, vector<8x128xf32> -> vector<8x128xf32>
      %c8_i32 = arith.constant 8 : i32
      %29 = arith.muli %arg9, %c8_i32 : i32
      %30 = tpu.assume_multiple %29, 8 : i32
      %31 = vector.broadcast %5 : f32 to vector<8x128xf32>
      %32 = arith.addf %28, %31 : vector<8x128xf32>
      %33 = arith.negf %32 : vector<8x128xf32>
      %34 = math.exp %33 : vector<8x128xf32>
      %cst_17 = arith.constant 1.000000e+00 : f32
      %35 = vector.broadcast %cst_17 : f32 to vector<8x128xf32>
      %36 = arith.addf %35, %34 : vector<8x128xf32>
      %37 = arith.divf %35, %36 : vector<8x128xf32>
      %38 = arith.index_cast %30 : i32 to index
      %c0_18 = arith.constant 0 : index
      %39 = vector.load %arg8[%38, %c0_18] : memref<16x128xf32, #tpu.memory_space<vmem>>, vector<8x128xf32>
      tpu.vector_store %arg8[%38, %c0_18], %37 {strides = array<i32>} : memref<16x128xf32, #tpu.memory_space<vmem>>, vector<8x128xf32>,
    }
    %c2_i32_11 = arith.constant 2 : i32
    return
  }
  func.func @transform_0(%arg0: i32) -> (i32, i32) {
    %c0_i32 = arith.constant 0 : i32
    %c0_i32_0 = arith.constant 0 : i32
    return %arg0, %c0_i32 : i32, i32
  }
  func.func @transform_1(%arg0: i32) -> (i32, i32) {
    %c0_i32 = arith.constant 0 : i32
    %c0_i32_0 = arith.constant 0 : i32
    %c0_i32_1 = arith.constant 0 : i32
    return %c0_i32, %c0_i32_0 : i32, i32
  }
  func.func @transform_2(%arg0: i32) -> (i32, i32) {
    %c0_i32 = arith.constant 0 : i32
    %c0_i32_0 = arith.constant 0 : i32
    %c0_i32_1 = arith.constant 0 : i32
    return %c0_i32, %c0_i32_0 : i32, i32
  }
  func.func @transform_3(%arg0: i32) -> (i32, i32) {
    %c0_i32 = arith.constant 0 : i32
    %c0_i32_0 = arith.constant 0 : i32
    %c0_i32_1 = arith.constant 0 : i32
    return %c0_i32, %c0_i32_0 : i32, i32
  }
  func.func @transform_4(%arg0: i32) -> (i32, i32) {
    %c0_i32 = arith.constant 0 : i32
    %c0_i32_0 = arith.constant 0 : i32
    %c0_i32_1 = arith.constant 0 : i32
    return %c0_i32, %c0_i32_0 : i32, i32
  }
  func.func @transform_5(%arg0: i32) -> (i32, i32) {
    %c0_i32 = arith.constant 0 : i32
    %c0_i32_0 = arith.constant 0 : i32
    %c0_i32_1 = arith.constant 0 : i32
    return %c0_i32, %c0_i32_0 : i32, i32
  }
  func.func @transform_6(%arg0: i32) -> (i32, i32) {
    %c0_i32 = arith.constant 0 : i32
    %c0_i32_0 = arith.constant 0 : i32
    %c0_i32_1 = arith.constant 0 : i32
    return %c0_i32, %c0_i32_0 : i32, i32
  }
  func.func @transform_7(%arg0: i32) -> (i32, i32) {
    %c0_i32 = arith.constant 0 : i32
    %c0_i32_0 = arith.constant 0 : i32
    return %arg0, %c0_i32 : i32, i32
  }
}

</mosaic_0001>

<bundles_post_ra>
// kernel: tpu_custom_call.1
= control target key start
LH: loop header
LB: loop body
LE: loop exit
PB: predicated region body
PF: predicated region fallthrough
CT: control target
= control target key end

     0   :  { %s7399_s0 = inlined_call_operand.vmem [shape: f32[2496,32], index: 0, kind: input, shape index: {}]   ;;  %s7400_s1 = inlined_call_operand.vmem [shape: f32[32,128], index: 1, kind: input, shape index: {}]   ;;  %s7401_s2 = inlined_call_operand.vmem [shape: f32[1,128], index: 2, kind: input, shape index: {}]   ;;  %s7402_s3 = inlined_call_operand.vmem [shape: f32[128,1], index: 3, kind: input, shape index: {}]   ;;  %s7403_s4 = inlined_call_operand.vmem [shape: f32[1024,128], index: 4, kind: input, shape index: {}]   ;;  %s7404_s5 = inlined_call_operand.vmem [shape: f32[8,1024], index: 5, kind: input, shape index: {}]   ;;  %s7405_s6 = inlined_call_operand.<no memory space> [shape: f32[1,1], index: 6, kind: input, shape index: {}]   ;;  %s7406_s7 = inlined_call_operand.hbm [shape: f32[20,128], index: 7, kind: output, shape index: {}]  }
   0x1   :  { %12 = sst [smem:[#allocation2]] %s7405_s6 }
   0x2   :  { %13 = vsyncpa [#allocation4], 0 }
   0x3   :  { %15 = vsyncpa [#allocation4 + $0x1], 0  ;;  %s5525_s26 = smov 0   ;;  %s5527_s27 = smov 0  }
   0x4   :  { %s5529_s28 = smov 0   ;;  %s5531_s29 = smov 0  }
   0x5 LB: > { %s5546_s6 = sadd.s32 4294967295, %s5472_s29   ;;  %s4193_s30 = sadd.s32 4294967294, %s5472_s29   ;;  %s5472_s29 = sphi %s5531_s29, %s7692_s29   ;;  %s5468_s28 = sphi %s5529_s28, %s7691_s28   ;;  %s5464_s27 = sphi %s5527_s27, %s7690_s27   ;;  %s5460_s26 = sphi %s5525_s26, %s7689_s26  }
   0x6   : > { %s5550_s8 = sadd.s32 1, %s5472_s29   ;;  %s180_s9 = sadd.s32 1, %s5468_s28 }
   0x7   : > { %s177_s10 = ssub.s32 %s5472_s29, %s5550_s8  ;;  %p190_p0 = scmp.ne.s32.totalorder %s5468_s28, %s5464_s27 }
   0x8   : > { %p178_p1 = scmp.eq.s32.totalorder %s177_s10, 0  ;;  %p191_p2 = scmp.eq.s32.totalorder %s5546_s6, 1 }
   0x9   : > { %p196_p3 = scmp.ne.s32.totalorder %s5464_s27, %s5460_s26  ;;  %p197_p4 = scmp.eq.s32.totalorder %s4193_s30, 1 }
   0xa   : > { %s5561_s11 = scalar_select %p178_p1, %s5468_s28, %s180_s9  }
   0xb   : > { %p5563_p5 = por %p191_p2, %p190_p0  ;;  %p5567_p6 = por %p197_p4, %p196_p3 }
   0xc   : > { %p4196_p7 = scmp.ge.s32.totalorder %s5472_s29, 1  ;;  %p250_p8 = scmp.lt.s32.totalorder %s5472_s29, 3 }
   0xe   : > { %p251_p9 = pnand %p4196_p7, %p250_p8 }
  0x10   : > { %254 = sbr.rel (%p251_p9) target bundleno = 1213 (0x4bd), region = 48 }
  0x17   : > { %s7407_s14 = sand.u32 1, %s5464_s27   ;;  %s5575_s15 = sshll.u32 %s5546_s6, 8  ;;  %v5580_v0 = vld [vmem:[%s7400_s1] sm:$0xff]  ;;  %v5585_v1 = vld [vmem:[%s7400_s1 + $0x8] sm:$0xff]  ;;  %v5590_v2 = vld [vmem:[%s7400_s1 + $0x10] sm:$0xff] }
  0x18   : > { %7411 = vst [vmem:[#allocation6_spill] sm:$0xff] %v5580_v0  ;;  %7412 = vst [vmem:[#allocation7_spill] sm:$0xff] %v5585_v1  ;;  %s5594_s22 = sshll.u32 %s7407_s14, 4  ;;  %p291_p10 = scmp.lt.s32.totalorder %s5575_s15, 311  ;;  %v5600_v3 = vld [vmem:[%s7400_s1 + $0x18] sm:$0xff]  ;;  %v5610_v5 = vld [vmem:[%s7402_s3] sm:$0xff] }
  0x19   : > { %7413 = vst [vmem:[#allocation8_spill] sm:$0xff] %v5590_v2  ;;  %7414 = vst [vmem:[#allocation9_spill] sm:$0xff] %v5600_v3  ;;  %v5605_v4 = vld [vmem:[%s7401_s2] ss:$0 sm:$0xff]  ;;  %v5615_v6 = vld [vmem:[%s7402_s3 + $0x8] sm:$0xff]  ;;  %s5627_s23 = sld [smem:[#allocation2]] }
  0x1a   : > { %7415 = vst [vmem:[#allocation10_spill] sm:$0xff] %v5605_v4  ;;  %7416 = vst [vmem:[#allocation11_spill] sm:$0xff] %v5610_v5  ;;  %v5620_v7 = vld [vmem:[%s7402_s3 + $0x10] sm:$0xff]  ;;  %v5625_v8 = vld [vmem:[%s7402_s3 + $0x18] sm:$0xff]  ;;  %s292_s24 = scalar_select %p291_p10, %s5575_s15, 311 }
  0x1b   : > { %7417 = vst [vmem:[#allocation12_spill] sm:$0xff] %v5615_v6  ;;  %7418 = vst [vmem:[#allocation13_spill] sm:$0xff] %v5620_v7  ;;  %v5633_v9 = vld [vmem:[%s7402_s3 + $0x20] sm:$0xff]  ;;  %v5638_v10 = vld [vmem:[%s7402_s3 + $0x28] sm:$0xff]  ;;  %s285_s17 = scalar_lea.vmem [#allocation3], %s5594_s22  ;;  %s6377_s18 = smov 0  }
  0x1c   : > { %7419 = vst [vmem:[#allocation14_spill] sm:$0xff] %v5625_v8  ;;  %7420 = vst [vmem:[#allocation15_spill] sm:$0xff] %v5633_v9  ;;  %v5643_v11 = vld [vmem:[%s7402_s3 + $0x30] sm:$0xff]  ;;  %v5648_v12 = vld [vmem:[%s7402_s3 + $0x38] sm:$0xff]  ;;  %s4199_s10 = sshll.u32 %s292_s24, 3 }
  0x1d   : > { %7421 = vst [vmem:[#allocation16_spill] sm:$0xff] %v5638_v10  ;;  %7422 = vst [vmem:[#allocation17_spill] sm:$0xff] %v5643_v11  ;;  %v5653_v13 = vld [vmem:[%s7402_s3 + $0x40] sm:$0xff]  ;;  %v5658_v14 = vld [vmem:[%s7402_s3 + $0x48] sm:$0xff]  ;;  %s5679_s14 = scalar_lea.vmem %s7399_s0, %s4199_s10 }
  0x1e   : > { %7423 = vst [vmem:[#allocation18_spill] sm:$0xff] %v5648_v12  ;;  %7424 = vst [vmem:[#allocation19_spill] sm:$0xff] %v5653_v13  ;;  %v5664_v15 = vld [vmem:[%s7402_s3 + $0x50] sm:$0xff]  ;;  %v5669_v16 = vld [vmem:[%s7402_s3 + $0x58] sm:$0xff] }
  0x1f   : > { %7425 = vst [vmem:[#allocation20_spill] sm:$0xff] %v5658_v14  ;;  %7426 = vst [vmem:[#allocation21_spill] sm:$0xff] %v5664_v15  ;;  %v5674_v17 = vld [vmem:[%s7402_s3 + $0x60] sm:$0xff]  ;;  %v5684_v18 = vld [vmem:[%s7402_s3 + $0x68] sm:$0xff] }
  0x20   : > { %7427 = vst [vmem:[#allocation22_spill] sm:$0xff] %v5669_v16  ;;  %7428 = vst [vmem:[#allocation23_spill] sm:$0xff] %v5674_v17  ;;  %v5689_v19 = vld [vmem:[%s7402_s3 + $0x70] sm:$0xff]  ;;  %v5694_v20 = vld [vmem:[%s7402_s3 + $0x78] sm:$0xff] }
  0x21   : > { %7429 = vst [vmem:[#allocation24_spill] sm:$0xff] %v5684_v18  ;;  %7430 = vst [vmem:[#allocation25_spill] sm:$0xff] %v5689_v19  ;;  %v5699_v21 = vld [vmem:[%s7403_s4] sm:$0xff]  ;;  %v5704_v22 = vld [vmem:[%s7403_s4 + $0x8] sm:$0xff] }
  0x22   : > { %7431 = vst [vmem:[#allocation26_spill] sm:$0xff] %v5694_v20  ;;  %7432 = vst [vmem:[#allocation27_spill] sm:$0xff] %v5699_v21  ;;  %v5709_v23 = vld [vmem:[%s7403_s4 + $0x10] sm:$0xff]  ;;  %v5714_v24 = vld [vmem:[%s7403_s4 + $0x18] sm:$0xff] }
  0x23   : > { %7433 = vst [vmem:[#allocation28_spill] sm:$0xff] %v5704_v22  ;;  %7434 = vst [vmem:[#allocation29_spill] sm:$0xff] %v5709_v23  ;;  %v5719_v25 = vld [vmem:[%s7403_s4 + $0x20] sm:$0xff]  ;;  %v5724_v26 = vld [vmem:[%s7403_s4 + $0x28] sm:$0xff] }
  0x24   : > { %7435 = vst [vmem:[#allocation30_spill] sm:$0xff] %v5714_v24  ;;  %7436 = vst [vmem:[#allocation31_spill] sm:$0xff] %v5719_v25  ;;  %v5729_v27 = vld [vmem:[%s7403_s4 + $0x30] sm:$0xff]  ;;  %v5734_v28 = vld [vmem:[%s7403_s4 + $0x38] sm:$0xff] }
  0x25   : > { %7437 = vst [vmem:[#allocation32_spill] sm:$0xff] %v5724_v26  ;;  %7438 = vst [vmem:[#allocation33_spill] sm:$0xff] %v5729_v27  ;;  %v5739_v29 = vld [vmem:[%s7403_s4 + $0x40] sm:$0xff]  ;;  %v5744_v30 = vld [vmem:[%s7403_s4 + $0x48] sm:$0xff] }
  0x26   : > { %7439 = vst [vmem:[#allocation34_spill] sm:$0xff] %v5734_v28  ;;  %v5749_v31 = vld [vmem:[%s7403_s4 + $0x50] sm:$0xff]  ;;  %v5754_v32 = vld [vmem:[%s7403_s4 + $0x58] sm:$0xff]  ;;  %v5759_v33 = vld [vmem:[%s7403_s4 + $0x60] sm:$0xff] }
  0x27   : > { %v5764_v34 = vld [vmem:[%s7403_s4 + $0x68] sm:$0xff]  ;;  %v5769_v35 = vld [vmem:[%s7403_s4 + $0x70] sm:$0xff]  ;;  %v5774_v36 = vld [vmem:[%s7403_s4 + $0x78] sm:$0xff] }
  0x28   : > { %7440 = vst [vmem:[#allocation35_spill] sm:$0xff] %v5769_v35  ;;  %v5779_v37 = vld [vmem:[%s7403_s4 + $0x80] sm:$0xff]  ;;  %v5784_v38 = vld [vmem:[%s7403_s4 + $0x88] sm:$0xff]  ;;  %v5789_v39 = vld [vmem:[%s7403_s4 + $0x90] sm:$0xff] }
  0x29   : > { %v5794_v40 = vld [vmem:[%s7403_s4 + $0x98] sm:$0xff]  ;;  %v5799_v41 = vld [vmem:[%s7403_s4 + $0xa0] sm:$0xff]  ;;  %v5804_v42 = vld [vmem:[%s7403_s4 + $0xa8] sm:$0xff] }
  0x2a   : > { %v5809_v43 = vld [vmem:[%s7403_s4 + $0xb0] sm:$0xff]  ;;  %v5814_v44 = vld [vmem:[%s7403_s4 + $0xb8] sm:$0xff]  ;;  %v5819_v45 = vld [vmem:[%s7403_s4 + $0xc0] sm:$0xff] }
  0x2b   : > { %v5824_v46 = vld [vmem:[%s7403_s4 + $0xc8] sm:$0xff]  ;;  %v5829_v47 = vld [vmem:[%s7403_s4 + $0xd0] sm:$0xff]  ;;  %v5834_v48 = vld [vmem:[%s7403_s4 + $0xd8] sm:$0xff] }
  0x2c   : > { %v5839_v49 = vld [vmem:[%s7403_s4 + $0xe0] sm:$0xff]  ;;  %v5844_v50 = vld [vmem:[%s7403_s4 + $0xe8] sm:$0xff]  ;;  %v5849_v51 = vld [vmem:[%s7403_s4 + $0xf0] sm:$0xff] }
  0x2d   : > { %7441 = vst [vmem:[#allocation36_spill] sm:$0xff] %v5849_v51  ;;  %v5854_v52 = vld [vmem:[%s7403_s4 + $0xf8] sm:$0xff]  ;;  %v5859_v53 = vld [vmem:[%s7403_s4 + $0x100] sm:$0xff]  ;;  %v5864_v54 = vld [vmem:[%s7403_s4 + $0x108] sm:$0xff] }
  0x2e   : > { %7442 = vst [vmem:[#allocation37_spill] sm:$0xff] %v5854_v52  ;;  %7443 = vst [vmem:[#allocation38_spill] sm:$0xff] %v5859_v53  ;;  %v5869_v55 = vld [vmem:[%s7403_s4 + $0x110] sm:$0xff]  ;;  %v5874_v56 = vld [vmem:[%s7403_s4 + $0x118] sm:$0xff] }
  0x2f   : > { %7444 = vst [vmem:[#allocation39_spill] sm:$0xff] %v5864_v54  ;;  %7445 = vst [vmem:[#allocation40_spill] sm:$0xff] %v5869_v55  ;;  %v5879_v57 = vld [vmem:[%s7403_s4 + $0x120] sm:$0xff]  ;;  %v5884_v58 = vld [vmem:[%s7403_s4 + $0x128] sm:$0xff] }
  0x30   : > { %7446 = vst [vmem:[#allocation41_spill] sm:$0xff] %v5874_v56  ;;  %7447 = vst [vmem:[#allocation42_spill] sm:$0xff] %v5879_v57  ;;  %v5889_v59 = vld [vmem:[%s7403_s4 + $0x130] sm:$0xff]  ;;  %v5894_v60 = vld [vmem:[%s7403_s4 + $0x138] sm:$0xff] }
  0x31   : > { %7448 = vst [vmem:[#allocation43_spill] sm:$0xff] %v5884_v58  ;;  %7449 = vst [vmem:[#allocation44_spill] sm:$0xff] %v5889_v59  ;;  %v5899_v61 = vld [vmem:[%s7403_s4 + $0x140] sm:$0xff]  ;;  %v5904_v62 = vld [vmem:[%s7403_s4 + $0x148] sm:$0xff] }
  0x32   : > { %7450 = vst [vmem:[#allocation45_spill] sm:$0xff] %v5894_v60  ;;  %7451 = vst [vmem:[#allocation46_spill] sm:$0xff] %v5899_v61  ;;  %v5909_v63 = vld [vmem:[%s7403_s4 + $0x150] sm:$0xff]  ;;  %v5914_v59 = vld [vmem:[%s7403_s4 + $0x158] sm:$0xff] }
  0x33   : > { %7452 = vst [vmem:[#allocation47_spill] sm:$0xff] %v5904_v62  ;;  %7453 = vst [vmem:[#allocation48_spill] sm:$0xff] %v5909_v63  ;;  %v5919_v60 = vld [vmem:[%s7403_s4 + $0x160] sm:$0xff]  ;;  %v5924_v61 = vld [vmem:[%s7403_s4 + $0x168] sm:$0xff] }
  0x34   : > { %7454 = vst [vmem:[#allocation49_spill] sm:$0xff] %v5914_v59  ;;  %7455 = vst [vmem:[#allocation50_spill] sm:$0xff] %v5919_v60  ;;  %v5929_v62 = vld [vmem:[%s7403_s4 + $0x170] sm:$0xff]  ;;  %v5934_v63 = vld [vmem:[%s7403_s4 + $0x178] sm:$0xff] }
  0x35   : > { %7456 = vst [vmem:[#allocation51_spill] sm:$0xff] %v5924_v61  ;;  %7457 = vst [vmem:[#allocation52_spill] sm:$0xff] %v5929_v62  ;;  %v5939_v59 = vld [vmem:[%s7403_s4 + $0x180] sm:$0xff]  ;;  %v5944_v60 = vld [vmem:[%s7403_s4 + $0x188] sm:$0xff] }
  0x36   : > { %7458 = vst [vmem:[#allocation53_spill] sm:$0xff] %v5934_v63  ;;  %7459 = vst [vmem:[#allocation54_spill] sm:$0xff] %v5939_v59  ;;  %v5949_v61 = vld [vmem:[%s7403_s4 + $0x190] sm:$0xff]  ;;  %v5954_v62 = vld [vmem:[%s7403_s4 + $0x198] sm:$0xff] }
  0x37   : > { %7460 = vst [vmem:[#allocation55_spill] sm:$0xff] %v5944_v60  ;;  %7461 = vst [vmem:[#allocation56_spill] sm:$0xff] %v5949_v61  ;;  %v5959_v63 = vld [vmem:[%s7403_s4 + $0x1a0] sm:$0xff]  ;;  %v5964_v57 = vld [vmem:[%s7403_s4 + $0x1a8] sm:$0xff] }
  0x38   : > { %7462 = vst [vmem:[#allocation57_spill] sm:$0xff] %v5954_v62  ;;  %7463 = vst [vmem:[#allocation58_spill] sm:$0xff] %v5959_v63  ;;  %v5969_v58 = vld [vmem:[%s7403_s4 + $0x1b0] sm:$0xff]  ;;  %v5974_v55 = vld [vmem:[%s7403_s4 + $0x1b8] sm:$0xff] }
  0x39   : > { %7464 = vst [vmem:[#allocation59_spill] sm:$0xff] %v5964_v57  ;;  %7465 = vst [vmem:[#allocation60_spill] sm:$0xff] %v5969_v58  ;;  %v5979_v62 = vld [vmem:[%s7403_s4 + $0x1c0] sm:$0xff]  ;;  %v5984_v63 = vld [vmem:[%s7403_s4 + $0x1c8] sm:$0xff] }
  0x3a   : > { %7466 = vst [vmem:[#allocation61_spill] sm:$0xff] %v5974_v55  ;;  %7467 = vst [vmem:[#allocation62_spill] sm:$0xff] %v5979_v62  ;;  %v5989_v57 = vld [vmem:[%s7403_s4 + $0x1d0] sm:$0xff]  ;;  %v5994_v58 = vld [vmem:[%s7403_s4 + $0x1d8] sm:$0xff] }
  0x3b   : > { %7468 = vst [vmem:[#allocation63_spill] sm:$0xff] %v5984_v63  ;;  %7469 = vst [vmem:[#allocation64_spill] sm:$0xff] %v5989_v57  ;;  %v5999_v55 = vld [vmem:[%s7403_s4 + $0x1e0] sm:$0xff]  ;;  %v6004_v62 = vld [vmem:[%s7403_s4 + $0x1e8] sm:$0xff] }
  0x3c   : > { %7470 = vst [vmem:[#allocation65_spill] sm:$0xff] %v5994_v58  ;;  %7471 = vst [vmem:[#allocation66_spill] sm:$0xff] %v5999_v55  ;;  %v6009_v63 = vld [vmem:[%s7403_s4 + $0x1f0] sm:$0xff]  ;;  %v6014_v57 = vld [vmem:[%s7403_s4 + $0x1f8] sm:$0xff] }
  0x3d   : > { %7472 = vst [vmem:[#allocation67_spill] sm:$0xff] %v6004_v62  ;;  %7473 = vst [vmem:[#allocation68_spill] sm:$0xff] %v6009_v63  ;;  %v6019_v58 = vld [vmem:[%s7403_s4 + $0x200] sm:$0xff]  ;;  %v6024_v55 = vld [vmem:[%s7403_s4 + $0x208] sm:$0xff] }
  0x3e   : > { %7474 = vst [vmem:[#allocation69_spill] sm:$0xff] %v6014_v57  ;;  %7475 = vst [vmem:[#allocation70_spill] sm:$0xff] %v6019_v58  ;;  %v6029_v62 = vld [vmem:[%s7403_s4 + $0x210] sm:$0xff]  ;;  %v6034_v63 = vld [vmem:[%s7403_s4 + $0x218] sm:$0xff] }
  0x3f   : > { %7476 = vst [vmem:[#allocation71_spill] sm:$0xff] %v6024_v55  ;;  %7477 = vst [vmem:[#allocation72_spill] sm:$0xff] %v6029_v62  ;;  %v6039_v57 = vld [vmem:[%s7403_s4 + $0x220] sm:$0xff]  ;;  %v6044_v58 = vld [vmem:[%s7403_s4 + $0x228] sm:$0xff] }
  0x40   : > { %7478 = vst [vmem:[#allocation73_spill] sm:$0xff] %v6034_v63  ;;  %7479 = vst [vmem:[#allocation74_spill] sm:$0xff] %v6039_v57  ;;  %v6049_v55 = vld [vmem:[%s7403_s4 + $0x230] sm:$0xff]  ;;  %v6054_v62 = vld [vmem:[%s7403_s4 + $0x238] sm:$0xff] }
  0x41   : > { %7480 = vst [vmem:[#allocation75_spill] sm:$0xff] %v6044_v58  ;;  %7481 = vst [vmem:[#allocation76_spill] sm:$0xff] %v6049_v55  ;;  %v6059_v63 = vld [vmem:[%s7403_s4 + $0x240] sm:$0xff]  ;;  %v6064_v57 = vld [vmem:[%s7403_s4 + $0x248] sm:$0xff] }
  0x42   : > { %7482 = vst [vmem:[#allocation77_spill] sm:$0xff] %v6054_v62  ;;  %7483 = vst [vmem:[#allocation78_spill] sm:$0xff] %v6059_v63  ;;  %v6069_v58 = vld [vmem:[%s7403_s4 + $0x250] sm:$0xff]  ;;  %v6074_v55 = vld [vmem:[%s7403_s4 + $0x258] sm:$0xff] }
  0x43   : > { %7484 = vst [vmem:[#allocation79_spill] sm:$0xff] %v6064_v57  ;;  %7485 = vst [vmem:[#allocation80_spill] sm:$0xff] %v6069_v58  ;;  %v6079_v62 = vld [vmem:[%s7403_s4 + $0x260] sm:$0xff]  ;;  %v6084_v63 = vld [vmem:[%s7403_s4 + $0x268] sm:$0xff] }
  0x44   : > { %7486 = vst [vmem:[#allocation81_spill] sm:$0xff] %v6074_v55  ;;  %7487 = vst [vmem:[#allocation82_spill] sm:$0xff] %v6079_v62  ;;  %v6089_v57 = vld [vmem:[%s7403_s4 + $0x270] sm:$0xff]  ;;  %v6094_v58 = vld [vmem:[%s7403_s4 + $0x278] sm:$0xff] }
  0x45   : > { %7488 = vst [vmem:[#allocation83_spill] sm:$0xff] %v6084_v63  ;;  %7489 = vst [vmem:[#allocation84_spill] sm:$0xff] %v6089_v57  ;;  %v6099_v55 = vld [vmem:[%s7403_s4 + $0x280] sm:$0xff]  ;;  %v6104_v62 = vld [vmem:[%s7403_s4 + $0x288] sm:$0xff] }
  0x46   : > { %7490 = vst [vmem:[#allocation85_spill] sm:$0xff] %v6094_v58  ;;  %7491 = vst [vmem:[#allocation86_spill] sm:$0xff] %v6099_v55  ;;  %v6109_v63 = vld [vmem:[%s7403_s4 + $0x290] sm:$0xff]  ;;  %v6114_v57 = vld [vmem:[%s7403_s4 + $0x298] sm:$0xff] }
  0x47   : > { %7492 = vst [vmem:[#allocation87_spill] sm:$0xff] %v6104_v62  ;;  %7493 = vst [vmem:[#allocation88_spill] sm:$0xff] %v6109_v63  ;;  %v6119_v58 = vld [vmem:[%s7403_s4 + $0x2a0] sm:$0xff]  ;;  %v6124_v55 = vld [vmem:[%s7403_s4 + $0x2a8] sm:$0xff] }
  0x48   : > { %7494 = vst [vmem:[#allocation89_spill] sm:$0xff] %v6114_v57  ;;  %7495 = vst [vmem:[#allocation90_spill] sm:$0xff] %v6119_v58  ;;  %v6129_v62 = vld [vmem:[%s7403_s4 + $0x2b0] sm:$0xff]  ;;  %v6134_v63 = vld [vmem:[%s7403_s4 + $0x2b8] sm:$0xff] }
  0x49   : > { %7496 = vst [vmem:[#allocation91_spill] sm:$0xff] %v6124_v55  ;;  %7497 = vst [vmem:[#allocation92_spill] sm:$0xff] %v6129_v62  ;;  %v6139_v57 = vld [vmem:[%s7403_s4 + $0x2c0] sm:$0xff]  ;;  %v6144_v58 = vld [vmem:[%s7403_s4 + $0x2c8] sm:$0xff] }
  0x4a   : > { %7498 = vst [vmem:[#allocation93_spill] sm:$0xff] %v6134_v63  ;;  %7499 = vst [vmem:[#allocation94_spill] sm:$0xff] %v6139_v57  ;;  %v6149_v55 = vld [vmem:[%s7403_s4 + $0x2d0] sm:$0xff]  ;;  %v6154_v62 = vld [vmem:[%s7403_s4 + $0x2d8] sm:$0xff] }
  0x4b   : > { %7500 = vst [vmem:[#allocation95_spill] sm:$0xff] %v6144_v58  ;;  %7501 = vst [vmem:[#allocation96_spill] sm:$0xff] %v6149_v55  ;;  %v6159_v63 = vld [vmem:[%s7403_s4 + $0x2e0] sm:$0xff]  ;;  %v6164_v57 = vld [vmem:[%s7403_s4 + $0x2e8] sm:$0xff] }
  0x4c   : > { %7502 = vst [vmem:[#allocation97_spill] sm:$0xff] %v6154_v62  ;;  %7503 = vst [vmem:[#allocation98_spill] sm:$0xff] %v6159_v63  ;;  %v6169_v58 = vld [vmem:[%s7403_s4 + $0x2f0] sm:$0xff]  ;;  %v6174_v55 = vld [vmem:[%s7403_s4 + $0x2f8] sm:$0xff] }
  0x4d   : > { %7504 = vst [vmem:[#allocation99_spill] sm:$0xff] %v6164_v57  ;;  %7505 = vst [vmem:[#allocation100_spill] sm:$0xff] %v6169_v58  ;;  %v6179_v62 = vld [vmem:[%s7403_s4 + $0x300] sm:$0xff]  ;;  %v6184_v63 = vld [vmem:[%s7403_s4 + $0x308] sm:$0xff] }
  0x4e   : > { %7506 = vst [vmem:[#allocation101_spill] sm:$0xff] %v6174_v55  ;;  %7507 = vst [vmem:[#allocation102_spill] sm:$0xff] %v6179_v62  ;;  %v6189_v57 = vld [vmem:[%s7403_s4 + $0x310] sm:$0xff]  ;;  %v6194_v58 = vld [vmem:[%s7403_s4 + $0x318] sm:$0xff] }
  0x4f   : > { %7508 = vst [vmem:[#allocation103_spill] sm:$0xff] %v6184_v63  ;;  %7509 = vst [vmem:[#allocation104_spill] sm:$0xff] %v6189_v57  ;;  %v6199_v55 = vld [vmem:[%s7403_s4 + $0x320] sm:$0xff]  ;;  %v6204_v62 = vld [vmem:[%s7403_s4 + $0x328] sm:$0xff] }
  0x50   : > { %7510 = vst [vmem:[#allocation105_spill] sm:$0xff] %v6194_v58  ;;  %7511 = vst [vmem:[#allocation106_spill] sm:$0xff] %v6199_v55  ;;  %v6209_v63 = vld [vmem:[%s7403_s4 + $0x330] sm:$0xff]  ;;  %v6214_v57 = vld [vmem:[%s7403_s4 + $0x338] sm:$0xff] }
  0x51   : > { %7512 = vst [vmem:[#allocation107_spill] sm:$0xff] %v6204_v62  ;;  %7513 = vst [vmem:[#allocation108_spill] sm:$0xff] %v6209_v63  ;;  %v6219_v58 = vld [vmem:[%s7403_s4 + $0x340] sm:$0xff]  ;;  %v6224_v55 = vld [vmem:[%s7403_s4 + $0x348] sm:$0xff] }
  0x52   : > { %7514 = vst [vmem:[#allocation109_spill] sm:$0xff] %v6214_v57  ;;  %7515 = vst [vmem:[#allocation110_spill] sm:$0xff] %v6219_v58  ;;  %v6229_v62 = vld [vmem:[%s7403_s4 + $0x350] sm:$0xff]  ;;  %v6234_v63 = vld [vmem:[%s7403_s4 + $0x358] sm:$0xff] }
  0x53   : > { %7516 = vst [vmem:[#allocation111_spill] sm:$0xff] %v6224_v55  ;;  %7517 = vst [vmem:[#allocation112_spill] sm:$0xff] %v6229_v62  ;;  %v6239_v57 = vld [vmem:[%s7403_s4 + $0x360] sm:$0xff]  ;;  %v6244_v58 = vld [vmem:[%s7403_s4 + $0x368] sm:$0xff] }
  0x54   : > { %7518 = vst [vmem:[#allocation113_spill] sm:$0xff] %v6234_v63  ;;  %7519 = vst [vmem:[#allocation114_spill] sm:$0xff] %v6239_v57  ;;  %v6249_v55 = vld [vmem:[%s7403_s4 + $0x370] sm:$0xff]  ;;  %v6254_v62 = vld [vmem:[%s7403_s4 + $0x378] sm:$0xff] }
  0x55   : > { %7520 = vst [vmem:[#allocation115_spill] sm:$0xff] %v6244_v58  ;;  %7521 = vst [vmem:[#allocation116_spill] sm:$0xff] %v6249_v55  ;;  %v6259_v63 = vld [vmem:[%s7403_s4 + $0x380] sm:$0xff]  ;;  %v6264_v57 = vld [vmem:[%s7403_s4 + $0x388] sm:$0xff] }
  0x56   : > { %7522 = vst [vmem:[#allocation117_spill] sm:$0xff] %v6254_v62  ;;  %7523 = vst [vmem:[#allocation118_spill] sm:$0xff] %v6259_v63  ;;  %v6269_v58 = vld [vmem:[%s7403_s4 + $0x390] sm:$0xff]  ;;  %v6274_v55 = vld [vmem:[%s7403_s4 + $0x398] sm:$0xff] }
  0x57   : > { %7524 = vst [vmem:[#allocation119_spill] sm:$0xff] %v6264_v57  ;;  %7525 = vst [vmem:[#allocation120_spill] sm:$0xff] %v6269_v58  ;;  %v6279_v62 = vld [vmem:[%s7403_s4 + $0x3a0] sm:$0xff]  ;;  %v6284_v63 = vld [vmem:[%s7403_s4 + $0x3a8] sm:$0xff] }
  0x58   : > { %7526 = vst [vmem:[#allocation121_spill] sm:$0xff] %v6274_v55  ;;  %7527 = vst [vmem:[#allocation122_spill] sm:$0xff] %v6279_v62  ;;  %v6289_v57 = vld [vmem:[%s7403_s4 + $0x3b0] sm:$0xff]  ;;  %v6294_v58 = vld [vmem:[%s7403_s4 + $0x3b8] sm:$0xff] }
  0x59   : > { %7528 = vst [vmem:[#allocation123_spill] sm:$0xff] %v6284_v63  ;;  %7529 = vst [vmem:[#allocation124_spill] sm:$0xff] %v6289_v57  ;;  %v6299_v55 = vld [vmem:[%s7403_s4 + $0x3c0] sm:$0xff]  ;;  %v6304_v62 = vld [vmem:[%s7403_s4 + $0x3c8] sm:$0xff] }
  0x5a   : > { %7530 = vst [vmem:[#allocation125_spill] sm:$0xff] %v6294_v58  ;;  %7531 = vst [vmem:[#allocation126_spill] sm:$0xff] %v6299_v55  ;;  %v6309_v57 = vld [vmem:[%s7403_s4 + $0x3d0] sm:$0xff]  ;;  %v6314_v58 = vld [vmem:[%s7403_s4 + $0x3d8] sm:$0xff] }
  0x5b   : > { %7532 = vst [vmem:[#allocation127_spill] sm:$0xff] %v6304_v62  ;;  %7533 = vst [vmem:[#allocation128_spill] sm:$0xff] %v6309_v57  ;;  %v6319_v55 = vld [vmem:[%s7403_s4 + $0x3e0] sm:$0xff]  ;;  %v6324_v63 = vld [vmem:[%s7403_s4 + $0x3e8] sm:$0xff] }
  0x5c   : > { %7534 = vst [vmem:[#allocation129_spill] sm:$0xff] %v6314_v58  ;;  %7535 = vst [vmem:[#allocation130_spill] sm:$0xff] %v6319_v55  ;;  %v6329_v62 = vld [vmem:[%s7403_s4 + $0x3f0] sm:$0xff]  ;;  %v6334_v57 = vld [vmem:[%s7403_s4 + $0x3f8] sm:$0xff] }
  0x5d   : > { %7536 = vst [vmem:[#allocation131_spill] sm:$0xff] %v6324_v63  ;;  %7537 = vst [vmem:[#allocation132_spill] sm:$0xff] %v6329_v62  ;;  %v6339_v58 = vld [vmem:[%s7404_s5] sm:$0xff]  ;;  %v6344_v55 = vld [vmem:[%s7404_s5 + $0x8] sm:$0xff] }
  0x5e   : > { %7538 = vst [vmem:[#allocation133_spill] sm:$0xff] %v6334_v57  ;;  %7539 = vst [vmem:[#allocation134_spill] sm:$0xff] %v6339_v58  ;;  %v6349_v63 = vld [vmem:[%s7404_s5 + $0x10] sm:$0xff]  ;;  %v6354_v62 = vld [vmem:[%s7404_s5 + $0x18] sm:$0xff] }
  0x5f   : > { %7540 = vst [vmem:[#allocation135_spill] sm:$0xff] %v6344_v55  ;;  %7541 = vst [vmem:[#allocation136_spill] sm:$0xff] %v6349_v63  ;;  %v6359_v57 = vld [vmem:[%s7404_s5 + $0x20] sm:$0xff]  ;;  %v6364_v61 = vld [vmem:[%s7404_s5 + $0x28] sm:$0xff] }
  0x60   : > { %7542 = vst [vmem:[#allocation137_spill] sm:$0xff] %v6354_v62  ;;  %7543 = vst [vmem:[#allocation138_spill] sm:$0xff] %v6359_v57  ;;  %v6369_v56 = vld [vmem:[%s7404_s5 + $0x30] sm:$0xff]  ;;  %v6374_v63 = vld [vmem:[%s7404_s5 + $0x38] sm:$0xff] }
  0x61   : > { %7544 = vst [vmem:[#allocation139_spill] sm:$0xff] %v6364_v61  ;;  %7545 = vst [vmem:[#allocation140_spill] sm:$0xff] %v6369_v56 }
  0x62   : > { %7546 = vst [vmem:[#allocation141_spill] sm:$0xff] %v6374_v63 }
  0x63 LB: >> { %v7547_v4 = vld [vmem:[#allocation10_spill] sm:$0xff]  ;;  %v7549_v1 = vld [vmem:[#allocation7_spill] sm:$0xff]  ;;  %v7550_v2 = vld [vmem:[#allocation8_spill] sm:$0xff]  ;;  %s4201_s19 = sshll.u32 %s5476_s18, 10  ;;  %vm606_vm0 = vcmask 261120   ;;  %s7569_s21 = sshll.u32 %s5546_s6, 11  ;;  %s5476_s18 = sphi %s6377_s18, %s469_s18  }
  0x64   : >> { %v7548_v0 = vld [vmem:[#allocation6_spill] sm:$0xff]  ;;  %v7551_v3 = vld [vmem:[#allocation9_spill] sm:$0xff]  ;;  %s6390_s20 = scalar_lea.vmem %s5679_s14, %s4201_s19  ;;  %v7552_v5 = vld [vmem:[#allocation11_spill] sm:$0xff]  ;;  %s2529_s10 = sadd.s32 %s4201_s19, %s7569_s21 }
  0x65   : >> { %v5183_v57 = vpack.c.bf16 %v7549_v1, %v7548_v0  ;;  %v5187_v56 = vpack.c.bf16 %v7551_v3, %v7550_v2  ;;  %v472_v0 = vld [vmem:[%s6390_s20] sm:$0xff]  ;;  %v473_v1 = vld [vmem:[%s6390_s20 + $0x8] sm:$0xff]  ;;  %v475_v2 = vld [vmem:[%s6390_s20 + $0x18] sm:$0xff]  ;;  %s4331_s25 = sshll.u32 %s5476_s18, 3  ;;  %s469_s18 = sadd.s32 1, %s5476_s18  }
  0x66   : >> { %4767 = vmatprep.mubr.msk.f32.mxu0 %vm606_vm0, %v472_v0  ;;  %v476_v3 = vld [vmem:[%s6390_s20 + $0x20] sm:$0xff]  ;;  %v477_v63 = vld [vmem:[%s6390_s20 + $0x28] sm:$0xff]  ;;  %v478_v0 = vld [vmem:[%s6390_s20 + $0x30] sm:$0xff]  ;;  %s4100_s9 = scalar_lea.vmem %s285_s17, %s4331_s25 [#allocation3]  ;;  %p466_p11 = scmp.ge.s32.totalorder %s469_s18, 2  }
  0x67   : >> { %5184 = vmatprep.subr.bf16.mxu0 %v5183_v57  ;;  %v500_v53 = vld [vmem:[%s6390_s20 + $0xe0] sm:$0xff]  ;;  %v7553_v6 = vld [vmem:[#allocation12_spill] sm:$0xff]  ;;  %v7554_v7 = vld [vmem:[#allocation13_spill] sm:$0xff]  ;;  %s7688_s30 = sand.u32 (%p466_p11), 1, %s5464_s27  }
  0x68   : >> { %5186 = vmatpush3.bf16.msra.mxu0 %v5183_v57  ;;  %v474_v57 = vld [vmem:[%s6390_s20 + $0x10] sm:$0xff]  ;;  %v7555_v8 = vld [vmem:[#allocation14_spill] sm:$0xff]  ;;  %v7556_v9 = vld [vmem:[#allocation15_spill] sm:$0xff]  ;;  %s7337_s24 = scalar_lea.sflag (%p466_p11), [#allocation4], %s7688_s30 }
  0x69   : >> { %5188 = vmatprep.subr.bf16.mxu0 %v5187_v56  ;;  %v7557_v10 = vld [vmem:[#allocation16_spill] sm:$0xff]  ;;  %v7558_v11 = vld [vmem:[#allocation17_spill] sm:$0xff]  ;;  %v7559_v12 = vld [vmem:[#allocation18_spill] sm:$0xff] }
  0x6a   : >> { %v7560_v13 = vld [vmem:[#allocation19_spill] sm:$0xff]  ;;  %v7561_v14 = vld [vmem:[#allocation20_spill] sm:$0xff]  ;;  %v7562_v15 = vld [vmem:[#allocation21_spill] sm:$0xff] }
  0x6b   : >> { %v7563_v16 = vld [vmem:[#allocation22_spill] sm:$0xff]  ;;  %v7564_v17 = vld [vmem:[#allocation23_spill] sm:$0xff]  ;;  %v7565_v18 = vld [vmem:[#allocation24_spill] sm:$0xff] }
  0x6c   : >> { %5190 = vmatpush3.bf16.msra.mxu0 %v5187_v56  ;;  %v479_v56 = vld [vmem:[%s6390_s20 + $0x38] sm:$0xff]  ;;  %v7567_v20 = vld [vmem:[#allocation26_spill] sm:$0xff]  ;;  %v7568_v55 = vld [vmem:[#allocation135_spill] sm:$0xff] }
  0x6d   : >> { %v7566_v19 = vld [vmem:[#allocation25_spill] sm:$0xff]  ;;  %v7573_v21 = vld [vmem:[#allocation27_spill] sm:$0xff]  ;;  %v7574_v22 = vld [vmem:[#allocation28_spill] sm:$0xff] }
  0x6e   : >> { %v7570_v62 = vld [vmem:[#allocation137_spill] sm:$0xff]  ;;  %v7576_v24 = vld [vmem:[#allocation30_spill] sm:$0xff]  ;;  %v7577_v26 = vld [vmem:[#allocation32_spill] sm:$0xff] }
  0x6f   : >> { %4768 = vmatmul.mubr.msk.f32.vlgmr.msra.gmra.mrb[0].mxu0 %vm606_vm0, %v473_v1  ;;  %v480_v1 = vld [vmem:[%s6390_s20 + $0x40] sm:$0xff]  ;;  %v7575_v23 = vld [vmem:[#allocation29_spill] sm:$0xff]  ;;  %v7578_v25 = vld [vmem:[#allocation31_spill] sm:$0xff] }
  0x70   : >> { %4770 = vmatprep.mubr.msk.f32.mxu0 %vm606_vm0, %v474_v57  ;;  %v481_v57 = vld [vmem:[%s6390_s20 + $0x48] sm:$0xff]  ;;  %v7579_v28 = vld [vmem:[#allocation34_spill] sm:$0xff]  ;;  %v7580_v27 = vld [vmem:[#allocation33_spill] sm:$0xff] }
  0x73   : >> { %4771 = vmatmul.mubr.msk.f32.gmra.mrb[2].mxu0 %vm606_vm0, %v475_v2  ;;  %v482_v2 = vld [vmem:[%s6390_s20 + $0x50] sm:$0xff] }
  0x74   : >> { %4773 = vmatprep.mubr.msk.f32.mxu0 %vm606_vm0, %v476_v3  ;;  %v483_v3 = vld [vmem:[%s6390_s20 + $0x58] sm:$0xff] }
  0x77   : >> { %4774 = vmatmul.mubr.msk.f32.gmra.mrb[4].mxu0 %vm606_vm0, %v477_v63  ;;  %v484_v63 = vld [vmem:[%s6390_s20 + $0x60] sm:$0xff] }
  0x78   : >> { %4776 = vmatprep.mubr.msk.f32.mxu0 %vm606_vm0, %v478_v0  ;;  %v485_v0 = vld [vmem:[%s6390_s20 + $0x68] sm:$0xff] }
  0x7b   : >> { %4777 = vmatmul.mubr.msk.f32.gmra.mrb[6].mxu0 %vm606_vm0, %v479_v56  ;;  %v486_v56 = vld [vmem:[%s6390_s20 + $0x70] sm:$0xff] }
  0x7c   : >> { %4779 = vmatprep.mubr.msk.f32.mxu0 %vm606_vm0, %v480_v1  ;;  %v487_v1 = vld [vmem:[%s6390_s20 + $0x78] sm:$0xff] }
  0x7f   : >> { %4780 = vmatmul.mubr.msk.f32.gmra.mrb[8].mxu0 %vm606_vm0, %v481_v57  ;;  %v488_v57 = vld [vmem:[%s6390_s20 + $0x80] sm:$0xff] }
  0x80   : >> { %4782 = vmatprep.mubr.msk.f32.mxu0 %vm606_vm0, %v482_v2  ;;  %v489_v2 = vld [vmem:[%s6390_s20 + $0x88] sm:$0xff] }
  0x83   : >> { %4783 = vmatmul.mubr.msk.f32.gmra.mrb[10].mxu0 %vm606_vm0, %v483_v3  ;;  %v490_v3 = vld [vmem:[%s6390_s20 + $0x90] sm:$0xff] }
  0x84   : >> { %4785 = vmatprep.mubr.msk.f32.mxu0 %vm606_vm0, %v484_v63  ;;  %v491_v63 = vld [vmem:[%s6390_s20 + $0x98] sm:$0xff] }
  0x87   : >> { %4786 = vmatmul.mubr.msk.f32.gmra.mrb[12].mxu0 %vm606_vm0, %v485_v0  ;;  %v492_v0 = vld [vmem:[%s6390_s20 + $0xa0] sm:$0xff] }
  0x88   : >> { %4788 = vmatprep.mubr.msk.f32.mxu0 %vm606_vm0, %v486_v56  ;;  %v493_v56 = vld [vmem:[%s6390_s20 + $0xa8] sm:$0xff] }
  0x8b   : >> { %4789 = vmatmul.mubr.msk.f32.gmra.mrb[14].mxu0 %vm606_vm0, %v487_v1  ;;  %v494_v1 = vld [vmem:[%s6390_s20 + $0xb0] sm:$0xff] }
  0x8c   : >> { %4791 = vmatprep.mubr.msk.f32.mxu0 %vm606_vm0, %v488_v57  ;;  %v495_v57 = vld [vmem:[%s6390_s20 + $0xb8] sm:$0xff] }
  0x8f   : >> { %4792 = vmatmul.mubr.msk.f32.gmra.mrb[16].mxu0 %vm606_vm0, %v489_v2  ;;  %v496_v2 = vld [vmem:[%s6390_s20 + $0xc0] sm:$0xff] }
  0x90   : >> { %4794 = vmatprep.mubr.msk.f32.mxu0 %vm606_vm0, %v490_v3  ;;  %v497_v3 = vld [vmem:[%s6390_s20 + $0xc8] sm:$0xff] }
  0x93   : >> { %4795 = vmatmul.mubr.msk.f32.gmra.mrb[18].mxu0 %vm606_vm0, %v491_v63  ;;  %v498_v63 = vld [vmem:[%s6390_s20 + $0xd0] sm:$0xff] }
  0x94   : >> { %4797 = vmatprep.mubr.msk.f32.mxu0 %vm606_vm0, %v492_v0  ;;  %v499_v0 = vld [vmem:[%s6390_s20 + $0xd8] sm:$0xff] }
  0x97   : >> { %4798 = vmatmul.mubr.msk.f32.gmra.mrb[20].mxu0 %vm606_vm0, %v493_v56  ;;  %v501_v56 = vld [vmem:[%s6390_s20 + $0xe8] sm:$0xff] }
  0x98   : >> { %4800 = vmatprep.mubr.msk.f32.mxu0 %vm606_vm0, %v494_v1  ;;  %v502_v1 = vld [vmem:[%s6390_s20 + $0xf0] sm:$0xff] }
  0x9b   : >> { %4801 = vmatmul.mubr.msk.f32.gmra.mrb[22].mxu0 %vm606_vm0, %v495_v57  ;;  %v5191_v57 = vpack.c.bf16 %v7553_v6, %v7552_v5  ;;  %v582_v6 = vld [vmem:[%s6390_s20 + $0x370] sm:$0xff] }
  0x9c   : >> { %4803 = vmatprep.mubr.msk.f32.mxu0 %vm606_vm0, %v496_v2  ;;  %v503_v2 = vld [vmem:[%s6390_s20 + $0xf8] sm:$0xff] }
  0x9d   : >> { %5192 = vmatprep.subr.bf16.mxu1 %v5191_v57 }
  0x9e   : >> { %5194 = vmatpush3.bf16.msra.mxu1 %v5191_v57  ;;  %v508_v57 = vld [vmem:[%s6390_s20 + $0x120] sm:$0xff] }
  0x9f   : >> { %4804 = vmatmul.mubr.msk.f32.gmra.mrb[24].mxu0 %vm606_vm0, %v497_v3  ;;  %v504_v3 = vld [vmem:[%s6390_s20 + $0x100] sm:$0xff] }
  0xa0   : >> { %4806 = vmatprep.mubr.msk.f32.mxu0 %vm606_vm0, %v498_v63  ;;  %v505_v63 = vld [vmem:[%s6390_s20 + $0x108] sm:$0xff] }
  0xa3   : >> { %4807 = vmatmul.mubr.msk.f32.gmra.mrb[26].mxu0 %vm606_vm0, %v499_v0  ;;  %v506_v0 = vld [vmem:[%s6390_s20 + $0x110] sm:$0xff] }
  0xa4   : >> { %4809 = vmatprep.mubr.msk.f32.mxu0 %vm606_vm0, %v500_v53  ;;  %v5195_v53 = vpack.c.bf16 %v7555_v8, %v7554_v7 }
  0xa6   : >> { %5196 = vmatprep.subr.bf16.mxu1 %v5195_v53 }
  0xa7   : >> { %4810 = vmatmul.mubr.msk.f32.gmra.mrb[28].mxu0 %vm606_vm0, %v501_v56  ;;  %5198 = vmatpush3.bf16.msra.mxu1 %v5195_v53  ;;  %v5199_v56 = vpack.c.bf16 %v7557_v10, %v7556_v9  ;;  %v510_v53 = vld [vmem:[%s6390_s20 + $0x130] sm:$0xff] }
  0xa8   : >> { %4812 = vmatprep.mubr.msk.f32.mxu0 %vm606_vm0, %v502_v1  ;;  %v507_v1 = vld [vmem:[%s6390_s20 + $0x118] sm:$0xff] }
  0xa9   : >> { %5200 = vmatprep.subr.bf16.mxu1 %v5199_v56 }
  0xab   : >> { %4813 = vmatmul.mubr.msk.f32.gmra.mrb[30].mxu0 %vm606_vm0, %v503_v2  ;;  %5202 = vmatpush3.bf16.msra.mxu1 %v5199_v56  ;;  %v5203_v2 = vpack.c.bf16 %v7559_v12, %v7558_v11  ;;  %v512_v56 = vld [vmem:[%s6390_s20 + $0x140] sm:$0xff] }
  0xac   : >> { %4815 = vmatprep.mubr.msk.f32.mxu0 %vm606_vm0, %v504_v3  ;;  %v509_v3 = vld [vmem:[%s6390_s20 + $0x128] sm:$0xff] }
  0xad   : >> { %5204 = vmatprep.subr.bf16.mxu1 %v5203_v2 }
  0xaf   : >> { %4816 = vmatmul.mubr.msk.f32.gmra.mrb[32].mxu0 %vm606_vm0, %v505_v63  ;;  %5206 = vmatpush3.bf16.msra.mxu1 %v5203_v2  ;;  %v5207_v63 = vpack.c.bf16 %v7561_v14, %v7560_v13  ;;  %v514_v2 = vld [vmem:[%s6390_s20 + $0x150] sm:$0xff] }
  0xb0   : >> { %4818 = vmatprep.mubr.msk.f32.mxu0 %vm606_vm0, %v506_v0  ;;  %v511_v0 = vld [vmem:[%s6390_s20 + $0x138] sm:$0xff] }
  0xb1   : >> { %5208 = vmatprep.subr.bf16.mxu1 %v5207_v63 }
  0xb3   : >> { %4819 = vmatmul.mubr.msk.f32.gmra.mrb[34].mxu0 %vm606_vm0, %v507_v1  ;;  %5210 = vmatpush3.bf16.msra.mxu1 %v5207_v63  ;;  %v5211_v1 = vpack.c.bf16 %v7563_v16, %v7562_v15  ;;  %v516_v63 = vld [vmem:[%s6390_s20 + $0x160] sm:$0xff] }
  0xb4   : >> { %4821 = vmatprep.mubr.msk.f32.mxu0 %vm606_vm0, %v508_v57  ;;  %v513_v57 = vld [vmem:[%s6390_s20 + $0x148] sm:$0xff] }
  0xb5   : >> { %5212 = vmatprep.subr.bf16.mxu1 %v5211_v1 }
  0xb7   : >> { %4822 = vmatmul.mubr.msk.f32.gmra.mrb[36].mxu0 %vm606_vm0, %v509_v3  ;;  %5214 = vmatpush3.bf16.msra.mxu1 %v5211_v1  ;;  %v5215_v3 = vpack.c.bf16 %v7565_v18, %v7564_v17  ;;  %v518_v1 = vld [vmem:[%s6390_s20 + $0x170] sm:$0xff] }
  0xb8   : >> { %4824 = vmatprep.mubr.msk.f32.mxu0 %vm606_vm0, %v510_v53  ;;  %v515_v53 = vld [vmem:[%s6390_s20 + $0x158] sm:$0xff] }
  0xb9   : >> { %5216 = vmatprep.subr.bf16.mxu1 %v5215_v3 }
  0xbb   : >> { %4825 = vmatmul.mubr.msk.f32.gmra.mrb[38].mxu0 %vm606_vm0, %v511_v0  ;;  %5218 = vmatpush3.bf16.msra.mxu1 %v5215_v3  ;;  %v5219_v0 = vpack.c.bf16 %v7567_v20, %v7566_v19  ;;  %v521_v3 = vld [vmem:[%s6390_s20 + $0x188] sm:$0xff] }
  0xbc   : >> { %4827 = vmatprep.mubr.msk.f32.mxu0 %vm606_vm0, %v512_v56  ;;  %v517_v56 = vld [vmem:[%s6390_s20 + $0x168] sm:$0xff] }
  0xbd   : >> { %5220 = vmatprep.subr.bf16.mxu1 %v5219_v0 }
  0xbf   : >> { %4828 = vmatmul.mubr.msk.f32.gmra.mrb[40].mxu0 %vm606_vm0, %v513_v57  ;;  %5222 = vmatpush3.bf16.msra.mxu1 %v5219_v0  ;;  %v519_v57 = vld [vmem:[%s6390_s20 + $0x178] sm:$0xff]  ;;  %v524_v0 = vld [vmem:[%s6390_s20 + $0x1a0] sm:$0xff] }
  0xc0   : >> { %4830 = vmatprep.mubr.msk.f32.mxu0 %vm606_vm0, %v514_v2  ;;  %v520_v2 = vld [vmem:[%s6390_s20 + $0x180] sm:$0xff] }
  0xc3   : >> { %4831 = vmatmul.mubr.msk.f32.gmra.mrb[42].mxu0 %vm606_vm0, %v515_v53  ;;  %v522_v53 = vld [vmem:[%s6390_s20 + $0x190] sm:$0xff] }
  0xc4   : >> { %4833 = vmatprep.mubr.msk.f32.mxu0 %vm606_vm0, %v516_v63  ;;  %v523_v63 = vld [vmem:[%s6390_s20 + $0x198] sm:$0xff] }
  0xc7   : >> { %4834 = vmatmul.mubr.msk.f32.gmra.mrb[44].mxu0 %vm606_vm0, %v517_v56  ;;  %v525_v56 = vld [vmem:[%s6390_s20 + $0x1a8] sm:$0xff] }
  0xc8   : >> { %4836 = vmatprep.mubr.msk.f32.mxu0 %vm606_vm0, %v518_v1  ;;  %v526_v1 = vld [vmem:[%s6390_s20 + $0x1b0] sm:$0xff] }
  0xcb   : >> { %4837 = vmatmul.mubr.msk.f32.gmra.mrb[46].mxu0 %vm606_vm0, %v519_v57  ;;  %v527_v57 = vld [vmem:[%s6390_s20 + $0x1b8] sm:$0xff] }
  0xcc   : >> { %4839 = vmatprep.mubr.msk.f32.mxu0 %vm606_vm0, %v520_v2  ;;  %v528_v2 = vld [vmem:[%s6390_s20 + $0x1c0] sm:$0xff] }
  0xcf   : >> { %4840 = vmatmul.mubr.msk.f32.gmra.mrb[48].mxu0 %vm606_vm0, %v521_v3  ;;  %v529_v3 = vld [vmem:[%s6390_s20 + $0x1c8] sm:$0xff] }
  0xd0   : >> { %4842 = vmatprep.mubr.msk.f32.mxu0 %vm606_vm0, %v522_v53  ;;  %v530_v53 = vld [vmem:[%s6390_s20 + $0x1d0] sm:$0xff] }
  0xd3   : >> { %4843 = vmatmul.mubr.msk.f32.gmra.mrb[50].mxu0 %vm606_vm0, %v523_v63  ;;  %v531_v63 = vld [vmem:[%s6390_s20 + $0x1d8] sm:$0xff] }
  0xd4   : >> { %4845 = vmatprep.mubr.msk.f32.mxu0 %vm606_vm0, %v524_v0  ;;  %v532_v0 = vld [vmem:[%s6390_s20 + $0x1e0] sm:$0xff] }
  0xd7   : >> { %4846 = vmatmul.mubr.msk.f32.gmra.mrb[52].mxu0 %vm606_vm0, %v525_v56  ;;  %v533_v56 = vld [vmem:[%s6390_s20 + $0x1e8] sm:$0xff] }
  0xd8   : >> { %4848 = vmatprep.mubr.msk.f32.mxu0 %vm606_vm0, %v526_v1  ;;  %v534_v1 = vld [vmem:[%s6390_s20 + $0x1f0] sm:$0xff] }
  0xdb   : >> { %4849 = vmatmul.mubr.msk.f32.gmra.mrb[54].mxu0 %vm606_vm0, %v527_v57  ;;  %v535_v57 = vld [vmem:[%s6390_s20 + $0x1f8] sm:$0xff] }
  0xdc   : >> { %4851 = vmatprep.mubr.msk.f32.mxu0 %vm606_vm0, %v528_v2  ;;  %v536_v2 = vld [vmem:[%s6390_s20 + $0x200] sm:$0xff] }
  0xdf   : >> { %4852 = vmatmul.mubr.msk.f32.gmra.mrb[56].mxu0 %vm606_vm0, %v529_v3  ;;  %v537_v3 = vld [vmem:[%s6390_s20 + $0x208] sm:$0xff] }
  0xe0   : >> { %4854 = vmatprep.mubr.msk.f32.mxu0 %vm606_vm0, %v530_v53  ;;  %v538_v53 = vld [vmem:[%s6390_s20 + $0x210] sm:$0xff] }
  0xe3   : >> { %4855 = vmatmul.mubr.msk.f32.gmra.mrb[58].mxu0 %vm606_vm0, %v531_v63  ;;  %v539_v63 = vld [vmem:[%s6390_s20 + $0x218] sm:$0xff] }
  0xe4   : >> { %4857 = vmatprep.mubr.msk.f32.mxu0 %vm606_vm0, %v532_v0  ;;  %v540_v0 = vld [vmem:[%s6390_s20 + $0x220] sm:$0xff] }
  0xe7   : >> { %4858 = vmatmul.mubr.msk.f32.gmra.mrb[60].mxu0 %vm606_vm0, %v533_v56  ;;  %v541_v56 = vld [vmem:[%s6390_s20 + $0x228] sm:$0xff] }
  0xe8   : >> { %4860 = vmatprep.mubr.msk.f32.mxu0 %vm606_vm0, %v534_v1  ;;  %v542_v1 = vld [vmem:[%s6390_s20 + $0x230] sm:$0xff] }
  0xeb   : >> { %4861 = vmatmul.mubr.msk.f32.gmra.mrb[62].mxu0 %vm606_vm0, %v535_v57  ;;  %v543_v57 = vld [vmem:[%s6390_s20 + $0x238] sm:$0xff] }
  0xec   : >> { %4863 = vmatprep.mubr.msk.f32.mxu0 %vm606_vm0, %v536_v2  ;;  %v544_v2 = vld [vmem:[%s6390_s20 + $0x240] sm:$0xff] }
  0xef   : >> { %4864 = vmatmul.mubr.msk.f32.gmra.mrb[64].mxu0 %vm606_vm0, %v537_v3  ;;  %v545_v3 = vld [vmem:[%s6390_s20 + $0x248] sm:$0xff] }
  0xf0   : >> { %4866 = vmatprep.mubr.msk.f32.mxu0 %vm606_vm0, %v538_v53  ;;  %v546_v53 = vld [vmem:[%s6390_s20 + $0x250] sm:$0xff] }
  0xf3   : >> { %4867 = vmatmul.mubr.msk.f32.gmra.mrb[66].mxu0 %vm606_vm0, %v539_v63  ;;  %v547_v63 = vld [vmem:[%s6390_s20 + $0x258] sm:$0xff] }
  0xf4   : >> { %4869 = vmatprep.mubr.msk.f32.mxu0 %vm606_vm0, %v540_v0  ;;  %v548_v0 = vld [vmem:[%s6390_s20 + $0x260] sm:$0xff] }
  0xf7   : >> { %4870 = vmatmul.mubr.msk.f32.gmra.mrb[68].mxu0 %vm606_vm0, %v541_v56  ;;  %v549_v56 = vld [vmem:[%s6390_s20 + $0x268] sm:$0xff] }
  0xf8   : >> { %4872 = vmatprep.mubr.msk.f32.mxu0 %vm606_vm0, %v542_v1  ;;  %v550_v1 = vld [vmem:[%s6390_s20 + $0x270] sm:$0xff] }
  0xfb   : >> { %4873 = vmatmul.mubr.msk.f32.gmra.mrb[70].mxu0 %vm606_vm0, %v543_v57  ;;  %v551_v57 = vld [vmem:[%s6390_s20 + $0x278] sm:$0xff] }
  0xfc   : >> { %4875 = vmatprep.mubr.msk.f32.mxu0 %vm606_vm0, %v544_v2  ;;  %v552_v2 = vld [vmem:[%s6390_s20 + $0x280] sm:$0xff] }
  0xff   : >> { %4876 = vmatmul.mubr.msk.f32.gmra.mrb[72].mxu0 %vm606_vm0, %v545_v3  ;;  %v553_v3 = vld [vmem:[%s6390_s20 + $0x288] sm:$0xff] }
 0x100   : >> { %4878 = vmatprep.mubr.msk.f32.mxu0 %vm606_vm0, %v546_v53  ;;  %v554_v53 = vld [vmem:[%s6390_s20 + $0x290] sm:$0xff] }
 0x103   : >> { %4879 = vmatmul.mubr.msk.f32.gmra.mrb[74].mxu0 %vm606_vm0, %v547_v63  ;;  %v555_v63 = vld [vmem:[%s6390_s20 + $0x298] sm:$0xff] }
 0x104   : >> { %4881 = vmatprep.mubr.msk.f32.mxu0 %vm606_vm0, %v548_v0  ;;  %v556_v0 = vld [vmem:[%s6390_s20 + $0x2a0] sm:$0xff] }
 0x107   : >> { %4882 = vmatmul.mubr.msk.f32.gmra.mrb[76].mxu0 %vm606_vm0, %v549_v56  ;;  %v557_v56 = vld [vmem:[%s6390_s20 + $0x2a8] sm:$0xff] }
 0x108   : >> { %4884 = vmatprep.mubr.msk.f32.mxu0 %vm606_vm0, %v550_v1  ;;  %v558_v1 = vld [vmem:[%s6390_s20 + $0x2b0] sm:$0xff] }
 0x10b   : >> { %4885 = vmatmul.mubr.msk.f32.gmra.mrb[78].mxu0 %vm606_vm0, %v551_v57  ;;  %v559_v57 = vld [vmem:[%s6390_s20 + $0x2b8] sm:$0xff] }
 0x10c   : >> { %4887 = vmatprep.mubr.msk.f32.mxu0 %vm606_vm0, %v552_v2  ;;  %v560_v2 = vld [vmem:[%s6390_s20 + $0x2c0] sm:$0xff] }
 0x10f   : >> { %4888 = vmatmul.mubr.msk.f32.gmra.mrb[80].mxu0 %vm606_vm0, %v553_v3  ;;  %v561_v3 = vld [vmem:[%s6390_s20 + $0x2c8] sm:$0xff] }
 0x110   : >> { %4890 = vmatprep.mubr.msk.f32.mxu0 %vm606_vm0, %v554_v53  ;;  %v562_v53 = vld [vmem:[%s6390_s20 + $0x2d0] sm:$0xff] }
 0x113   : >> { %4891 = vmatmul.mubr.msk.f32.gmra.mrb[82].mxu0 %vm606_vm0, %v555_v63  ;;  %v563_v63 = vld [vmem:[%s6390_s20 + $0x2d8] sm:$0xff] }
 0x114   : >> { %4893 = vmatprep.mubr.msk.f32.mxu0 %vm606_vm0, %v556_v0  ;;  %v564_v0 = vld [vmem:[%s6390_s20 + $0x2e0] sm:$0xff] }
 0x117   : >> { %4894 = vmatmul.mubr.msk.f32.gmra.mrb[84].mxu0 %vm606_vm0, %v557_v56  ;;  %v565_v56 = vld [vmem:[%s6390_s20 + $0x2e8] sm:$0xff] }
 0x118   : >> { %4896 = vmatprep.mubr.msk.f32.mxu0 %vm606_vm0, %v558_v1  ;;  %v566_v1 = vld [vmem:[%s6390_s20 + $0x2f0] sm:$0xff] }
 0x11b   : >> { %4897 = vmatmul.mubr.msk.f32.gmra.mrb[86].mxu0 %vm606_vm0, %v559_v57  ;;  %v567_v57 = vld [vmem:[%s6390_s20 + $0x2f8] sm:$0xff] }
 0x11c   : >> { %4899 = vmatprep.mubr.msk.f32.mxu0 %vm606_vm0, %v560_v2  ;;  %v568_v2 = vld [vmem:[%s6390_s20 + $0x300] sm:$0xff] }
 0x11f   : >> { %4900 = vmatmul.mubr.msk.f32.gmra.mrb[88].mxu0 %vm606_vm0, %v561_v3  ;;  %v569_v3 = vld [vmem:[%s6390_s20 + $0x308] sm:$0xff] }
 0x120   : >> { %4902 = vmatprep.mubr.msk.f32.mxu0 %vm606_vm0, %v562_v53  ;;  %v570_v53 = vld [vmem:[%s6390_s20 + $0x310] sm:$0xff] }
 0x123   : >> { %4903 = vmatmul.mubr.msk.f32.gmra.mrb[90].mxu0 %vm606_vm0, %v563_v63  ;;  %v571_v63 = vld [vmem:[%s6390_s20 + $0x318] sm:$0xff] }
 0x124   : >> { %4905 = vmatprep.mubr.msk.f32.mxu0 %vm606_vm0, %v564_v0  ;;  %v572_v0 = vld [vmem:[%s6390_s20 + $0x320] sm:$0xff] }
 0x127   : >> { %4906 = vmatmul.mubr.msk.f32.gmra.mrb[92].mxu0 %vm606_vm0, %v565_v56  ;;  %v573_v56 = vld [vmem:[%s6390_s20 + $0x328] sm:$0xff] }
 0x128   : >> { %4908 = vmatprep.mubr.msk.f32.mxu0 %vm606_vm0, %v566_v1  ;;  %v574_v1 = vld [vmem:[%s6390_s20 + $0x330] sm:$0xff] }
 0x12b   : >> { %4909 = vmatmul.mubr.msk.f32.gmra.mrb[94].mxu0 %vm606_vm0, %v567_v57  ;;  %v575_v57 = vld [vmem:[%s6390_s20 + $0x338] sm:$0xff] }
 0x12c   : >> { %4911 = vmatprep.mubr.msk.f32.mxu0 %vm606_vm0, %v568_v2  ;;  %v576_v2 = vld [vmem:[%s6390_s20 + $0x340] sm:$0xff] }
 0x12f   : >> { %4912 = vmatmul.mubr.msk.f32.gmra.mrb[96].mxu0 %vm606_vm0, %v569_v3  ;;  %v577_v3 = vld [vmem:[%s6390_s20 + $0x348] sm:$0xff] }
 0x130   : >> { %4914 = vmatprep.mubr.msk.f32.mxu0 %vm606_vm0, %v570_v53  ;;  %v578_v53 = vld [vmem:[%s6390_s20 + $0x350] sm:$0xff] }
 0x133   : >> { %4915 = vmatmul.mubr.msk.f32.gmra.mrb[98].mxu0 %vm606_vm0, %v571_v63  ;;  %v579_v63 = vld [vmem:[%s6390_s20 + $0x358] sm:$0xff] }
 0x134   : >> { %4917 = vmatprep.mubr.msk.f32.mxu0 %vm606_vm0, %v572_v0  ;;  %v580_v0 = vld [vmem:[%s6390_s20 + $0x360] sm:$0xff] }
 0x137   : >> { %4918 = vmatmul.mubr.msk.f32.gmra.mrb[100].mxu0 %vm606_vm0, %v573_v56 }
 0x138   : >> { %4920 = vmatprep.mubr.msk.f32.mxu0 %vm606_vm0, %v574_v1 }
 0x13b   : >> { %4921 = vmatmul.mubr.msk.f32.gmra.mrb[102].mxu0 %vm606_vm0, %v575_v57  ;;  %v581_v57 = vld [vmem:[%s6390_s20 + $0x368] sm:$0xff] }
 0x13c   : >> { %4923 = vmatprep.mubr.msk.f32.mxu0 %vm606_vm0, %v576_v2 }
 0x13f   : >> { %4924 = vmatmul.mubr.msk.f32.gmra.mrb[104].mxu0 %vm606_vm0, %v577_v3 }
 0x140   : >> { %4926 = vmatprep.mubr.msk.f32.mxu0 %vm606_vm0, %v578_v53 }
 0x142   : >> { %v4769_v5 = vpop.f32.mrb[0].mxu0 }
 0x143   : >> { %v1063_v56 = vadd.f32 %v4769_v5, %v7547_v4  ;;  %v1057_v1 = vpop.f32.mrb[1].mxu0  ;;  %4927 = vmatmul.mubr.msk.f32.gmra.mrb[106].mxu0 %vm606_vm0, %v579_v63  ;;  %v583_v63 = vld [vmem:[%s6390_s20 + $0x378] sm:$0xff] }
 0x144   : >> { %4929 = vmatprep.mubr.msk.f32.mxu0 %vm606_vm0, %v580_v0  ;;  %v1058_v2 = vadd.f32 %v7547_v4, %v1057_v1  ;;  %v584_v0 = vld [vmem:[%s6390_s20 + $0x380] sm:$0xff] }
 0x145   : >> { %v1697_v8 = vmax.f32 %v1063_v56, 0.0 }
 0x146   : >> { %v4772_v7 = vpop.f32.mrb[2].mxu0  ;;  %v1696_v3 = vmax.f32 %v1058_v2, 0.0 }
 0x147   : >> { %v1073_v53 = vadd.f32 %v4772_v7, %v7547_v4  ;;  %v1067_v9 = vpop.f32.mrb[3].mxu0  ;;  %4930 = vmatmul.mubr.msk.f32.gmra.mrb[108].mxu0 %vm606_vm0, %v581_v57 }
 0x148   : >> { %v1068_v5 = vadd.f32 %v7547_v4, %v1067_v9  ;;  %4991 = vmatprep.mubr.f32.mxu1 %v1696_v3  ;;  %4932 = vmatprep.mubr.msk.f32.mxu0 %vm606_vm0, %v582_v6  ;;  %v585_v9 = vld [vmem:[%s6390_s20 + $0x388] sm:$0xff]  ;;  %v586_v6 = vld [vmem:[%s6390_s20 + $0x390] sm:$0xff] }
 0x149   : >> { %4992 = vmatmul.mubr.f32.vlgmr.msra.gmra.mrb[0].mxu1 %v1697_v8  ;;  %v1699_v11 = vmax.f32 %v1073_v53, 0.0 }
 0x14a   : >> { %v1698_v1 = vmax.f32 %v1068_v5, 0.0  ;;  %v4775_v10 = vpop.f32.mrb[4].mxu0 }
 0x14b   : >> { %v1083_v56 = vadd.f32 %v4775_v10, %v7547_v4  ;;  %v1077_v2 = vpop.f32.mrb[5].mxu0  ;;  %4933 = vmatmul.mubr.msk.f32.gmra.mrb[110].mxu0 %vm606_vm0, %v583_v63  ;;  %v587_v63 = vld [vmem:[%s6390_s20 + $0x398] sm:$0xff] }
 0x14c   : >> { %v1078_v7 = vadd.f32 %v7547_v4, %v1077_v2  ;;  %4994 = vmatprep.mubr.f32.mxu1 %v1698_v1  ;;  %4935 = vmatprep.mubr.msk.f32.mxu0 %vm606_vm0, %v584_v0  ;;  %v588_v0 = vld [vmem:[%s6390_s20 + $0x3a0] sm:$0xff] }
 0x14d   : >> { %4995 = vmatmul.mubr.f32.gmra.mrb[2].mxu1 %v1699_v11  ;;  %v1701_v3 = vmax.f32 %v1083_v56, 0.0 }
 0x14e   : >> { %v1700_v8 = vmax.f32 %v1078_v7, 0.0  ;;  %v4778_v57 = vpop.f32.mrb[6].mxu0 }
 0x14f   : >> { %v1093_v53 = vadd.f32 %v4778_v57, %v7547_v4  ;;  %v1087_v5 = vpop.f32.mrb[7].mxu0  ;;  %4936 = vmatmul.mubr.msk.f32.gmra.mrb[112].mxu0 %vm606_vm0, %v585_v9 }
 0x150   : >> { %v1088_v10 = vadd.f32 %v7547_v4, %v1087_v5  ;;  %4997 = vmatprep.mubr.f32.mxu1 %v1700_v8  ;;  %4938 = vmatprep.mubr.msk.f32.mxu0 %vm606_vm0, %v586_v6  ;;  %v589_v8 = vld [vmem:[%s6390_s20 + $0x3a8] sm:$0xff]  ;;  %v590_v6 = vld [vmem:[%s6390_s20 + $0x3b0] sm:$0xff] }
 0x151   : >> { %4998 = vmatmul.mubr.f32.gmra.mrb[4].mxu1 %v1701_v3  ;;  %v1703_v2 = vmax.f32 %v1093_v53, 0.0 }
 0x152   : >> { %v1702_v11 = vmax.f32 %v1088_v10, 0.0  ;;  %v4781_v1 = vpop.f32.mrb[8].mxu0 }
 0x153   : >> { %v1103_v56 = vadd.f32 %v4781_v1, %v7547_v4  ;;  %v1097_v7 = vpop.f32.mrb[9].mxu0  ;;  %4939 = vmatmul.mubr.msk.f32.gmra.mrb[114].mxu0 %vm606_vm0, %v587_v63 }
 0x154   : >> { %v1098_v9 = vadd.f32 %v7547_v4, %v1097_v7  ;;  %5000 = vmatprep.mubr.f32.mxu1 %v1702_v11  ;;  %4941 = vmatprep.mubr.msk.f32.mxu0 %vm606_vm0, %v588_v0  ;;  %v591_v11 = vld [vmem:[%s6390_s20 + $0x3b8] sm:$0xff]  ;;  %v592_v0 = vld [vmem:[%s6390_s20 + $0x3c0] sm:$0xff] }
 0x155   : >> { %5001 = vmatmul.mubr.f32.gmra.mrb[6].mxu1 %v1703_v2  ;;  %v1705_v5 = vmax.f32 %v1103_v56, 0.0 }
 0x156   : >> { %v1704_v57 = vmax.f32 %v1098_v9, 0.0  ;;  %v4784_v3 = vpop.f32.mrb[10].mxu0 }
 0x157   : >> { %v1113_v53 = vadd.f32 %v4784_v3, %v7547_v4  ;;  %v1107_v10 = vpop.f32.mrb[11].mxu0  ;;  %4942 = vmatmul.mubr.msk.f32.gmra.mrb[116].mxu0 %vm606_vm0, %v589_v8 }
 0x158   : >> { %v1108_v63 = vadd.f32 %v7547_v4, %v1107_v10  ;;  %5003 = vmatprep.mubr.f32.mxu1 %v1704_v57  ;;  %4944 = vmatprep.mubr.msk.f32.mxu0 %vm606_vm0, %v590_v6  ;;  %v593_v57 = vld [vmem:[%s6390_s20 + $0x3c8] sm:$0xff]  ;;  %v594_v6 = vld [vmem:[%s6390_s20 + $0x3d0] sm:$0xff] }
 0x159   : >> { %5004 = vmatmul.mubr.f32.gmra.mrb[8].mxu1 %v1705_v5  ;;  %v1707_v7 = vmax.f32 %v1113_v53, 0.0 }
 0x15a   : >> { %v1706_v1 = vmax.f32 %v1108_v63, 0.0  ;;  %v4787_v2 = vpop.f32.mrb[12].mxu0 }
 0x15b   : >> { %v1123_v56 = vadd.f32 %v4787_v2, %v7547_v4  ;;  %v1117_v9 = vpop.f32.mrb[13].mxu0  ;;  %4945 = vmatmul.mubr.msk.f32.gmra.mrb[118].mxu0 %vm606_vm0, %v591_v11 }
 0x15c   : >> { %v1118_v8 = vadd.f32 %v7547_v4, %v1117_v9  ;;  %5006 = vmatprep.mubr.f32.mxu1 %v1706_v1  ;;  %4947 = vmatprep.mubr.msk.f32.mxu0 %vm606_vm0, %v592_v0  ;;  %v595_v1 = vld [vmem:[%s6390_s20 + $0x3d8] sm:$0xff]  ;;  %v596_v0 = vld [vmem:[%s6390_s20 + $0x3e0] sm:$0xff] }
 0x15d   : >> { %5007 = vmatmul.mubr.f32.gmra.mrb[10].mxu1 %v1707_v7  ;;  %v1709_v10 = vmax.f32 %v1123_v56, 0.0 }
 0x15e   : >> { %v1708_v3 = vmax.f32 %v1118_v8, 0.0  ;;  %v4790_v5 = vpop.f32.mrb[14].mxu0 }
 0x15f   : >> { %v1133_v53 = vadd.f32 %v4790_v5, %v7547_v4  ;;  %v1127_v63 = vpop.f32.mrb[15].mxu0  ;;  %4948 = vmatmul.mubr.msk.f32.gmra.mrb[120].mxu0 %vm606_vm0, %v593_v57 }
 0x160   : >> { %v1128_v11 = vadd.f32 %v7547_v4, %v1127_v63  ;;  %5009 = vmatprep.mubr.f32.mxu1 %v1708_v3  ;;  %4950 = vmatprep.mubr.msk.f32.mxu0 %vm606_vm0, %v594_v6  ;;  %v597_v3 = vld [vmem:[%s6390_s20 + $0x3e8] sm:$0xff]  ;;  %v598_v6 = vld [vmem:[%s6390_s20 + $0x3f0] sm:$0xff] }
 0x161   : >> { %5010 = vmatmul.mubr.f32.gmra.mrb[12].mxu1 %v1709_v10  ;;  %v1711_v9 = vmax.f32 %v1133_v53, 0.0 }
 0x162   : >> { %v1710_v2 = vmax.f32 %v1128_v11, 0.0  ;;  %v4793_v7 = vpop.f32.mrb[16].mxu0 }
 0x163   : >> { %v1143_v56 = vadd.f32 %v4793_v7, %v7547_v4  ;;  %v1137_v8 = vpop.f32.mrb[17].mxu0  ;;  %4951 = vmatmul.mubr.msk.f32.gmra.mrb[122].mxu0 %vm606_vm0, %v595_v1  ;;  %v599_v1 = vld [vmem:[%s6390_s20 + $0x3f8] sm:$0xff] }
 0x164   : >> { %v1138_v57 = vadd.f32 %v7547_v4, %v1137_v8  ;;  %5012 = vmatprep.mubr.f32.mxu1 %v1710_v2  ;;  %4953 = vmatprep.mubr.msk.f32.mxu0 %vm606_vm0, %v596_v0 }
 0x165   : >> { %5013 = vmatmul.mubr.f32.gmra.mrb[14].mxu1 %v1711_v9  ;;  %v1713_v63 = vmax.f32 %v1143_v56, 0.0 }
 0x166   : >> { %v1712_v5 = vmax.f32 %v1138_v57, 0.0  ;;  %v4796_v10 = vpop.f32.mrb[18].mxu0 }
 0x167   : >> { %v1153_v11 = vadd.f32 %v4796_v10, %v7547_v4  ;;  %v1147_v53 = vpop.f32.mrb[19].mxu0  ;;  %4954 = vmatmul.mubr.msk.f32.gmra.mrb[124].mxu0 %vm606_vm0, %v597_v3 }
 0x168   : >> { %v1148_v7 = vadd.f32 %v7547_v4, %v1147_v53  ;;  %5015 = vmatprep.mubr.f32.mxu1 %v1712_v5  ;;  %4956 = vmatprep.mubr.msk.f32.mxu0 %vm606_vm0, %v598_v6 }
 0x169   : >> { %5016 = vmatmul.mubr.f32.gmra.mrb[16].mxu1 %v1713_v63  ;;  %v1715_v8 = vmax.f32 %v1153_v11, 0.0 }
 0x16a   : >> { %v1714_v2 = vmax.f32 %v1148_v7, 0.0  ;;  %v4799_v0 = vpop.f32.mrb[20].mxu0 }
 0x16b   : >> { %v1163_v9 = vadd.f32 %v4799_v0, %v7547_v4  ;;  %v1157_v57 = vpop.f32.mrb[21].mxu0  ;;  %4957 = vmatmul.mubr.msk.f32.gmra.mrb[126].mxu0 %vm606_vm0, %v599_v1 }
 0x16c   : >> { %v1158_v56 = vadd.f32 %v7547_v4, %v1157_v57  ;;  %5018 = vmatprep.mubr.f32.mxu1 %v1714_v2  ;;  %3878 = vmatprep.mubr.f32.mxu0 %v7568_v55 }
 0x16d   : >> { %5019 = vmatmul.mubr.f32.gmra.mrb[18].mxu1 %v1715_v8  ;;  %v1717_v10 = vmax.f32 %v1163_v9, 0.0 }
 0x16e   : >> { %v1716_v3 = vmax.f32 %v1158_v56, 0.0  ;;  %v4802_v5 = vpop.f32.mrb[22].mxu0 }
 0x16f   : >> { %v1173_v6 = vadd.f32 %v4802_v5, %v7547_v4  ;;  %v1167_v63 = vpop.f32.mrb[23].mxu0 }
 0x170   : >> { %v1168_v53 = vadd.f32 %v7547_v4, %v1167_v63  ;;  %5021 = vmatprep.mubr.f32.mxu1 %v1716_v3 }
 0x171   : >> { %5022 = vmatmul.mubr.f32.gmra.mrb[20].mxu1 %v1717_v10  ;;  %v1719_v0 = vmax.f32 %v1173_v6, 0.0 }
 0x172   : >> { %v1718_v11 = vmax.f32 %v1168_v53, 0.0  ;;  %v4805_v7 = vpop.f32.mrb[24].mxu0 }
 0x173   : >> { %v1183_v1 = vadd.f32 %v4805_v7, %v7547_v4  ;;  %v1177_v57 = vpop.f32.mrb[25].mxu0 }
 0x174   : >> { %v1178_v2 = vadd.f32 %v7547_v4, %v1177_v57  ;;  %5024 = vmatprep.mubr.f32.mxu1 %v1718_v11 }
 0x175   : >> { %5025 = vmatmul.mubr.f32.gmra.mrb[22].mxu1 %v1719_v0  ;;  %v1721_v9 = vmax.f32 %v1183_v1, 0.0 }
 0x176   : >> { %v1720_v8 = vmax.f32 %v1178_v2, 0.0  ;;  %v4808_v56 = vpop.f32.mrb[26].mxu0 }
 0x177   : >> { %v1193_v5 = vadd.f32 %v4808_v56, %v7547_v4  ;;  %v1187_v12 = vpop.f32.mrb[27].mxu0 }
 0x178   : >> { %v1188_v63 = vadd.f32 %v7547_v4, %v1187_v12  ;;  %5027 = vmatprep.mubr.f32.mxu1 %v1720_v8 }
 0x179   : >> { %5028 = vmatmul.mubr.f32.gmra.mrb[24].mxu1 %v1721_v9  ;;  %v1723_v6 = vmax.f32 %v1193_v5, 0.0 }
 0x17a   : >> { %v1722_v3 = vmax.f32 %v1188_v63, 0.0  ;;  %v4811_v10 = vpop.f32.mrb[28].mxu0 }
 0x17b   : >> { %v1203_v53 = vadd.f32 %v4811_v10, %v7547_v4  ;;  %v1197_v7 = vpop.f32.mrb[29].mxu0 }
 0x17c   : >> { %v1198_v57 = vadd.f32 %v7547_v4, %v1197_v7  ;;  %5030 = vmatprep.mubr.f32.mxu1 %v1722_v3 }
 0x17d   : >> { %5031 = vmatmul.mubr.f32.gmra.mrb[26].mxu1 %v1723_v6  ;;  %v1725_v1 = vmax.f32 %v1203_v53, 0.0 }
 0x17e   : >> { %v1724_v11 = vmax.f32 %v1198_v57, 0.0  ;;  %v4814_v0 = vpop.f32.mrb[30].mxu0 }
 0x17f   : >> { %v1213_v2 = vadd.f32 %v4814_v0, %v7547_v4  ;;  %v1207_v56 = vpop.f32.mrb[31].mxu0 }
 0x180   : >> { %v1208_v12 = vadd.f32 %v7547_v4, %v1207_v56  ;;  %5033 = vmatprep.mubr.f32.mxu1 %v1724_v11 }
 0x181   : >> { %5034 = vmatmul.mubr.f32.gmra.mrb[28].mxu1 %v1725_v1  ;;  %v1727_v5 = vmax.f32 %v1213_v2, 0.0 }
 0x182   : >> { %v1726_v8 = vmax.f32 %v1208_v12, 0.0  ;;  %v4817_v9 = vpop.f32.mrb[32].mxu0 }
 0x183   : >> { %v1223_v63 = vadd.f32 %v4817_v9, %v7547_v4  ;;  %v1217_v10 = vpop.f32.mrb[33].mxu0 }
 0x184   : >> { %v1218_v7 = vadd.f32 %v7547_v4, %v1217_v10  ;;  %5036 = vmatprep.mubr.f32.mxu1 %v1726_v8 }
 0x185   : >> { %5037 = vmatmul.mubr.f32.gmra.mrb[30].mxu1 %v1727_v5  ;;  %v1729_v53 = vmax.f32 %v1223_v63, 0.0 }
 0x186   : >> { %v1728_v3 = vmax.f32 %v1218_v7, 0.0  ;;  %v4820_v6 = vpop.f32.mrb[34].mxu0 }
 0x187   : >> { %v1233_v57 = vadd.f32 %v4820_v6, %v7547_v4  ;;  %v1227_v0 = vpop.f32.mrb[35].mxu0 }
 0x188   : >> { %v1228_v56 = vadd.f32 %v7547_v4, %v1227_v0  ;;  %5039 = vmatprep.mubr.f32.mxu1 %v1728_v3 }
 0x189   : >> { %5040 = vmatmul.mubr.f32.gmra.mrb[32].mxu1 %v1729_v53  ;;  %v1731_v2 = vmax.f32 %v1233_v57, 0.0 }
 0x18a   : >> { %v1730_v11 = vmax.f32 %v1228_v56, 0.0  ;;  %v4823_v1 = vpop.f32.mrb[36].mxu0 }
 0x18b   : >> { %v1243_v12 = vadd.f32 %v4823_v1, %v7547_v4  ;;  %v1237_v9 = vpop.f32.mrb[37].mxu0 }
 0x18c   : >> { %v1238_v10 = vadd.f32 %v7547_v4, %v1237_v9  ;;  %5042 = vmatprep.mubr.f32.mxu1 %v1730_v11 }
 0x18d   : >> { %5043 = vmatmul.mubr.f32.gmra.mrb[34].mxu1 %v1731_v2  ;;  %v1733_v63 = vmax.f32 %v1243_v12, 0.0 }
 0x18e   : >> { %v1732_v8 = vmax.f32 %v1238_v10, 0.0  ;;  %v4826_v5 = vpop.f32.mrb[38].mxu0 }
 0x18f   : >> { %v1253_v7 = vadd.f32 %v4826_v5, %v7547_v4  ;;  %v1247_v6 = vpop.f32.mrb[39].mxu0 }
 0x190   : >> { %v1248_v0 = vadd.f32 %v7547_v4, %v1247_v6  ;;  %5045 = vmatprep.mubr.f32.mxu1 %v1732_v8 }
 0x191   : >> { %5046 = vmatmul.mubr.f32.gmra.mrb[36].mxu1 %v1733_v63  ;;  %v1735_v57 = vmax.f32 %v1253_v7, 0.0 }
 0x192   : >> { %v1734_v3 = vmax.f32 %v1248_v0, 0.0  ;;  %v4829_v53 = vpop.f32.mrb[40].mxu0 }
 0x193   : >> { %v1263_v56 = vadd.f32 %v4829_v53, %v7547_v4  ;;  %v1257_v1 = vpop.f32.mrb[41].mxu0 }
 0x194   : >> { %v1258_v9 = vadd.f32 %v7547_v4, %v1257_v1  ;;  %5048 = vmatprep.mubr.f32.mxu1 %v1734_v3  ;;  %v5478_v3 = vmov 0  }
 0x195   : >> { %5049 = vmatmul.mubr.f32.gmra.mrb[38].mxu1 %v1735_v57  ;;  %v1737_v12 = vmax.f32 %v1263_v56, 0.0  ;;  %5400 = vset.pattern.permute.xlu0 %v5478_v3 }
 0x196   : >> { %v1736_v11 = vmax.f32 %v1258_v9, 0.0  ;;  %v4832_v2 = vpop.f32.mrb[42].mxu0  ;;  %5401 = vset.pattern.permute.xlu1 %v5478_v3 }
 0x197   : >> { %v1273_v10 = vadd.f32 %v4832_v2, %v7547_v4  ;;  %v1267_v5 = vpop.f32.mrb[43].mxu0 }
 0x198   : >> { %v1268_v6 = vadd.f32 %v7547_v4, %v1267_v5  ;;  %5051 = vmatprep.mubr.f32.mxu1 %v1736_v11 }
 0x199   : >> { %5052 = vmatmul.mubr.f32.gmra.mrb[40].mxu1 %v1737_v12  ;;  %v1739_v7 = vmax.f32 %v1273_v10, 0.0 }
 0x19a   : >> { %v1738_v8 = vmax.f32 %v1268_v6, 0.0  ;;  %v4835_v63 = vpop.f32.mrb[44].mxu0 }
 0x19b   : >> { %v1283_v0 = vadd.f32 %v4835_v63, %v7547_v4  ;;  %v1277_v53 = vpop.f32.mrb[45].mxu0 }
 0x19c   : >> { %v1278_v1 = vadd.f32 %v7547_v4, %v1277_v53  ;;  %5054 = vmatprep.mubr.f32.mxu1 %v1738_v8 }
 0x19d   : >> { %5055 = vmatmul.mubr.f32.gmra.mrb[42].mxu1 %v1739_v7  ;;  %v1741_v9 = vmax.f32 %v1283_v0, 0.0 }
 0x19e   : >> { %v1740_v57 = vmax.f32 %v1278_v1, 0.0  ;;  %v4838_v56 = vpop.f32.mrb[46].mxu0 }
 0x19f   : >> { %v1293_v2 = vadd.f32 %v4838_v56, %v7547_v4  ;;  %v1287_v11 = vpop.f32.mrb[47].mxu0 }
 0x1a0   : >> { %v1288_v12 = vadd.f32 %v7547_v4, %v1287_v11  ;;  %5057 = vmatprep.mubr.f32.mxu1 %v1740_v57 }
 0x1a1   : >> { %5058 = vmatmul.mubr.f32.gmra.mrb[44].mxu1 %v1741_v9  ;;  %v1743_v6 = vmax.f32 %v1293_v2, 0.0 }
 0x1a2   : >> { %v1742_v10 = vmax.f32 %v1288_v12, 0.0  ;;  %v4841_v5 = vpop.f32.mrb[48].mxu0 }
 0x1a3   : >> { %v1303_v63 = vadd.f32 %v4841_v5, %v7547_v4  ;;  %v1297_v8 = vpop.f32.mrb[49].mxu0 }
 0x1a4   : >> { %v1298_v7 = vadd.f32 %v7547_v4, %v1297_v8  ;;  %5060 = vmatprep.mubr.f32.mxu1 %v1742_v10 }
 0x1a5   : >> { %5061 = vmatmul.mubr.f32.gmra.mrb[46].mxu1 %v1743_v6  ;;  %v1745_v0 = vmax.f32 %v1303_v63, 0.0 }
 0x1a6   : >> { %v1744_v53 = vmax.f32 %v1298_v7, 0.0  ;;  %v4844_v1 = vpop.f32.mrb[50].mxu0 }
 0x1a7   : >> { %v1313_v3 = vadd.f32 %v4844_v1, %v7547_v4  ;;  %v1307_v56 = vpop.f32.mrb[51].mxu0 }
 0x1a8   : >> { %v1308_v11 = vadd.f32 %v7547_v4, %v1307_v56  ;;  %5063 = vmatprep.mubr.f32.mxu1 %v1744_v53 }
 0x1a9   : >> { %5064 = vmatmul.mubr.f32.gmra.mrb[48].mxu1 %v1745_v0  ;;  %v1747_v2 = vmax.f32 %v1313_v3, 0.0 }
 0x1aa   : >> { %v1746_v57 = vmax.f32 %v1308_v11, 0.0  ;;  %v4847_v9 = vpop.f32.mrb[52].mxu0 }
 0x1ab   : >> { %v1323_v12 = vadd.f32 %v4847_v9, %v7547_v4  ;;  %v1317_v5 = vpop.f32.mrb[53].mxu0 }
 0x1ac   : >> { %v1318_v8 = vadd.f32 %v7547_v4, %v1317_v5  ;;  %5066 = vmatprep.mubr.f32.mxu1 %v1746_v57 }
 0x1ad   : >> { %5067 = vmatmul.mubr.f32.gmra.mrb[50].mxu1 %v1747_v2  ;;  %v1749_v63 = vmax.f32 %v1323_v12, 0.0 }
 0x1ae   : >> { %v1748_v10 = vmax.f32 %v1318_v8, 0.0  ;;  %v4850_v6 = vpop.f32.mrb[54].mxu0 }
 0x1af   : >> { %v1333_v7 = vadd.f32 %v4850_v6, %v7547_v4  ;;  %v1327_v1 = vpop.f32.mrb[55].mxu0 }
 0x1b0   : >> { %v1328_v56 = vadd.f32 %v7547_v4, %v1327_v1  ;;  %5069 = vmatprep.mubr.f32.mxu1 %v1748_v10 }
 0x1b1   : >> { %5070 = vmatmul.mubr.f32.gmra.mrb[52].mxu1 %v1749_v63  ;;  %v1751_v3 = vmax.f32 %v1333_v7, 0.0 }
 0x1b2   : >> { %v1750_v53 = vmax.f32 %v1328_v56, 0.0  ;;  %v4853_v0 = vpop.f32.mrb[56].mxu0 }
 0x1b3   : >> { %v1343_v11 = vadd.f32 %v4853_v0, %v7547_v4  ;;  %v1337_v9 = vpop.f32.mrb[57].mxu0 }
 0x1b4   : >> { %v1338_v5 = vadd.f32 %v7547_v4, %v1337_v9  ;;  %5072 = vmatprep.mubr.f32.mxu1 %v1750_v53 }
 0x1b5   : >> { %5073 = vmatmul.mubr.f32.gmra.mrb[54].mxu1 %v1751_v3  ;;  %v1753_v12 = vmax.f32 %v1343_v11, 0.0 }
 0x1b6   : >> { %v1752_v57 = vmax.f32 %v1338_v5, 0.0  ;;  %v4856_v2 = vpop.f32.mrb[58].mxu0 }
 0x1b7   : >> { %v1353_v8 = vadd.f32 %v4856_v2, %v7547_v4  ;;  %v1347_v6 = vpop.f32.mrb[59].mxu0 }
 0x1b8   : >> { %v1348_v1 = vadd.f32 %v7547_v4, %v1347_v6  ;;  %5075 = vmatprep.mubr.f32.mxu1 %v1752_v57 }
 0x1b9   : >> { %5076 = vmatmul.mubr.f32.gmra.mrb[56].mxu1 %v1753_v12  ;;  %v1755_v7 = vmax.f32 %v1353_v8, 0.0 }
 0x1ba   : >> { %v1754_v10 = vmax.f32 %v1348_v1, 0.0  ;;  %v4859_v63 = vpop.f32.mrb[60].mxu0 }
 0x1bb   : >> { %v1363_v56 = vadd.f32 %v4859_v63, %v7547_v4  ;;  %v1357_v0 = vpop.f32.mrb[61].mxu0 }
 0x1bc   : >> { %v1358_v9 = vadd.f32 %v7547_v4, %v1357_v0  ;;  %5078 = vmatprep.mubr.f32.mxu1 %v1754_v10 }
 0x1bd   : >> { %5079 = vmatmul.mubr.f32.gmra.mrb[58].mxu1 %v1755_v7  ;;  %v1757_v11 = vmax.f32 %v1363_v56, 0.0 }
 0x1be   : >> { %v1756_v53 = vmax.f32 %v1358_v9, 0.0  ;;  %v4862_v3 = vpop.f32.mrb[62].mxu0 }
 0x1bf   : >> { %v1373_v5 = vadd.f32 %v4862_v3, %v7547_v4  ;;  %v1367_v2 = vpop.f32.mrb[63].mxu0 }
 0x1c0   : >> { %v1368_v6 = vadd.f32 %v7547_v4, %v1367_v2  ;;  %5081 = vmatprep.mubr.f32.mxu1 %v1756_v53 }
 0x1c1   : >> { %5082 = vmatmul.mubr.f32.gmra.mrb[60].mxu1 %v1757_v11  ;;  %v1759_v8 = vmax.f32 %v1373_v5, 0.0 }
 0x1c2   : >> { %v1758_v57 = vmax.f32 %v1368_v6, 0.0  ;;  %v4865_v12 = vpop.f32.mrb[64].mxu0 }
 0x1c3   : >> { %v1383_v1 = vadd.f32 %v4865_v12, %v7547_v4  ;;  %v1377_v63 = vpop.f32.mrb[65].mxu0 }
 0x1c4   : >> { %v1378_v0 = vadd.f32 %v7547_v4, %v1377_v63  ;;  %5084 = vmatprep.mubr.f32.mxu1 %v1758_v57 }
 0x1c5   : >> { %5085 = vmatmul.mubr.f32.gmra.mrb[62].mxu1 %v1759_v8  ;;  %v1761_v56 = vmax.f32 %v1383_v1, 0.0 }
 0x1c6   : >> { %v1760_v10 = vmax.f32 %v1378_v0, 0.0  ;;  %v4868_v7 = vpop.f32.mrb[66].mxu0 }
 0x1c7   : >> { %v1393_v9 = vadd.f32 %v4868_v7, %v7547_v4  ;;  %v1387_v3 = vpop.f32.mrb[67].mxu0 }
 0x1c8   : >> { %v1388_v2 = vadd.f32 %v7547_v4, %v1387_v3  ;;  %5087 = vmatprep.mubr.f32.mxu1 %v1760_v10 }
 0x1c9   : >> { %5088 = vmatmul.mubr.f32.gmra.mrb[64].mxu1 %v1761_v56  ;;  %v1763_v5 = vmax.f32 %v1393_v9, 0.0 }
 0x1ca   : >> { %v1762_v53 = vmax.f32 %v1388_v2, 0.0  ;;  %v4871_v11 = vpop.f32.mrb[68].mxu0 }
 0x1cb   : >> { %v1403_v6 = vadd.f32 %v4871_v11, %v7547_v4  ;;  %v1397_v12 = vpop.f32.mrb[69].mxu0 }
 0x1cc   : >> { %v1398_v63 = vadd.f32 %v7547_v4, %v1397_v12  ;;  %5090 = vmatprep.mubr.f32.mxu1 %v1762_v53 }
 0x1cd   : >> { %5091 = vmatmul.mubr.f32.gmra.mrb[66].mxu1 %v1763_v5  ;;  %v1765_v1 = vmax.f32 %v1403_v6, 0.0 }
 0x1ce   : >> { %v1764_v57 = vmax.f32 %v1398_v63, 0.0  ;;  %v4874_v8 = vpop.f32.mrb[70].mxu0 }
 0x1cf   : >> { %v1413_v0 = vadd.f32 %v4874_v8, %v7547_v4  ;;  %v1407_v7 = vpop.f32.mrb[71].mxu0 }
 0x1d0   : >> { %v1408_v3 = vadd.f32 %v7547_v4, %v1407_v7  ;;  %5093 = vmatprep.mubr.f32.mxu1 %v1764_v57 }
 0x1d1   : >> { %5094 = vmatmul.mubr.f32.gmra.mrb[68].mxu1 %v1765_v1  ;;  %v1767_v9 = vmax.f32 %v1413_v0, 0.0 }
 0x1d2   : >> { %v1766_v10 = vmax.f32 %v1408_v3, 0.0  ;;  %v4877_v56 = vpop.f32.mrb[72].mxu0 }
 0x1d3   : >> { %v1423_v2 = vadd.f32 %v4877_v56, %v7547_v4  ;;  %v1417_v11 = vpop.f32.mrb[73].mxu0 }
 0x1d4   : >> { %v1418_v12 = vadd.f32 %v7547_v4, %v1417_v11  ;;  %5096 = vmatprep.mubr.f32.mxu1 %v1766_v10 }
 0x1d5   : >> { %5097 = vmatmul.mubr.f32.gmra.mrb[70].mxu1 %v1767_v9  ;;  %v1769_v6 = vmax.f32 %v1423_v2, 0.0 }
 0x1d6   : >> { %v1768_v53 = vmax.f32 %v1418_v12, 0.0  ;;  %v4880_v5 = vpop.f32.mrb[74].mxu0 }
 0x1d7   : >> { %v1433_v63 = vadd.f32 %v4880_v5, %v7547_v4  ;;  %v1427_v8 = vpop.f32.mrb[75].mxu0 }
 0x1d8   : >> { %v1428_v7 = vadd.f32 %v7547_v4, %v1427_v8  ;;  %5099 = vmatprep.mubr.f32.mxu1 %v1768_v53 }
 0x1d9   : >> { %5100 = vmatmul.mubr.f32.gmra.mrb[72].mxu1 %v1769_v6  ;;  %v1771_v0 = vmax.f32 %v1433_v63, 0.0 }
 0x1da   : >> { %v1770_v57 = vmax.f32 %v1428_v7, 0.0  ;;  %v4883_v1 = vpop.f32.mrb[76].mxu0 }
 0x1db   : >> { %v1443_v3 = vadd.f32 %v4883_v1, %v7547_v4  ;;  %v1437_v56 = vpop.f32.mrb[77].mxu0 }
 0x1dc   : >> { %v1438_v11 = vadd.f32 %v7547_v4, %v1437_v56  ;;  %5102 = vmatprep.mubr.f32.mxu1 %v1770_v57 }
 0x1dd   : >> { %5103 = vmatmul.mubr.f32.gmra.mrb[74].mxu1 %v1771_v0  ;;  %v1773_v2 = vmax.f32 %v1443_v3, 0.0 }
 0x1de   : >> { %v1772_v10 = vmax.f32 %v1438_v11, 0.0  ;;  %v4886_v9 = vpop.f32.mrb[78].mxu0 }
 0x1df   : >> { %v1453_v12 = vadd.f32 %v4886_v9, %v7547_v4  ;;  %v1447_v5 = vpop.f32.mrb[79].mxu0 }
 0x1e0   : >> { %v1448_v8 = vadd.f32 %v7547_v4, %v1447_v5  ;;  %5105 = vmatprep.mubr.f32.mxu1 %v1772_v10 }
 0x1e1   : >> { %5106 = vmatmul.mubr.f32.gmra.mrb[76].mxu1 %v1773_v2  ;;  %v1775_v63 = vmax.f32 %v1453_v12, 0.0 }
 0x1e2   : >> { %v1774_v53 = vmax.f32 %v1448_v8, 0.0  ;;  %v4889_v6 = vpop.f32.mrb[80].mxu0 }
 0x1e3   : >> { %v1463_v7 = vadd.f32 %v4889_v6, %v7547_v4  ;;  %v1457_v1 = vpop.f32.mrb[81].mxu0 }
 0x1e4   : >> { %v1458_v56 = vadd.f32 %v7547_v4, %v1457_v1  ;;  %5108 = vmatprep.mubr.f32.mxu1 %v1774_v53 }
 0x1e5   : >> { %5109 = vmatmul.mubr.f32.gmra.mrb[78].mxu1 %v1775_v63  ;;  %v1777_v3 = vmax.f32 %v1463_v7, 0.0 }
 0x1e6   : >> { %v1776_v57 = vmax.f32 %v1458_v56, 0.0  ;;  %v4892_v0 = vpop.f32.mrb[82].mxu0 }
 0x1e7   : >> { %v1473_v11 = vadd.f32 %v4892_v0, %v7547_v4  ;;  %v1467_v9 = vpop.f32.mrb[83].mxu0 }
 0x1e8   : >> { %v1468_v5 = vadd.f32 %v7547_v4, %v1467_v9  ;;  %5111 = vmatprep.mubr.f32.mxu1 %v1776_v57 }
 0x1e9   : >> { %5112 = vmatmul.mubr.f32.gmra.mrb[80].mxu1 %v1777_v3  ;;  %v1779_v12 = vmax.f32 %v1473_v11, 0.0 }
 0x1ea   : >> { %v1778_v10 = vmax.f32 %v1468_v5, 0.0  ;;  %v4895_v2 = vpop.f32.mrb[84].mxu0 }
 0x1eb   : >> { %v1483_v8 = vadd.f32 %v4895_v2, %v7547_v4  ;;  %v1477_v6 = vpop.f32.mrb[85].mxu0 }
 0x1ec   : >> { %v1478_v1 = vadd.f32 %v7547_v4, %v1477_v6  ;;  %5114 = vmatprep.mubr.f32.mxu1 %v1778_v10 }
 0x1ed   : >> { %5115 = vmatmul.mubr.f32.gmra.mrb[82].mxu1 %v1779_v12  ;;  %v1781_v7 = vmax.f32 %v1483_v8, 0.0 }
 0x1ee   : >> { %v1780_v53 = vmax.f32 %v1478_v1, 0.0  ;;  %v4898_v63 = vpop.f32.mrb[86].mxu0 }
 0x1ef   : >> { %v1493_v56 = vadd.f32 %v4898_v63, %v7547_v4  ;;  %v1487_v0 = vpop.f32.mrb[87].mxu0 }
 0x1f0   : >> { %v1488_v9 = vadd.f32 %v7547_v4, %v1487_v0  ;;  %5117 = vmatprep.mubr.f32.mxu1 %v1780_v53 }
 0x1f1   : >> { %5118 = vmatmul.mubr.f32.gmra.mrb[84].mxu1 %v1781_v7  ;;  %v1783_v11 = vmax.f32 %v1493_v56, 0.0 }
 0x1f2   : >> { %v1782_v57 = vmax.f32 %v1488_v9, 0.0  ;;  %v4901_v3 = vpop.f32.mrb[88].mxu0 }
 0x1f3   : >> { %v1503_v5 = vadd.f32 %v4901_v3, %v7547_v4  ;;  %v1497_v2 = vpop.f32.mrb[89].mxu0 }
 0x1f4   : >> { %v1498_v6 = vadd.f32 %v7547_v4, %v1497_v2  ;;  %5120 = vmatprep.mubr.f32.mxu1 %v1782_v57 }
 0x1f5   : >> { %5121 = vmatmul.mubr.f32.gmra.mrb[86].mxu1 %v1783_v11  ;;  %v1785_v8 = vmax.f32 %v1503_v5, 0.0 }
 0x1f6   : >> { %v1784_v10 = vmax.f32 %v1498_v6, 0.0  ;;  %v4904_v12 = vpop.f32.mrb[90].mxu0 }
 0x1f7   : >> { %v1513_v1 = vadd.f32 %v4904_v12, %v7547_v4  ;;  %v1507_v63 = vpop.f32.mrb[91].mxu0 }
 0x1f8   : >> { %v1508_v0 = vadd.f32 %v7547_v4, %v1507_v63  ;;  %5123 = vmatprep.mubr.f32.mxu1 %v1784_v10 }
 0x1f9   : >> { %5124 = vmatmul.mubr.f32.gmra.mrb[88].mxu1 %v1785_v8  ;;  %v1787_v56 = vmax.f32 %v1513_v1, 0.0 }
 0x1fa   : >> { %v1786_v53 = vmax.f32 %v1508_v0, 0.0  ;;  %v4907_v7 = vpop.f32.mrb[92].mxu0 }
 0x1fb   : >> { %v1523_v9 = vadd.f32 %v4907_v7, %v7547_v4  ;;  %v1517_v3 = vpop.f32.mrb[93].mxu0 }
 0x1fc   : >> { %v1518_v2 = vadd.f32 %v7547_v4, %v1517_v3  ;;  %5126 = vmatprep.mubr.f32.mxu1 %v1786_v53 }
 0x1fd   : >> { %5127 = vmatmul.mubr.f32.gmra.mrb[90].mxu1 %v1787_v56  ;;  %v1789_v5 = vmax.f32 %v1523_v9, 0.0 }
 0x1fe   : >> { %v1788_v57 = vmax.f32 %v1518_v2, 0.0  ;;  %v4910_v11 = vpop.f32.mrb[94].mxu0 }
 0x1ff   : >> { %v1533_v6 = vadd.f32 %v4910_v11, %v7547_v4  ;;  %v1527_v12 = vpop.f32.mrb[95].mxu0 }
 0x200   : >> { %v1528_v63 = vadd.f32 %v7547_v4, %v1527_v12  ;;  %5129 = vmatprep.mubr.f32.mxu1 %v1788_v57 }
 0x201   : >> { %5130 = vmatmul.mubr.f32.gmra.mrb[92].mxu1 %v1789_v5  ;;  %v1791_v1 = vmax.f32 %v1533_v6, 0.0  ;;  %v2530_v6 = vlaneseq }
 0x202   : >> { %v1790_v10 = vmax.f32 %v1528_v63, 0.0  ;;  %v4913_v8 = vpop.f32.mrb[96].mxu0 }
 0x203   : >> { %v1543_v0 = vadd.f32 %v4913_v8, %v7547_v4  ;;  %v1537_v7 = vpop.f32.mrb[97].mxu0 }
 0x204   : >> { %v1538_v3 = vadd.f32 %v7547_v4, %v1537_v7  ;;  %5132 = vmatprep.mubr.f32.mxu1 %v1790_v10 }
 0x205   : >> { %5133 = vmatmul.mubr.f32.gmra.mrb[94].mxu1 %v1791_v1  ;;  %v1793_v9 = vmax.f32 %v1543_v0, 0.0 }
 0x206   : >> { %v1792_v53 = vmax.f32 %v1538_v3, 0.0  ;;  %v4916_v56 = vpop.f32.mrb[98].mxu0  ;;  %v6767_v3 = vshrl.u32 %v2530_v6, 7 }
 0x207   : >> { %v1553_v2 = vadd.f32 %v4916_v56, %v7547_v4  ;;  %v1547_v11 = vpop.f32.mrb[99].mxu0 }
 0x208   : >> { %v1548_v12 = vadd.f32 %v7547_v4, %v1547_v11  ;;  %5135 = vmatprep.mubr.f32.mxu1 %v1792_v53 }
 0x209   : >> { %5136 = vmatmul.mubr.f32.gmra.mrb[96].mxu1 %v1793_v9  ;;  %v1795_v63 = vmax.f32 %v1553_v2, 0.0 }
 0x20a   : >> { %v1794_v57 = vmax.f32 %v1548_v12, 0.0  ;;  %v4919_v5 = vpop.f32.mrb[100].mxu0 }
 0x20b   : >> { %v1563_v8 = vadd.f32 %v4919_v5, %v7547_v4  ;;  %v1557_v10 = vpop.f32.mrb[101].mxu0 }
 0x20c   : >> { %v1558_v1 = vadd.f32 %v7547_v4, %v1557_v10  ;;  %5138 = vmatprep.mubr.f32.mxu1 %v1794_v57  ;;  %v2532_v57 = vadd.s32 8, %v6767_v3  ;;  %v6777_v10 = vstv %s2529_s10 }
 0x20d   : >> { %5139 = vmatmul.mubr.f32.gmra.mrb[98].mxu1 %v1795_v63  ;;  %v1797_v56 = vmax.f32 %v1563_v8, 0.0 }
 0x20e   : >> { %v1796_v0 = vmax.f32 %v1558_v1, 0.0  ;;  %v4922_v7 = vpop.f32.mrb[102].mxu0 }
 0x20f   : >> { %v1573_v53 = vadd.f32 %v4922_v7, %v7547_v4  ;;  %v1567_v9 = vpop.f32.mrb[103].mxu0  ;;  %v2661_v7 = vadd.s32 %v6777_v10, %v2532_v57 }
 0x210   : >> { %v1568_v11 = vadd.f32 %v7547_v4, %v1567_v9  ;;  %5141 = vmatprep.mubr.f32.mxu1 %v1796_v0 }
 0x211   : >> { %5142 = vmatmul.mubr.f32.gmra.mrb[100].mxu1 %v1797_v56  ;;  %v1799_v5 = vmax.f32 %v1573_v53, 0.0  ;;  %v2534_v56 = vadd.s32 24, %v6767_v3  ;;  %vm2789_vm1 = vcmp.lt.s32.totalorder %v2661_v7, 2496  ;;  %v2536_v7 = vadd.s32 40, %v6767_v3 }
 0x212   : >> { %v1798_v2 = vmax.f32 %v1568_v11, 0.0  ;;  %v4925_v12 = vpop.f32.mrb[104].mxu0 }
 0x213   : >> { %v1583_v63 = vadd.f32 %v4925_v12, %v7547_v4  ;;  %v1577_v6 = vpop.f32.mrb[105].mxu0  ;;  %v2660_v12 = vadd.s32 %v6777_v10, %v6767_v3  ;;  %v2663_v57 = vadd.s32 %v6777_v10, %v2534_v56 }
 0x214   : >> { %v1578_v8 = vadd.f32 %v7547_v4, %v1577_v6  ;;  %5144 = vmatprep.mubr.f32.mxu1 %v1798_v2 }
 0x215   : >> { %5145 = vmatmul.mubr.f32.gmra.mrb[102].mxu1 %v1799_v5  ;;  %v1801_v9 = vmax.f32 %v1583_v63, 0.0  ;;  %v2533_v5 = vadd.s32 16, %v6767_v3  ;;  %vm2788_vm2 = vcmp.lt.s32.totalorder %v2660_v12, 2496  ;;  %vm2791_vm3 = vcmp.lt.s32.totalorder %v2663_v57, 2496 }
 0x216   : >> { %v1800_v1 = vmax.f32 %v1578_v8, 0.0  ;;  %v4928_v0 = vpop.f32.mrb[106].mxu0  ;;  %v2538_v57 = vadd.s32 56, %v6767_v3  ;;  %v2539_v12 = vadd.s32 64, %v6767_v3 }
 0x217   : >> { %v1593_v11 = vadd.f32 %v4928_v0, %v7547_v4  ;;  %v1587_v13 = vpop.f32.mrb[107].mxu0  ;;  %v2535_v0 = vadd.s32 32, %v6767_v3  ;;  %v2662_v56 = vadd.s32 %v6777_v10, %v2533_v5  ;;  %v2665_v5 = vadd.s32 %v6777_v10, %v2536_v7 }
 0x218   : >> { %v1588_v53 = vadd.f32 %v7547_v4, %v1587_v13  ;;  %5147 = vmatprep.mubr.f32.mxu1 %v1800_v1 }
 0x219   : >> { %5148 = vmatmul.mubr.f32.gmra.mrb[104].mxu1 %v1801_v9  ;;  %v1803_v8 = vmax.f32 %v1593_v11, 0.0  ;;  %v2537_v11 = vadd.s32 48, %v6767_v3  ;;  %vm2790_vm4 = vcmp.lt.s32.totalorder %v2662_v56, 2496  ;;  %vm2793_vm6 = vcmp.lt.s32.totalorder %v2665_v5, 2496 }
 0x21a   : >> { %v1802_v6 = vmax.f32 %v1588_v53, 0.0  ;;  %v4931_v2 = vpop.f32.mrb[108].mxu0  ;;  %v2667_v56 = vadd.s32 %v6777_v10, %v2538_v57 }
 0x21b   : >> { %v1603_v63 = vadd.f32 %v4931_v2, %v7547_v4  ;;  %v1597_v14 = vpop.f32.mrb[109].mxu0 }
 0x21c   : >> { %v1598_v13 = vadd.f32 %v7547_v4, %v1597_v14  ;;  %v4993_v1 = vpop.f32.mrb[0].mxu1  ;;  %5150 = vmatprep.mubr.f32.mxu1 %v1802_v6  ;;  %v2664_v6 = vadd.s32 %v6777_v10, %v2535_v0  ;;  %vm2795_vm8 = vcmp.lt.s32.totalorder %v2667_v56, 2496  ;;  %v2545_v56 = vadd.s32 112, %v6767_v3 }
 0x21d   : >> { %v1890_v9 = vpop.f32.mrb[1].mxu1  ;;  %5151 = vmatmul.mubr.f32.gmra.mrb[106].mxu1 %v1803_v8  ;;  %v2917_v53 = vsel %vm2789_vm1, %v4993_v1, 0.0  ;;  %v1805_v2 = vmax.f32 %v1603_v63, 0.0 }
 0x21e   : >> { %v1804_v15 = vmax.f32 %v1598_v13, 0.0  ;;  %v4934_v16 = vpop.f32.mrb[110].mxu0  ;;  %3051 = vperm.xlu0 %5400, %v2917_v53   ;;  %v2916_v1 = vsel %vm2788_vm2, %v1890_v9, 0.0  ;;  %vm2792_vm5 = vcmp.lt.s32.totalorder %v2664_v6, 2496 }
 0x21f   : >> { %v1613_v17 = vadd.f32 %v4934_v16, %v7547_v4  ;;  %v1607_v14 = vpop.f32.mrb[111].mxu0  ;;  %v2666_v16 = vadd.s32 %v6777_v10, %v2537_v11 }
 0x220   : >> { %v1608_v18 = vadd.f32 %v7547_v4, %v1607_v14  ;;  %v4996_v8 = vpop.f32.mrb[2].mxu1  ;;  %5153 = vmatprep.mubr.f32.mxu1 %v1804_v15 }
 0x221   : >> { %v1900_v13 = vpop.f32.mrb[3].mxu1  ;;  %5154 = vmatmul.mubr.f32.gmra.mrb[108].mxu1 %v1805_v2  ;;  %v2919_v53 = vsel %vm2791_vm3, %v4996_v8, 0.0  ;;  %v1807_v0 = vmax.f32 %v1613_v17, 0.0  ;;  %vm2794_vm7 = vcmp.lt.s32.totalorder %v2666_v16, 2496  ;;  %v2540_v17 = vadd.s32 72, %v6767_v3 }
 0x222   : >> { %v1806_v19 = vmax.f32 %v1608_v18, 0.0  ;;  %v4937_v63 = vpop.f32.mrb[112].mxu0  ;;  %3046 = vperm.xlu0 %5400, %v2916_v1   ;;  %3061 = vperm.xlu1 %5401, %v2919_v53   ;;  %v2918_v7 = vsel %vm2790_vm4, %v1900_v13, 0.0  ;;  %v2541_v13 = vadd.s32 80, %v6767_v3 }
 0x223   : >> { %v1623_v14 = vadd.f32 %v4937_v63, %v7547_v4  ;;  %v1617_v15 = vpop.f32.mrb[113].mxu0 }
 0x224   : >> { %v1618_v9 = vadd.f32 %v7547_v4, %v1617_v15  ;;  %v4999_v2 = vpop.f32.mrb[4].mxu1  ;;  %5156 = vmatprep.mubr.f32.mxu1 %v1806_v19  ;;  %v2668_v19 = vadd.s32 %v6777_v10, %v2539_v12  ;;  %v2669_v12 = vadd.s32 %v6777_v10, %v2540_v17  ;;  %v2670_v5 = vadd.s32 %v6777_v10, %v2541_v13 }
 0x225   : >> { %v1910_v18 = vpop.f32.mrb[5].mxu1  ;;  %5157 = vmatmul.mubr.f32.gmra.mrb[110].mxu1 %v1807_v0  ;;  %v1809_v6 = vmax.f32 %v1623_v14, 0.0  ;;  %v2921_v57 = vsel %vm2793_vm6, %v4999_v2, 0.0 }
 0x226   : >> { %v1808_v8 = vmax.f32 %v1618_v9, 0.0  ;;  %v2920_v1 = vsel %vm2792_vm5, %v1910_v18, 0.0  ;;  %v4940_v11 = vpop.f32.mrb[114].mxu0  ;;  %3056 = vperm.xlu1 %5401, %v2918_v7   ;;  %v2542_v7 = vadd.s32 88, %v6767_v3  ;;  %vm2796_vm9 = vcmp.lt.s32.totalorder %v2668_v19, 2496 }
 0x227   : >> { %v1633_v53 = vadd.f32 %v4940_v11, %v7547_v4  ;;  %v1627_v63 = vpop.f32.mrb[115].mxu0  ;;  %3066 = vperm.xlu0 %5400, %v2920_v1   ;;  %v2543_v1 = vadd.s32 96, %v6767_v3  ;;  %vm2797_vm10 = vcmp.lt.s32.totalorder %v2669_v12, 2496  ;;  %vm2798_vm11 = vcmp.lt.s32.totalorder %v2670_v5, 2496 }
 0x228   : >> { %v1628_v0 = vadd.f32 %v7547_v4, %v1627_v63  ;;  %v5002_v15 = vpop.f32.mrb[6].mxu1  ;;  %5159 = vmatprep.mubr.f32.mxu1 %v1808_v8  ;;  %v2671_v17 = vadd.s32 %v6777_v10, %v2542_v7 }
 0x229   : >> { %v1920_v9 = vpop.f32.mrb[7].mxu1  ;;  %5160 = vmatmul.mubr.f32.gmra.mrb[112].mxu1 %v1809_v6  ;;  %v1811_v20 = vmax.f32 %v1633_v53, 0.0  ;;  %v2923_v16 = vsel %vm2795_vm8, %v5002_v15, 0.0  ;;  %v2672_v19 = vadd.s32 %v6777_v10, %v2543_v1 }
 0x22a   : >> { %v1810_v14 = vmax.f32 %v1628_v0, 0.0  ;;  %v2922_v18 = vsel %vm2794_vm7, %v1920_v9, 0.0  ;;  %v4943_v11 = vpop.f32.mrb[116].mxu0  ;;  %3071 = vperm.xlu1 %5401, %v2921_v57   ;;  %v2544_v57 = vadd.s32 104, %v6767_v3  ;;  %vm2799_vm12 = vcmp.lt.s32.totalorder %v2671_v17, 2496 }
 0x22b   : >> { %v1643_v63 = vadd.f32 %v4943_v11, %v7547_v4  ;;  %v1637_v8 = vpop.f32.mrb[117].mxu0  ;;  %3076 = vperm.xlu0 %5400, %v2922_v18   ;;  %vm2800_vm13 = vcmp.lt.s32.totalorder %v2672_v19, 2496 }
 0x22c   : >> { %v1638_v2 = vadd.f32 %v7547_v4, %v1637_v8  ;;  %v5005_v6 = vpop.f32.mrb[8].mxu1  ;;  %5162 = vmatprep.mubr.f32.mxu1 %v1810_v14  ;;  %v2673_v12 = vadd.s32 %v6777_v10, %v2544_v57 }
 0x22d   : >> { %v1930_v0 = vpop.f32.mrb[9].mxu1  ;;  %5163 = vmatmul.mubr.f32.gmra.mrb[114].mxu1 %v1811_v20  ;;  %v1813_v13 = vmax.f32 %v1643_v63, 0.0  ;;  %v2925_v7 = vsel %vm2797_vm10, %v5005_v6, 0.0  ;;  %v2547_v6 = vadd.s32 128, %v6767_v3 }
 0x22e   : >> { %v1812_v53 = vmax.f32 %v1638_v2, 0.0  ;;  %v2924_v9 = vsel %vm2796_vm9, %v1930_v0, 0.0  ;;  %v4946_v11 = vpop.f32.mrb[118].mxu0  ;;  %3081 = vperm.xlu1 %5401, %v2923_v16   ;;  %v2546_v16 = vadd.s32 120, %v6767_v3  ;;  %vm2801_vm14 = vcmp.lt.s32.totalorder %v2673_v12, 2496 }
 0x22f   : >> { %v1653_v18 = vadd.f32 %v4946_v11, %v7547_v4  ;;  %v1647_v8 = vpop.f32.mrb[119].mxu0  ;;  %3086 = vperm.xlu0 %5400, %v2924_v9   ;;  %v2676_v17 = vadd.s32 %v6777_v10, %v2547_v6  ;;  %v2551_v12 = vadd.s32 160, %v6767_v3 }
 0x230   : >> { %v1648_v20 = vadd.f32 %v7547_v4, %v1647_v8  ;;  %v5008_v15 = vpop.f32.mrb[10].mxu1  ;;  %5165 = vmatprep.mubr.f32.mxu1 %v1812_v53  ;;  %v2674_v53 = vadd.s32 %v6777_v10, %v2545_v56  ;;  %v2675_v56 = vadd.s32 %v6777_v10, %v2546_v16 }
 0x231   : >> { %v1940_v14 = vpop.f32.mrb[11].mxu1  ;;  %5166 = vmatmul.mubr.f32.gmra.mrb[116].mxu1 %v1813_v13  ;;  %v1815_v5 = vmax.f32 %v1653_v18, 0.0  ;;  %v2927_v57 = vsel %vm2799_vm12, %v5008_v15, 0.0  ;;  %vm2804_vm1 = vcmp.lt.s32.totalorder %v2676_v17, 2496 }
 0x232   : >> { %v1814_v2 = vmax.f32 %v1648_v20, 0.0  ;;  %v2926_v1 = vsel %vm2798_vm11, %v1940_v14, 0.0  ;;  %v4949_v63 = vpop.f32.mrb[120].mxu0  ;;  %3091 = vperm.xlu1 %5401, %v2925_v7   ;;  %v2548_v20 = vadd.s32 136, %v6767_v3  ;;  %vm2802_vm15 = vcmp.lt.s32.totalorder %v2674_v53, 2496 }
 0x233   : >> { %v1663_v0 = vadd.f32 %v4949_v63, %v7547_v4  ;;  %v1657_v9 = vpop.f32.mrb[121].mxu0  ;;  %3096 = vperm.xlu0 %5400, %v2926_v1   ;;  %v2549_v1 = vadd.s32 144, %v6767_v3  ;;  %vm2803_vm0 = vcmp.lt.s32.totalorder %v2675_v56, 2496 }
 0x234   : >> { %v1658_v11 = vadd.f32 %v7547_v4, %v1657_v9  ;;  %v5011_v13 = vpop.f32.mrb[12].mxu1  ;;  %5168 = vmatprep.mubr.f32.mxu1 %v1814_v2  ;;  %v2677_v16 = vadd.s32 %v6777_v10, %v2548_v20 }
 0x235   : >> { %v1950_v8 = vpop.f32.mrb[13].mxu1  ;;  %5169 = vmatmul.mubr.f32.gmra.mrb[118].mxu1 %v1815_v5  ;;  %v1817_v63 = vmax.f32 %v1663_v0, 0.0  ;;  %v2929_v19 = vsel %vm2801_vm14, %v5011_v13, 0.0  ;;  %v2678_v53 = vadd.s32 %v6777_v10, %v2549_v1 }
 0x236   : >> { %v1816_v18 = vmax.f32 %v1658_v11, 0.0  ;;  %v2928_v7 = vsel %vm2800_vm13, %v1950_v8, 0.0  ;;  %v4952_v14 = vpop.f32.mrb[122].mxu0  ;;  %3101 = vperm.xlu1 %5401, %v2927_v57   ;;  %v2550_v57 = vadd.s32 152, %v6767_v3  ;;  %vm2805_vm2 = vcmp.lt.s32.totalorder %v2677_v16, 2496 }
 0x237   : >> { %v1673_v9 = vadd.f32 %v4952_v14, %v7547_v4  ;;  %v1667_v2 = vpop.f32.mrb[123].mxu0  ;;  %3106 = vperm.xlu0 %5400, %v2928_v7   ;;  %vm2806_vm3 = vcmp.lt.s32.totalorder %v2678_v53, 2496 }
 0x238   : >> { %v1668_v15 = vadd.f32 %v7547_v4, %v1667_v2  ;;  %v5014_v5 = vpop.f32.mrb[14].mxu1  ;;  %5171 = vmatprep.mubr.f32.mxu1 %v1816_v18 }
 0x239   : >> { %v1960_v11 = vpop.f32.mrb[15].mxu1  ;;  %5172 = vmatmul.mubr.f32.gmra.mrb[120].mxu1 %v1817_v63  ;;  %v1819_v6 = vmax.f32 %v1673_v9, 0.0  ;;  %v2931_v18 = vsel %vm2803_vm0, %v5014_v5, 0.0  ;;  %v2679_v63 = vadd.s32 %v6777_v10, %v2550_v57  ;;  %v2553_v5 = vadd.s32 176, %v6767_v3 }
 0x23a   : >> { %v1818_v0 = vmax.f32 %v1668_v15, 0.0  ;;  %v2930_v8 = vsel %vm2802_vm15, %v1960_v11, 0.0  ;;  %v4955_v14 = vpop.f32.mrb[124].mxu0  ;;  %3111 = vperm.xlu1 %5401, %v2929_v19   ;;  %v2552_v19 = vadd.s32 168, %v6767_v3 }
 0x23b   : >> { %v1683_v7 = vadd.f32 %v4955_v14, %v7547_v4  ;;  %v1677_v2 = vpop.f32.mrb[125].mxu0  ;;  %3116 = vperm.xlu0 %5400, %v2930_v8   ;;  %vm2807_vm4 = vcmp.lt.s32.totalorder %v2679_v63, 2496 }
 0x23c   : >> { %v1678_v13 = vadd.f32 %v7547_v4, %v1677_v2  ;;  %v5017_v20 = vpop.f32.mrb[16].mxu1  ;;  %5174 = vmatprep.mubr.f32.mxu1 %v1818_v0  ;;  %v2680_v0 = vadd.s32 %v6777_v10, %v2551_v12 }
 0x23d   : >> { %v1970_v56 = vpop.f32.mrb[17].mxu1  ;;  %5175 = vmatmul.mubr.f32.gmra.mrb[122].mxu1 %v1819_v6  ;;  %v1821_v17 = vmax.f32 %v1683_v7, 0.0  ;;  %v2933_v57 = vsel %vm2805_vm2, %v5017_v20, 0.0 }
 0x23e   : >> { %v1820_v15 = vmax.f32 %v1678_v13, 0.0  ;;  %v2932_v1 = vsel %vm2804_vm1, %v1970_v56, 0.0  ;;  %v4958_v9 = vpop.f32.mrb[126].mxu0  ;;  %3121 = vperm.xlu1 %5401, %v2931_v18   ;;  %v2681_v18 = vadd.s32 %v6777_v10, %v2552_v19  ;;  %v2554_v56 = vadd.s32 184, %v6767_v3 }
 0x23f   : >> { %v1693_v11 = vadd.f32 %v4958_v9, %v7547_v4  ;;  %v1687_v8 = vpop.f32.mrb[127].mxu0  ;;  %3126 = vperm.xlu0 %5400, %v2932_v1   ;;  %vm2808_vm5 = vcmp.lt.s32.totalorder %v2680_v0, 2496  ;;  %v2682_v1 = vadd.s32 %v6777_v10, %v2553_v5  ;;  %v2556_v19 = vadd.s32 200, %v6767_v3 }
 0x240   : >> { %v1688_v14 = vadd.f32 %v7547_v4, %v1687_v8  ;;  %v5020_v6 = vpop.f32.mrb[18].mxu1  ;;  %5177 = vmatprep.mubr.f32.mxu1 %v1820_v15  ;;  %v2555_v15 = vadd.s32 192, %v6767_v3  ;;  %vm2809_vm6 = vcmp.lt.s32.totalorder %v2681_v18, 2496  ;;  %v2683_v9 = vadd.s32 %v6777_v10, %v2554_v56 }
 0x241   : >> { %v1980_v2 = vpop.f32.mrb[19].mxu1  ;;  %5178 = vmatmul.mubr.f32.gmra.mrb[124].mxu1 %v1821_v17  ;;  %v1823_v12 = vmax.f32 %v1693_v11, 0.0  ;;  %v2935_v20 = vsel %vm2807_vm4, %v5020_v6, 0.0  ;;  %vm2810_vm7 = vcmp.lt.s32.totalorder %v2682_v1, 2496  ;;  %v2557_v11 = vadd.s32 208, %v6767_v3 }
 0x242   : >> { %v1822_v13 = vmax.f32 %v1688_v14, 0.0  ;;  %v2934_v7 = vsel %vm2806_vm3, %v1980_v2, 0.0  ;;  %3131 = vperm.xlu1 %5401, %v2933_v57   ;;  %v2684_v17 = vadd.s32 %v6777_v10, %v2555_v15  ;;  %vm2811_vm8 = vcmp.lt.s32.totalorder %v2683_v9, 2496 }
 0x243   : >> { %3136 = vperm.xlu0 %5400, %v2934_v7   ;;  %v2685_v6 = vadd.s32 %v6777_v10, %v2556_v19  ;;  %v2558_v57 = vadd.s32 216, %v6767_v3  ;;  %v2686_v2 = vadd.s32 %v6777_v10, %v2557_v11  ;;  %v2560_v15 = vadd.s32 232, %v6767_v3 }
 0x244   : >> { %v5023_v16 = vpop.f32.mrb[20].mxu1  ;;  %5180 = vmatprep.mubr.f32.mxu1 %v1822_v13  ;;  %vm2812_vm9 = vcmp.lt.s32.totalorder %v2684_v17, 2496  ;;  %v2559_v13 = vadd.s32 224, %v6767_v3  ;;  %v2562_v11 = vadd.s32 248, %v6767_v3 }
 0x245   : >> { %v1990_v63 = vpop.f32.mrb[21].mxu1  ;;  %5181 = vmatmul.mubr.f32.gmra.mrb[126].mxu1 %v1823_v12  ;;  %v2937_v0 = vsel %vm2809_vm6, %v5023_v16, 0.0  ;;  %vm2813_vm10 = vcmp.lt.s32.totalorder %v2685_v6, 2496  ;;  %v2687_v1 = vadd.s32 %v6777_v10, %v2558_v57  ;;  %vm2814_vm11 = vcmp.lt.s32.totalorder %v2686_v2, 2496 }
 0x246   : >> { %v2936_v53 = vsel %vm2808_vm5, %v1990_v63, 0.0  ;;  %3141 = vperm.xlu1 %5401, %v2935_v20   ;;  %3948 = vmatprep.mubr.f32.mxu1 %v7570_v62  ;;  %v2688_v16 = vadd.s32 %v6777_v10, %v2559_v13  ;;  %v2561_v20 = vadd.s32 240, %v6767_v3  ;;  %v2689_v17 = vadd.s32 %v6777_v10, %v2560_v15 }
 0x247   : >> { %3146 = vperm.xlu0 %5400, %v2936_v53   ;;  %vm2815_vm12 = vcmp.lt.s32.totalorder %v2687_v1, 2496  ;;  %v2691_v2 = vadd.s32 %v6777_v10, %v2562_v11  ;;  %v2564_v13 = vadd.s32 264, %v6767_v3 }
 0x248   : >> { %v5026_v8 = vpop.f32.mrb[22].mxu1  ;;  %vm2816_vm13 = vcmp.lt.s32.totalorder %v2688_v16, 2496  ;;  %vm2817_vm14 = vcmp.lt.s32.totalorder %v2689_v17, 2496 }
 0x249   : >> { %v2000_v5 = vpop.f32.mrb[23].mxu1  ;;  %v2939_v18 = vsel %vm2811_vm8, %v5026_v8, 0.0  ;;  %v2690_v8 = vadd.s32 %v6777_v10, %v2561_v20  ;;  %vm2819_vm0 = vcmp.lt.s32.totalorder %v2691_v2, 2496  ;;  %v2693_v16 = vadd.s32 %v6777_v10, %v2564_v13 }
 0x24a   : >> { %v2938_v14 = vsel %vm2810_vm7, %v2000_v5, 0.0  ;;  %3151 = vperm.xlu1 %5401, %v2937_v0   ;;  %v2563_v0 = vadd.s32 256, %v6767_v3  ;;  %v2566_v20 = vadd.s32 280, %v6767_v3 }
 0x24b   : >> { %3156 = vperm.xlu0 %5400, %v2938_v14   ;;  %vm2818_vm15 = vcmp.lt.s32.totalorder %v2690_v8, 2496  ;;  %vm2821_vm2 = vcmp.lt.s32.totalorder %v2693_v16, 2496 }
 0x24c   : >> { %v5029_v7 = vpop.f32.mrb[24].mxu1  ;;  %v2695_v8 = vadd.s32 %v6777_v10, %v2566_v20 }
 0x24d   : >> { %v2010_v56 = vpop.f32.mrb[25].mxu1  ;;  %v2941_v53 = vsel %vm2813_vm10, %v5029_v7, 0.0  ;;  %v2692_v7 = vadd.s32 %v6777_v10, %v2563_v0  ;;  %v2568_v0 = vadd.s32 296, %v6767_v3 }
 0x24e   : >> { %v2940_v12 = vsel %vm2812_vm9, %v2010_v56, 0.0  ;;  %3161 = vperm.xlu1 %5401, %v2939_v18   ;;  %v2565_v18 = vadd.s32 272, %v6767_v3  ;;  %vm2823_vm4 = vcmp.lt.s32.totalorder %v2695_v8, 2496 }
 0x24f   : >> { %3166 = vperm.xlu0 %5400, %v2940_v12   ;;  %vm2820_vm1 = vcmp.lt.s32.totalorder %v2692_v7, 2496  ;;  %v2697_v7 = vadd.s32 %v6777_v10, %v2568_v0 }
 0x250   : >> { %v5032_v63 = vpop.f32.mrb[26].mxu1 }
 0x251   : >> { %v2020_v9 = vpop.f32.mrb[27].mxu1  ;;  %v2943_v14 = vsel %vm2815_vm12, %v5032_v63, 0.0  ;;  %v2694_v63 = vadd.s32 %v6777_v10, %v2565_v18  ;;  %v2570_v18 = vadd.s32 312, %v6767_v3  ;;  %vm2825_vm6 = vcmp.lt.s32.totalorder %v2697_v7, 2496 }
 0x252   : >> { %v2942_v19 = vsel %vm2814_vm11, %v2020_v9, 0.0  ;;  %3171 = vperm.xlu1 %5401, %v2941_v53   ;;  %v2567_v53 = vadd.s32 288, %v6767_v3 }
 0x253   : >> { %3176 = vperm.xlu0 %5400, %v2942_v19   ;;  %vm2822_vm3 = vcmp.lt.s32.totalorder %v2694_v63, 2496  ;;  %v2699_v63 = vadd.s32 %v6777_v10, %v2570_v18 }
 0x254   : >> { %v5035_v5 = vpop.f32.mrb[28].mxu1 }
 0x255   : >> { %v2030_v6 = vpop.f32.mrb[29].mxu1  ;;  %v2945_v12 = vsel %vm2817_vm14, %v5035_v5, 0.0  ;;  %v2696_v5 = vadd.s32 %v6777_v10, %v2567_v53  ;;  %v2572_v53 = vadd.s32 328, %v6767_v3  ;;  %vm2827_vm8 = vcmp.lt.s32.totalorder %v2699_v63, 2496 }
 0x256   : >> { %v2944_v57 = vsel %vm2816_vm13, %v2030_v6, 0.0  ;;  %3181 = vperm.xlu1 %5401, %v2943_v14   ;;  %v2569_v14 = vadd.s32 304, %v6767_v3 }
 0x257   : >> { %3186 = vperm.xlu0 %5400, %v2944_v57   ;;  %vm2824_vm5 = vcmp.lt.s32.totalorder %v2696_v5, 2496  ;;  %v2701_v5 = vadd.s32 %v6777_v10, %v2572_v53 }
 0x258   : >> { %v5038_v56 = vpop.f32.mrb[30].mxu1 }
 0x259   : >> { %v2040_v1 = vpop.f32.mrb[31].mxu1  ;;  %v2947_v19 = vsel %vm2819_vm0, %v5038_v56, 0.0  ;;  %v2698_v56 = vadd.s32 %v6777_v10, %v2569_v14  ;;  %v2574_v14 = vadd.s32 344, %v6767_v3  ;;  %vm2829_vm10 = vcmp.lt.s32.totalorder %v2701_v5, 2496 }
 0x25a   : >> { %v2946_v15 = vsel %vm2818_vm15, %v2040_v1, 0.0  ;;  %3191 = vperm.xlu1 %5401, %v2945_v12   ;;  %v2571_v12 = vadd.s32 320, %v6767_v3 }
 0x25b   : >> { %3196 = vperm.xlu0 %5400, %v2946_v15   ;;  %vm2826_vm7 = vcmp.lt.s32.totalorder %v2698_v56, 2496  ;;  %v2703_v56 = vadd.s32 %v6777_v10, %v2574_v14 }
 0x25c   : >> { %v5041_v9 = vpop.f32.mrb[32].mxu1 }
 0x25d   : >> { %v2050_v17 = vpop.f32.mrb[33].mxu1  ;;  %v2949_v57 = vsel %vm2821_vm2, %v5041_v9, 0.0  ;;  %v2700_v9 = vadd.s32 %v6777_v10, %v2571_v12  ;;  %v2576_v12 = vadd.s32 360, %v6767_v3  ;;  %vm2831_vm12 = vcmp.lt.s32.totalorder %v2703_v56, 2496 }
 0x25e   : >> { %v2948_v11 = vsel %vm2820_vm1, %v2050_v17, 0.0  ;;  %3201 = vperm.xlu1 %5401, %v2947_v19   ;;  %v2573_v19 = vadd.s32 336, %v6767_v3 }
 0x25f   : >> { %3206 = vperm.xlu0 %5400, %v2948_v11   ;;  %vm2828_vm9 = vcmp.lt.s32.totalorder %v2700_v9, 2496  ;;  %v2705_v9 = vadd.s32 %v6777_v10, %v2576_v12 }
 0x260   : >> { %v5044_v6 = vpop.f32.mrb[34].mxu1 }
 0x261   : >> { %v2060_v2 = vpop.f32.mrb[35].mxu1  ;;  %v2951_v15 = vsel %vm2823_vm4, %v5044_v6, 0.0  ;;  %v2702_v6 = vadd.s32 %v6777_v10, %v2573_v19  ;;  %v2578_v19 = vadd.s32 376, %v6767_v3  ;;  %vm2833_vm14 = vcmp.lt.s32.totalorder %v2705_v9, 2496 }
 0x262   : >> { %v2950_v13 = vsel %vm2822_vm3, %v2060_v2, 0.0  ;;  %3211 = vperm.xlu1 %5401, %v2949_v57   ;;  %v2575_v57 = vadd.s32 352, %v6767_v3 }
 0x263   : >> { %3216 = vperm.xlu0 %5400, %v2950_v13   ;;  %vm2830_vm11 = vcmp.lt.s32.totalorder %v2702_v6, 2496  ;;  %v2707_v6 = vadd.s32 %v6777_v10, %v2578_v19 }
 0x264   : >> { %v5047_v1 = vpop.f32.mrb[36].mxu1 }
 0x265   : >> { %v2070_v16 = vpop.f32.mrb[37].mxu1  ;;  %v2953_v11 = vsel %vm2825_vm6, %v5047_v1, 0.0  ;;  %v2704_v1 = vadd.s32 %v6777_v10, %v2575_v57  ;;  %v2580_v57 = vadd.s32 392, %v6767_v3  ;;  %vm2835_vm0 = vcmp.lt.s32.totalorder %v2707_v6, 2496 }
 0x266   : >> { %v2952_v20 = vsel %vm2824_vm5, %v2070_v16, 0.0  ;;  %3221 = vperm.xlu1 %5401, %v2951_v15   ;;  %v2577_v15 = vadd.s32 368, %v6767_v3 }
 0x267   : >> { %3226 = vperm.xlu0 %5400, %v2952_v20   ;;  %vm2832_vm13 = vcmp.lt.s32.totalorder %v2704_v1, 2496  ;;  %v2709_v1 = vadd.s32 %v6777_v10, %v2580_v57 }
 0x268   : >> { %v5050_v17 = vpop.f32.mrb[38].mxu1 }
 0x269   : >> { %v2080_v8 = vpop.f32.mrb[39].mxu1  ;;  %v2955_v13 = vsel %vm2827_vm8, %v5050_v17, 0.0  ;;  %v2706_v17 = vadd.s32 %v6777_v10, %v2577_v15  ;;  %v2582_v15 = vadd.s32 408, %v6767_v3  ;;  %vm2837_vm2 = vcmp.lt.s32.totalorder %v2709_v1, 2496 }
 0x26a   : >> { %v2954_v0 = vsel %vm2826_vm7, %v2080_v8, 0.0  ;;  %3231 = vperm.xlu1 %5401, %v2953_v11   ;;  %v2579_v11 = vadd.s32 384, %v6767_v3 }
 0x26b   : >> { %3236 = vperm.xlu0 %5400, %v2954_v0   ;;  %vm2834_vm15 = vcmp.lt.s32.totalorder %v2706_v17, 2496  ;;  %v2711_v17 = vadd.s32 %v6777_v10, %v2582_v15 }
 0x26c   : >> { %v5053_v2 = vpop.f32.mrb[40].mxu1 }
 0x26d   : >> { %v2090_v7 = vpop.f32.mrb[41].mxu1  ;;  %v2957_v20 = vsel %vm2829_vm10, %v5053_v2, 0.0  ;;  %v2708_v2 = vadd.s32 %v6777_v10, %v2579_v11  ;;  %v2584_v11 = vadd.s32 424, %v6767_v3  ;;  %vm2839_vm4 = vcmp.lt.s32.totalorder %v2711_v17, 2496 }
 0x26e   : >> { %v2956_v18 = vsel %vm2828_vm9, %v2090_v7, 0.0  ;;  %3241 = vperm.xlu1 %5401, %v2955_v13   ;;  %v2581_v13 = vadd.s32 400, %v6767_v3 }
 0x26f   : >> { %3246 = vperm.xlu0 %5400, %v2956_v18   ;;  %vm2836_vm1 = vcmp.lt.s32.totalorder %v2708_v2, 2496  ;;  %v2713_v2 = vadd.s32 %v6777_v10, %v2584_v11 }
 0x270   : >> { %v5056_v16 = vpop.f32.mrb[42].mxu1 }
 0x271   : >> { %v2100_v63 = vpop.f32.mrb[43].mxu1  ;;  %v2959_v0 = vsel %vm2831_vm12, %v5056_v16, 0.0  ;;  %v2710_v16 = vadd.s32 %v6777_v10, %v2581_v13  ;;  %v2586_v13 = vadd.s32 440, %v6767_v3  ;;  %vm2841_vm6 = vcmp.lt.s32.totalorder %v2713_v2, 2496 }
 0x272   : >> { %v2958_v53 = vsel %vm2830_vm11, %v2100_v63, 0.0  ;;  %3251 = vperm.xlu1 %5401, %v2957_v20   ;;  %v2583_v20 = vadd.s32 416, %v6767_v3 }
 0x273   : >> { %3256 = vperm.xlu0 %5400, %v2958_v53   ;;  %vm2838_vm3 = vcmp.lt.s32.totalorder %v2710_v16, 2496  ;;  %v2715_v16 = vadd.s32 %v6777_v10, %v2586_v13 }
 0x274   : >> { %v5059_v8 = vpop.f32.mrb[44].mxu1 }
 0x275   : >> { %v2110_v5 = vpop.f32.mrb[45].mxu1  ;;  %v2961_v18 = vsel %vm2833_vm14, %v5059_v8, 0.0  ;;  %v2712_v8 = vadd.s32 %v6777_v10, %v2583_v20  ;;  %v2588_v20 = vadd.s32 456, %v6767_v3  ;;  %vm2843_vm8 = vcmp.lt.s32.totalorder %v2715_v16, 2496 }
 0x276   : >> { %v2960_v14 = vsel %vm2832_vm13, %v2110_v5, 0.0  ;;  %3261 = vperm.xlu1 %5401, %v2959_v0   ;;  %v2585_v0 = vadd.s32 432, %v6767_v3 }
 0x277   : >> { %3266 = vperm.xlu0 %5400, %v2960_v14   ;;  %vm2840_vm5 = vcmp.lt.s32.totalorder %v2712_v8, 2496  ;;  %v2717_v8 = vadd.s32 %v6777_v10, %v2588_v20 }
 0x278   : >> { %v5062_v7 = vpop.f32.mrb[46].mxu1 }
 0x279   : >> { %v2120_v56 = vpop.f32.mrb[47].mxu1  ;;  %v2963_v53 = vsel %vm2835_vm0, %v5062_v7, 0.0  ;;  %v2714_v7 = vadd.s32 %v6777_v10, %v2585_v0  ;;  %v2590_v0 = vadd.s32 472, %v6767_v3  ;;  %vm2845_vm10 = vcmp.lt.s32.totalorder %v2717_v8, 2496 }
 0x27a   : >> { %v2962_v12 = vsel %vm2834_vm15, %v2120_v56, 0.0  ;;  %3271 = vperm.xlu1 %5401, %v2961_v18   ;;  %v2587_v18 = vadd.s32 448, %v6767_v3 }
 0x27b   : >> { %3276 = vperm.xlu0 %5400, %v2962_v12   ;;  %vm2842_vm7 = vcmp.lt.s32.totalorder %v2714_v7, 2496  ;;  %v2719_v7 = vadd.s32 %v6777_v10, %v2590_v0 }
 0x27c   : >> { %v5065_v63 = vpop.f32.mrb[48].mxu1 }
 0x27d   : >> { %v2130_v9 = vpop.f32.mrb[49].mxu1  ;;  %v2965_v14 = vsel %vm2837_vm2, %v5065_v63, 0.0  ;;  %v2716_v63 = vadd.s32 %v6777_v10, %v2587_v18  ;;  %v2592_v18 = vadd.s32 488, %v6767_v3  ;;  %vm2847_vm12 = vcmp.lt.s32.totalorder %v2719_v7, 2496 }
 0x27e   : >> { %v2964_v19 = vsel %vm2836_vm1, %v2130_v9, 0.0  ;;  %3281 = vperm.xlu1 %5401, %v2963_v53   ;;  %v2589_v53 = vadd.s32 464, %v6767_v3 }
 0x27f   : >> { %3286 = vperm.xlu0 %5400, %v2964_v19   ;;  %vm2844_vm9 = vcmp.lt.s32.totalorder %v2716_v63, 2496  ;;  %v2721_v63 = vadd.s32 %v6777_v10, %v2592_v18 }
 0x280   : >> { %v5068_v5 = vpop.f32.mrb[50].mxu1 }
 0x281   : >> { %v2140_v6 = vpop.f32.mrb[51].mxu1  ;;  %v2967_v12 = vsel %vm2839_vm4, %v5068_v5, 0.0  ;;  %v2718_v5 = vadd.s32 %v6777_v10, %v2589_v53  ;;  %v2594_v53 = vadd.s32 504, %v6767_v3  ;;  %vm2849_vm14 = vcmp.lt.s32.totalorder %v2721_v63, 2496 }
 0x282   : >> { %v2966_v57 = vsel %vm2838_vm3, %v2140_v6, 0.0  ;;  %3291 = vperm.xlu1 %5401, %v2965_v14   ;;  %v2591_v14 = vadd.s32 480, %v6767_v3 }
 0x283   : >> { %3296 = vperm.xlu0 %5400, %v2966_v57   ;;  %vm2846_vm11 = vcmp.lt.s32.totalorder %v2718_v5, 2496  ;;  %v2723_v5 = vadd.s32 %v6777_v10, %v2594_v53 }
 0x284   : >> { %v5071_v56 = vpop.f32.mrb[52].mxu1 }
 0x285   : >> { %v2150_v1 = vpop.f32.mrb[53].mxu1  ;;  %v2969_v19 = vsel %vm2841_vm6, %v5071_v56, 0.0  ;;  %v2720_v56 = vadd.s32 %v6777_v10, %v2591_v14  ;;  %v2596_v14 = vadd.s32 520, %v6767_v3  ;;  %vm2851_vm0 = vcmp.lt.s32.totalorder %v2723_v5, 2496 }
 0x286   : >> { %v2968_v15 = vsel %vm2840_vm5, %v2150_v1, 0.0  ;;  %3301 = vperm.xlu1 %5401, %v2967_v12   ;;  %v2593_v12 = vadd.s32 496, %v6767_v3 }
 0x287   : >> { %3306 = vperm.xlu0 %5400, %v2968_v15   ;;  %vm2848_vm13 = vcmp.lt.s32.totalorder %v2720_v56, 2496  ;;  %v2725_v56 = vadd.s32 %v6777_v10, %v2596_v14 }
 0x288   : >> { %v5074_v9 = vpop.f32.mrb[54].mxu1 }
 0x289   : >> { %v2160_v17 = vpop.f32.mrb[55].mxu1  ;;  %v2971_v57 = vsel %vm2843_vm8, %v5074_v9, 0.0  ;;  %v2722_v9 = vadd.s32 %v6777_v10, %v2593_v12  ;;  %v2598_v12 = vadd.s32 536, %v6767_v3  ;;  %vm2853_vm2 = vcmp.lt.s32.totalorder %v2725_v56, 2496 }
 0x28a   : >> { %v2970_v11 = vsel %vm2842_vm7, %v2160_v17, 0.0  ;;  %3311 = vperm.xlu1 %5401, %v2969_v19   ;;  %v2595_v19 = vadd.s32 512, %v6767_v3  ;;  %v2603_v56 = vadd.s32 576, %v6767_v3 }
 0x28b   : >> { %3316 = vperm.xlu0 %5400, %v2970_v11   ;;  %vm2850_vm15 = vcmp.lt.s32.totalorder %v2722_v9, 2496 }
 0x28c   : >> { %v5077_v6 = vpop.f32.mrb[56].mxu1 }
 0x28d   : >> { %v2170_v2 = vpop.f32.mrb[57].mxu1  ;;  %v2973_v15 = vsel %vm2845_vm10, %v5077_v6, 0.0  ;;  %v2724_v6 = vadd.s32 %v6777_v10, %v2595_v19  ;;  %v2727_v19 = vadd.s32 %v6777_v10, %v2598_v12 }
 0x28e   : >> { %v2972_v13 = vsel %vm2844_vm9, %v2170_v2, 0.0  ;;  %3321 = vperm.xlu1 %5401, %v2971_v57   ;;  %v2597_v2 = vadd.s32 528, %v6767_v3 }
 0x28f   : >> { %3326 = vperm.xlu0 %5400, %v2972_v13   ;;  %vm2852_vm1 = vcmp.lt.s32.totalorder %v2724_v6, 2496  ;;  %vm2855_vm4 = vcmp.lt.s32.totalorder %v2727_v19, 2496  ;;  %v2604_v19 = vadd.s32 584, %v6767_v3 }
 0x290   : >> { %v5080_v1 = vpop.f32.mrb[58].mxu1 }
 0x291   : >> { %v2180_v16 = vpop.f32.mrb[59].mxu1  ;;  %v2975_v11 = vsel %vm2847_vm12, %v5080_v1, 0.0  ;;  %v2599_v1 = vadd.s32 544, %v6767_v3 }
 0x292   : >> { %v2974_v20 = vsel %vm2846_vm11, %v2180_v16, 0.0  ;;  %3331 = vperm.xlu1 %5401, %v2973_v15   ;;  %v2726_v16 = vadd.s32 %v6777_v10, %v2597_v2 }
 0x293   : >> { %3336 = vperm.xlu0 %5400, %v2974_v20  }
 0x294   : >> { %v5083_v17 = vpop.f32.mrb[60].mxu1  ;;  %vm2854_vm3 = vcmp.lt.s32.totalorder %v2726_v16, 2496 }
 0x295   : >> { %v2190_v8 = vpop.f32.mrb[61].mxu1  ;;  %v2977_v13 = vsel %vm2849_vm14, %v5083_v17, 0.0  ;;  %v2600_v17 = vadd.s32 552, %v6767_v3 }
 0x296   : >> { %v2976_v0 = vsel %vm2848_vm13, %v2190_v8, 0.0  ;;  %3341 = vperm.xlu1 %5401, %v2975_v11   ;;  %v2728_v11 = vadd.s32 %v6777_v10, %v2599_v1  ;;  %v2601_v8 = vadd.s32 560, %v6767_v3 }
 0x297   : >> { %3346 = vperm.xlu0 %5400, %v2976_v0   ;;  %v2729_v2 = vadd.s32 %v6777_v10, %v2600_v17  ;;  %v2732_v17 = vadd.s32 %v6777_v10, %v2603_v56  ;;  %v2607_v56 = vadd.s32 608, %v6767_v3 }
 0x298   : >> { %v5086_v57 = vpop.f32.mrb[62].mxu1  ;;  %vm2856_vm5 = vcmp.lt.s32.totalorder %v2728_v11, 2496  ;;  %v2605_v11 = vadd.s32 592, %v6767_v3 }
 0x299   : >> { %v2200_v7 = vpop.f32.mrb[63].mxu1  ;;  %v2979_v20 = vsel %vm2851_vm0, %v5086_v57, 0.0  ;;  %vm2857_vm6 = vcmp.lt.s32.totalorder %v2729_v2, 2496  ;;  %vm2860_vm9 = vcmp.lt.s32.totalorder %v2732_v17, 2496  ;;  %v2736_v17 = vadd.s32 %v6777_v10, %v2607_v56 }
 0x29a   : >> { %v2978_v18 = vsel %vm2850_vm15, %v2200_v7, 0.0  ;;  %3351 = vperm.xlu1 %5401, %v2977_v13   ;;  %v2602_v13 = vadd.s32 568, %v6767_v3  ;;  %v2611_v56 = vadd.s32 640, %v6767_v3 }
 0x29b   : >> { %3356 = vperm.xlu0 %5400, %v2978_v18   ;;  %v2730_v18 = vadd.s32 %v6777_v10, %v2601_v8  ;;  %vm2864_vm13 = vcmp.lt.s32.totalorder %v2736_v17, 2496 }
 0x29c   : >> { %v5089_v15 = vpop.f32.mrb[64].mxu1  ;;  %v2740_v17 = vadd.s32 %v6777_v10, %v2611_v56  ;;  %v2615_v56 = vadd.s32 672, %v6767_v3 }
 0x29d   : >> { %v6947_v63 = vpop.permute.xlu0 %3051  ;;  %v2210_v53 = vpop.f32.mrb[65].mxu1  ;;  %v2981_v5 = vsel %vm2853_vm2, %v5089_v15, 0.0  ;;  %vm2858_vm7 = vcmp.lt.s32.totalorder %v2730_v18, 2496  ;;  %v2734_v18 = vadd.s32 %v6777_v10, %v2605_v11  ;;  %v2609_v11 = vadd.s32 624, %v6767_v3 }
 0x29e   : >> { %v2980_v9 = vsel %vm2852_vm1, %v2210_v53, 0.0  ;;  %3361 = vperm.xlu1 %5401, %v2979_v20   ;;  %vm2868_vm1 = vcmp.lt.s32.totalorder %v2740_v17, 2496  ;;  %v2744_v17 = vadd.s32 %v6777_v10, %v2615_v56 }
 0x29f   : >> { %3366 = vperm.xlu0 %5400, %v2980_v9   ;;  %v2731_v9 = vadd.s32 %v6777_v10, %v2602_v13  ;;  %v2733_v13 = vadd.s32 %v6777_v10, %v2604_v19  ;;  %vm2862_vm11 = vcmp.lt.s32.totalorder %v2734_v18, 2496  ;;  %v2738_v18 = vadd.s32 %v6777_v10, %v2609_v11 }
 0x2a0   : >> { %v5092_v0 = vpop.f32.mrb[66].mxu1  ;;  %v2613_v11 = vadd.s32 656, %v6767_v3 }
 0x2a1   : >> { %v6953_v14 = vpop.permute.xlu0 %3046  ;;  %v6955_v6 = vpop.permute.xlu1 %3061  ;;  %v2983_v1 = vsel %vm2855_vm4, %v5092_v0, 0.0  ;;  %vm2859_vm8 = vcmp.lt.s32.totalorder %v2731_v9, 2496  ;;  %vm2861_vm10 = vcmp.lt.s32.totalorder %v2733_v13, 2496  ;;  %vm2866_vm15 = vcmp.lt.s32.totalorder %v2738_v18, 2496 }
 0x2a2   : >> { %v2220_v57 = vpop.f32.mrb[67].mxu1  ;;  %3371 = vperm.xlu1 %5401, %v2981_v5   ;;  %v2742_v18 = vadd.s32 %v6777_v10, %v2613_v11  ;;  %v2617_v11 = vadd.s32 688, %v6767_v3 }
 0x2a3   : >> { %v2982_v7 = vsel %vm2854_vm3, %v2220_v57, 0.0 }
 0x2a4   : >> { %3376 = vperm.xlu0 %5400, %v2982_v7   ;;  %v5095_v12 = vpop.f32.mrb[68].mxu1  ;;  %vm2870_vm3 = vcmp.lt.s32.totalorder %v2742_v18, 2496 }
 0x2a5   : >> { %v6961_v15 = vpop.permute.xlu1 %3056  ;;  %v2230_v16 = vpop.f32.mrb[69].mxu1  ;;  %v2985_v0 = vsel %vm2857_vm6, %v5095_v12, 0.0 }
 0x2a6   : >> { %v2984_v20 = vsel %vm2856_vm5, %v2230_v16, 0.0  ;;  %v6963_v53 = vpop.permute.xlu0 %3066  ;;  %3381 = vperm.xlu1 %5401, %v2983_v1   ;;  %v2606_v1 = vadd.s32 600, %v6767_v3  ;;  %vm2872_vm5 = vcmp.lt.s32.totalorder %v2744_v17, 2496 }
 0x2a8   : >> { %3386 = vperm.xlu0 %5400, %v2984_v20   ;;  %v5098_v8 = vpop.f32.mrb[70].mxu1  ;;  %v2735_v19 = vadd.s32 %v6777_v10, %v2606_v1 }
 0x2a9   : >> { %v6969_v5 = vpop.permute.xlu1 %3071  ;;  %v2240_v57 = vpop.f32.mrb[71].mxu1  ;;  %v2987_v12 = vsel %vm2859_vm8, %v5098_v8, 0.0 }
 0x2aa   : >> { %v2986_v2 = vsel %vm2858_vm7, %v2240_v57, 0.0  ;;  %v6971_v7 = vpop.permute.xlu0 %3076  ;;  %3391 = vperm.xlu1 %5401, %v2985_v0   ;;  %v2608_v0 = vadd.s32 616, %v6767_v3  ;;  %vm2863_vm12 = vcmp.lt.s32.totalorder %v2735_v19, 2496 }
 0x2ac   : >> { %3396 = vperm.xlu0 %5400, %v2986_v2   ;;  %v5101_v16 = vpop.f32.mrb[72].mxu1  ;;  %v2737_v1 = vadd.s32 %v6777_v10, %v2608_v0 }
 0x2ad   : >> { %v6977_v20 = vpop.permute.xlu1 %3081  ;;  %v2250_v4 = vpop.f32.mrb[73].mxu1  ;;  %v2989_v8 = vsel %vm2861_vm10, %v5101_v16, 0.0 }
 0x2ae   : >> { %v2988_v9 = vsel %vm2860_vm9, %v2250_v4, 0.0  ;;  %v6979_v57 = vpop.permute.xlu0 %3086  ;;  %3401 = vperm.xlu1 %5401, %v2987_v12   ;;  %v2610_v12 = vadd.s32 632, %v6767_v3  ;;  %vm2865_vm14 = vcmp.lt.s32.totalorder %v2737_v1, 2496 }
 0x2b0   : >> { %3406 = vperm.xlu0 %5400, %v2988_v9   ;;  %v5104_v2 = vpop.f32.mrb[74].mxu1  ;;  %v2739_v0 = vadd.s32 %v6777_v10, %v2610_v12 }
 0x2b1   : >> { %v6985_v55 = vpop.permute.xlu1 %3091  ;;  %v2260_v62 = vpop.f32.mrb[75].mxu1  ;;  %v2991_v16 = vsel %vm2863_vm12, %v5104_v2, 0.0 }
 0x2b2   : >> { %v2990_v4 = vsel %vm2862_vm11, %v2260_v62, 0.0  ;;  %v6987_v13 = vpop.permute.xlu0 %3096  ;;  %3411 = vperm.xlu1 %5401, %v2989_v8   ;;  %v2612_v8 = vadd.s32 648, %v6767_v3  ;;  %vm2867_vm0 = vcmp.lt.s32.totalorder %v2739_v0, 2496 }
 0x2b4   : >> { %3416 = vperm.xlu0 %5400, %v2990_v4   ;;  %v5107_v9 = vpop.f32.mrb[76].mxu1  ;;  %v2741_v12 = vadd.s32 %v6777_v10, %v2612_v8 }
 0x2b5   : >> { %v6993_v60 = vpop.permute.xlu1 %3101  ;;  %v2270_v59 = vpop.f32.mrb[77].mxu1  ;;  %v2993_v2 = vsel %vm2865_vm14, %v5107_v9, 0.0  ;;  %v2616_v9 = vadd.s32 680, %v6767_v3 }
 0x2b6   : >> { %v2992_v62 = vsel %vm2864_vm13, %v2270_v59, 0.0  ;;  %v6995_v19 = vpop.permute.xlu0 %3106  ;;  %3421 = vperm.xlu1 %5401, %v2991_v16   ;;  %v2614_v16 = vadd.s32 664, %v6767_v3  ;;  %vm2869_vm2 = vcmp.lt.s32.totalorder %v2741_v12, 2496 }
 0x2b8   : >> { %3426 = vperm.xlu0 %5400, %v2992_v62   ;;  %v5110_v4 = vpop.f32.mrb[78].mxu1  ;;  %v2743_v8 = vadd.s32 %v6777_v10, %v2614_v16 }
 0x2b9   : >> { %v7001_v54 = vpop.permute.xlu1 %3111  ;;  %v2280_v61 = vpop.f32.mrb[79].mxu1  ;;  %v2995_v58 = vsel %vm2867_vm0, %v5110_v4, 0.0  ;;  %v3684_v4 = vmul.f32 %v6953_v14, %v7573_v21  ;;  %v2619_v14 = vadd.s32 704, %v6767_v3 }
 0x2ba   : >> { %v2994_v59 = vsel %vm2866_vm15, %v2280_v61, 0.0  ;;  %v7003_v1 = vpop.permute.xlu0 %3116  ;;  %3431 = vperm.xlu1 %5401, %v2993_v2   ;;  %vm2871_vm4 = vcmp.lt.s32.totalorder %v2743_v8, 2496 }
 0x2bb   : >> { %7571 = vst [vmem:[#allocation142_spill] sm:$0xff] %v7003_v1  ;;  %v2745_v1 = vadd.s32 %v6777_v10, %v2616_v9  ;;  %v2746_v9 = vadd.s32 %v6777_v10, %v2617_v11 }
 0x2bc   : >> { %3436 = vperm.xlu0 %5400, %v2994_v59   ;;  %v5113_v62 = vpop.f32.mrb[80].mxu1 }
 0x2bd   : >> { %v7010_v35 = vpop.permute.xlu1 %3121  ;;  %v2290_v61 = vpop.f32.mrb[81].mxu1  ;;  %v2997_v52 = vsel %vm2869_vm2, %v5113_v62, 0.0  ;;  %vm2873_vm6 = vcmp.lt.s32.totalorder %v2745_v1, 2496  ;;  %vm2874_vm7 = vcmp.lt.s32.totalorder %v2746_v9, 2496 }
 0x2be   : >> { %7572 = vst [vmem:[#allocation143_spill] sm:$0xff] %v7010_v35  ;;  %v2996_v0 = vsel %vm2868_vm1, %v2290_v61, 0.0  ;;  %v3127_v2 = vpop.permute.xlu0 %3126  ;;  %3441 = vperm.xlu1 %5401, %v2995_v58   ;;  %v2618_v61 = vadd.s32 696, %v6767_v3 }
 0x2bf   : >> { %v3700_v58 = vmul.f32 %v3127_v2, %v5779_v37  ;;  %v3686_v2 = vmul.f32 %v6961_v15, %v7575_v23  ;;  %v2748_v15 = vadd.s32 %v6777_v10, %v2619_v14 }
 0x2c0   : >> { %3446 = vperm.xlu0 %5400, %v2996_v0   ;;  %v5116_v59 = vpop.f32.mrb[82].mxu1  ;;  %v3685_v0 = vmul.f32 %v6947_v63, %v7574_v22 }
 0x2c1   : >> { %v3132_v51 = vpop.permute.xlu1 %3131  ;;  %v2300_v12 = vpop.f32.mrb[83].mxu1  ;;  %vm2876_vm9 = vcmp.lt.s32.totalorder %v2748_v15, 2496  ;;  %v3693_v15 = vmul.f32 %v6985_v55, %v5744_v30 }
 0x2c2   : >> { %v3701_v16 = vmul.f32 %v3132_v51, %v5784_v38  ;;  %v2998_v18 = vsel %vm2870_vm3, %v2300_v12, 0.0  ;;  %v3137_v56 = vpop.permute.xlu0 %3136  ;;  %3451 = vperm.xlu1 %5401, %v2997_v52   ;;  %v5225_v35 = vpack.c.bf16 %v3685_v0, %v3684_v4  ;;  %v2999_v51 = vsel %vm2871_vm4, %v5116_v59, 0.0 }
 0x2c3   : >> { %v2747_v52 = vadd.s32 %v6777_v10, %v2618_v61  ;;  %v3702_v63 = vmul.f32 %v3137_v56, %v5789_v39  ;;  %v3687_v4 = vmul.f32 %v6955_v6, %v7576_v24  ;;  %v2621_v59 = vadd.s32 720, %v6767_v3 }
 0x2c4   : >> { %v5223_v62 = vpack.c.bf16 %v3701_v16, %v3700_v58  ;;  %3456 = vperm.xlu0 %5400, %v2998_v18   ;;  %v5119_v21 = vpop.f32.mrb[84].mxu1  ;;  %v2620_v58 = vadd.s32 712, %v6767_v3  ;;  %v2622_v18 = vadd.s32 728, %v6767_v3  ;;  %v3689_v0 = vmul.f32 %v6969_v5, %v7577_v26 }
 0x2c5   : >> { %v3142_v8 = vpop.permute.xlu1 %3141  ;;  %v2310_v12 = vpop.f32.mrb[85].mxu1  ;;  %v5229_v56 = vpack.c.bf16 %v3687_v4, %v3686_v2  ;;  %vm2875_vm8 = vcmp.lt.s32.totalorder %v2747_v52, 2496  ;;  %v3688_v2 = vmul.f32 %v6963_v53, %v7578_v25  ;;  %v2623_v5 = vadd.s32 736, %v6767_v3  ;;  %v7591_v25 = vld [vmem:[#allocation38_spill] sm:$0xff] }
 0x2c6   : >> { %v3703_v17 = vmul.f32 %v3142_v8, %v5794_v40  ;;  %v3000_v11 = vsel %vm2872_vm5, %v2310_v12, 0.0  ;;  %5224 = vmatprep.subr.bf16.mxu0 %v5223_v62  ;;  %v3147_v22 = vpop.permute.xlu0 %3146  ;;  %3461 = vperm.xlu1 %5401, %v2999_v51   ;;  %v3001_v62 = vsel %vm2873_vm6, %v5119_v21, 0.0  ;;  %v2749_v12 = vadd.s32 %v6777_v10, %v2620_v58 }
 0x2c7   : >> { %5226 = vmatpush3.bf16.msra.mxu0 %v5225_v35  ;;  %v3704_v35 = vmul.f32 %v3147_v22, %v5799_v41  ;;  %v2750_v21 = vadd.s32 %v6777_v10, %v2621_v59  ;;  %v2624_v53 = vadd.s32 744, %v6767_v3  ;;  %v2625_v52 = vadd.s32 752, %v6767_v3 }
 0x2c8   : >> { %v5227_v61 = vpack.c.bf16 %v3703_v17, %v3702_v63  ;;  %3466 = vperm.xlu0 %5400, %v3000_v11   ;;  %v5122_v16 = vpop.f32.mrb[86].mxu1  ;;  %v2751_v63 = vadd.s32 %v6777_v10, %v2622_v18  ;;  %v5233_v17 = vpack.c.bf16 %v3689_v0, %v3688_v2  ;;  %v3691_v11 = vmul.f32 %v6977_v20, %v7579_v28 }
 0x2c9   : >> { %v3152_v51 = vpop.permute.xlu1 %3151  ;;  %v2320_v6 = vpop.f32.mrb[87].mxu1  ;;  %v3003_v58 = vsel %vm2875_vm8, %v5122_v16, 0.0  ;;  %vm2877_vm10 = vcmp.lt.s32.totalorder %v2749_v12, 2496  ;;  %v3690_v18 = vmul.f32 %v6971_v7, %v7580_v27  ;;  %vm2878_vm11 = vcmp.lt.s32.totalorder %v2750_v21, 2496 }
 0x2ca   : >> { %v3705_v9 = vmul.f32 %v3152_v51, %v5804_v42  ;;  %v3002_v14 = vsel %vm2874_vm7, %v2320_v6, 0.0  ;;  %5228 = vmatprep.subr.bf16.mxu0 %v5227_v61  ;;  %v3157_v8 = vpop.permute.xlu0 %3156  ;;  %3471 = vperm.xlu1 %5401, %v3001_v62   ;;  %v2752_v20 = vadd.s32 %v6777_v10, %v2623_v5  ;;  %vm2879_vm12 = vcmp.lt.s32.totalorder %v2751_v63, 2496 }
 0x2cb   : >> { %5230 = vmatpush3.bf16.msra.mxu0 %v5229_v56  ;;  %v3706_v56 = vmul.f32 %v3157_v8, %v5809_v43  ;;  %v5237_v6 = vpack.c.bf16 %v3691_v11, %v3690_v18  ;;  %v2753_v7 = vadd.s32 %v6777_v10, %v2624_v53  ;;  %v2754_v55 = vadd.s32 %v6777_v10, %v2625_v52 }
 0x2cc   : >> { %v5231_v1 = vpack.c.bf16 %v3705_v9, %v3704_v35  ;;  %3476 = vperm.xlu0 %5400, %v3002_v14   ;;  %v5125_v22 = vpop.f32.mrb[88].mxu1  ;;  %vm2880_vm13 = vcmp.lt.s32.totalorder %v2752_v20, 2496  ;;  %v2627_v12 = vadd.s32 768, %v6767_v3  ;;  %v3694_v52 = vmul.f32 %v6987_v13, %v5749_v31 }
 0x2cd   : >> { %v3162_v4 = vpop.permute.xlu1 %3161  ;;  %v2330_v61 = vpop.f32.mrb[89].mxu1  ;;  %v3005_v35 = vsel %vm2877_vm10, %v5125_v22, 0.0  ;;  %vm2881_vm14 = vcmp.lt.s32.totalorder %v2753_v7, 2496  ;;  %vm2882_vm15 = vcmp.lt.s32.totalorder %v2754_v55, 2496  ;;  %v2629_v63 = vadd.s32 784, %v6767_v3  ;;  %v7581_v55 = vld [vmem:[#allocation143_spill] sm:$0xff] }
 0x2ce   : >> { %v3707_v59 = vmul.f32 %v3162_v4, %v5814_v44  ;;  %v3004_v62 = vsel %vm2876_vm9, %v2330_v61, 0.0  ;;  %5232 = vmatprep.subr.bf16.mxu0 %v5231_v1  ;;  %v3167_v51 = vpop.permute.xlu0 %3166  ;;  %3481 = vperm.xlu1 %5401, %v3003_v58   ;;  %v2626_v1 = vadd.s32 760, %v6767_v3  ;;  %v2628_v58 = vadd.s32 776, %v6767_v3 }
 0x2cf   : >> { %5234 = vmatpush3.bf16.msra.mxu0 %v5233_v17  ;;  %v3708_v8 = vmul.f32 %v3167_v51, %v5819_v45  ;;  %v3692_v17 = vmul.f32 %v6979_v57, %v5739_v29  ;;  %v3695_v61 = vmul.f32 %v6993_v60, %v5754_v32  ;;  %v2756_v60 = vadd.s32 %v6777_v10, %v2627_v12 }
 0x2d0   : >> { %v5235_v16 = vpack.c.bf16 %v3707_v59, %v3706_v56  ;;  %3486 = vperm.xlu0 %5400, %v3004_v62   ;;  %v5128_v0 = vpop.f32.mrb[90].mxu1  ;;  %v2755_v20 = vadd.s32 %v6777_v10, %v2626_v1  ;;  %v2630_v13 = vadd.s32 792, %v6767_v3  ;;  %v2631_v7 = vadd.s32 800, %v6767_v3 }
 0x2d1   : >> { %v3172_v9 = vpop.permute.xlu1 %3171  ;;  %v2340_v14 = vpop.f32.mrb[91].mxu1  ;;  %v5241_v4 = vpack.c.bf16 %v3693_v15, %v3692_v17  ;;  %v3007_v53 = vsel %vm2879_vm12, %v5128_v0, 0.0  ;;  %v5245_v15 = vpack.c.bf16 %v3695_v61, %v3694_v52  ;;  %v3696_v17 = vmul.f32 %v6995_v19, %v5759_v33 }
 0x2d2   : >> { %v3709_v2 = vmul.f32 %v3172_v9, %v5824_v46  ;;  %v3006_v21 = vsel %vm2878_vm11, %v2340_v14, 0.0  ;;  %5236 = vmatprep.subr.bf16.mxu0 %v5235_v16  ;;  %v3177_v5 = vpop.permute.xlu0 %3176  ;;  %3491 = vperm.xlu1 %5401, %v3005_v35   ;;  %v3697_v35 = vmul.f32 %v7001_v54, %v5764_v34  ;;  %vm2883_vm0 = vcmp.lt.s32.totalorder %v2755_v20, 2496 }
 0x2d3   : >> { %5238 = vmatpush3.bf16.msra.mxu0 %v5237_v6  ;;  %v3710_v59 = vmul.f32 %v3177_v5, %v5829_v47  ;;  %v2757_v6 = vadd.s32 %v6777_v10, %v2628_v58  ;;  %vm2884_vm1 = vcmp.lt.s32.totalorder %v2756_v60, 2496  ;;  %v2758_v54 = vadd.s32 %v6777_v10, %v2629_v63  ;;  %v7584_v60 = vld [vmem:[#allocation35_spill] sm:$0xff]  ;;  %v7585_v63 = vld [vmem:[#allocation142_spill] sm:$0xff] }
 0x2d4   : >> { %v5239_v22 = vpack.c.bf16 %v3709_v2, %v3708_v8  ;;  %3496 = vperm.xlu0 %5400, %v3006_v21   ;;  %v5131_v11 = vpop.f32.mrb[92].mxu1  ;;  %v3699_v58 = vmul.f32 %v7581_v55, %v5774_v36  ;;  %v2759_v19 = vadd.s32 %v6777_v10, %v2630_v13  ;;  %v2632_v52 = vadd.s32 808, %v6767_v3 }
 0x2d5   : >> { %v3182_v56 = vpop.permute.xlu1 %3181  ;;  %v2350_v57 = vpop.f32.mrb[93].mxu1  ;;  %v3009_v9 = vsel %vm2881_vm14, %v5131_v11, 0.0  ;;  %vm2885_vm2 = vcmp.lt.s32.totalorder %v2757_v6, 2496  ;;  %v5249_v11 = vpack.c.bf16 %v3697_v35, %v3696_v17  ;;  %vm2886_vm3 = vcmp.lt.s32.totalorder %v2758_v54, 2496 }
 0x2d6   : >> { %v3711_v62 = vmul.f32 %v3182_v56, %v5834_v48  ;;  %v3008_v51 = vsel %vm2880_vm13, %v2350_v57, 0.0  ;;  %5240 = vmatprep.subr.bf16.mxu0 %v5239_v22  ;;  %v3187_v18 = vpop.permute.xlu0 %3186  ;;  %3501 = vperm.xlu1 %5401, %v3007_v53   ;;  %v7582_v56 = vld [vmem:[#allocation36_spill] sm:$0xff]  ;;  %v2760_v20 = vadd.s32 %v6777_v10, %v2631_v7  ;;  %vm2887_vm4 = vcmp.lt.s32.totalorder %v2759_v19, 2496 }
 0x2d7   : >> { %5242 = vmatpush3.bf16.msra.mxu0 %v5241_v4  ;;  %v3712_v2 = vmul.f32 %v3187_v18, %v5839_v49  ;;  %v2635_v6 = vadd.s32 832, %v6767_v3  ;;  %v2637_v19 = vadd.s32 848, %v6767_v3 }
 0x2d8   : >> { %v5243_v16 = vpack.c.bf16 %v3711_v62, %v3710_v59  ;;  %3506 = vperm.xlu0 %5400, %v3008_v51   ;;  %v5134_v0 = vpop.f32.mrb[94].mxu1  ;;  %v7583_v59 = vld [vmem:[#allocation37_spill] sm:$0xff]  ;;  %vm2888_vm5 = vcmp.lt.s32.totalorder %v2760_v20, 2496 }
 0x2d9   : >> { %v3192_v14 = vpop.permute.xlu1 %3191  ;;  %v2360_v8 = vpop.f32.mrb[95].mxu1  ;;  %v3011_v4 = vsel %vm2883_vm0, %v5134_v0, 0.0  ;;  %v2633_v0 = vadd.s32 816, %v6767_v3  ;;  %v2766_v20 = vadd.s32 %v6777_v10, %v2637_v19 }
 0x2da   : >> { %v3713_v21 = vmul.f32 %v3192_v14, %v5844_v50  ;;  %v3010_v5 = vsel %vm2882_vm15, %v2360_v8, 0.0  ;;  %5244 = vmatprep.subr.bf16.mxu0 %v5243_v16  ;;  %v3197_v1 = vpop.permute.xlu0 %3196  ;;  %3511 = vperm.xlu1 %5401, %v3009_v9   ;;  %v3698_v16 = vmul.f32 %v7585_v63, %v7584_v60 }
 0x2db   : >> { %5246 = vmatpush3.bf16.msra.mxu0 %v5245_v15  ;;  %v3714_v57 = vmul.f32 %v3197_v1, %v7582_v56  ;;  %v2634_v1 = vadd.s32 824, %v6767_v3  ;;  %v2762_v17 = vadd.s32 %v6777_v10, %v2633_v0  ;;  %v7587_v56 = vld [vmem:[#allocation139_spill] sm:$0xff]  ;;  %v2639_v0 = vadd.s32 864, %v6767_v3 }
 0x2dc   : >> { %v5247_v12 = vpack.c.bf16 %v3713_v21, %v3712_v2  ;;  %3516 = vperm.xlu0 %5400, %v3010_v5   ;;  %v5137_v22 = vpop.f32.mrb[96].mxu1  ;;  %v5253_v9 = vpack.c.bf16 %v3699_v58, %v3698_v16  ;;  %v2761_v5 = vadd.s32 %v6777_v10, %v2632_v52  ;;  %v2638_v16 = vadd.s32 856, %v6767_v3 }
 0x2dd   : >> { %v3202_v61 = vpop.permute.xlu1 %3201  ;;  %v2370_v53 = vpop.f32.mrb[97].mxu1  ;;  %v3013_v14 = vsel %vm2885_vm2, %v5137_v22, 0.0  ;;  %v2763_v58 = vadd.s32 %v6777_v10, %v2634_v1  ;;  %vm2890_vm7 = vcmp.lt.s32.totalorder %v2762_v17, 2496  ;;  %v2640_v1 = vadd.s32 872, %v6767_v3 }
 0x2de   : >> { %v3715_v62 = vmul.f32 %v3202_v61, %v7583_v59  ;;  %v3012_v51 = vsel %vm2884_vm1, %v2370_v53, 0.0  ;;  %5248 = vmatprep.subr.bf16.mxu0 %v5247_v12  ;;  %v7098_v18 = vpop.permute.xlu0 %3206  ;;  %3521 = vperm.xlu1 %5401, %v3011_v4   ;;  %vm2889_vm6 = vcmp.lt.s32.totalorder %v2761_v5, 2496  ;;  %v2636_v4 = vadd.s32 840, %v6767_v3  ;;  %v7586_v61 = vld [vmem:[#allocation134_spill] sm:$0xff] }
 0x2df   : >> { %5250 = vmatpush3.bf16.msra.mxu0 %v5249_v11  ;;  %v2764_v53 = vadd.s32 %v6777_v10, %v2635_v6  ;;  %vm2891_vm8 = vcmp.lt.s32.totalorder %v2763_v58, 2496  ;;  %v2767_v5 = vadd.s32 %v6777_v10, %v2638_v16  ;;  %vm2894_vm11 = vcmp.lt.s32.totalorder %v2766_v20, 2496 }
 0x2e0   : >> { %v5251_v15 = vpack.c.bf16 %v3715_v62, %v3714_v57  ;;  %3526 = vperm.xlu0 %5400, %v3012_v51   ;;  %v5140_v35 = vpop.f32.mrb[98].mxu1  ;;  %v2765_v63 = vadd.s32 %v6777_v10, %v2636_v4  ;;  %v2768_v17 = vadd.s32 %v6777_v10, %v2639_v0  ;;  %v2769_v4 = vadd.s32 %v6777_v10, %v2640_v1 }
 0x2e1   : >> { %v7106_v8 = vpop.permute.xlu1 %3211  ;;  %v2380_v13 = vpop.f32.mrb[99].mxu1  ;;  %v3015_v7 = vsel %vm2887_vm4, %v5140_v35, 0.0  ;;  %vm2892_vm9 = vcmp.lt.s32.totalorder %v2764_v53, 2496  ;;  %vm2895_vm12 = vcmp.lt.s32.totalorder %v2767_v5, 2496  ;;  %v2643_v53 = vadd.s32 896, %v6767_v3 }
 0x2e2   : >> { %v3014_v2 = vsel %vm2886_vm3, %v2380_v13, 0.0  ;;  %5252 = vmatprep.subr.bf16.mxu0 %v5251_v15  ;;  %v7108_v21 = vpop.permute.xlu0 %3216  ;;  %3531 = vperm.xlu1 %5401, %v3013_v14   ;;  %vm2893_vm10 = vcmp.lt.s32.totalorder %v2765_v63, 2496  ;;  %vm2896_vm13 = vcmp.lt.s32.totalorder %v2768_v17, 2496  ;;  %vm2897_vm14 = vcmp.lt.s32.totalorder %v2769_v4, 2496 }
 0x2e3   : >> { %5254 = vmatpush3.bf16.msra.mxu0 %v5253_v9  ;;  %v2646_v16 = vadd.s32 920, %v6767_v3  ;;  %v2772_v20 = vadd.s32 %v6777_v10, %v2643_v53  ;;  %v2645_v0 = vadd.s32 912, %v6767_v3  ;;  %v2648_v5 = vadd.s32 936, %v6767_v3 }
 0x2e4   : >> { %3536 = vperm.xlu0 %5400, %v3014_v2   ;;  %v5143_v54 = vpop.f32.mrb[100].mxu1  ;;  %v3716_v26 = vmul.f32 %v7098_v18, %v7591_v25  ;;  %v7593_v25 = vld [vmem:[#allocation56_spill] sm:$0xff] }
 0x2e5   : >> { %v7114_v12 = vpop.permute.xlu1 %3221  ;;  %v2390_v22 = vpop.f32.mrb[101].mxu1  ;;  %v3017_v59 = vsel %vm2889_vm6, %v5143_v54, 0.0  ;;  %v2775_v17 = vadd.s32 %v6777_v10, %v2646_v16  ;;  %vm2900_vm0 = vcmp.lt.s32.totalorder %v2772_v20, 2496  ;;  %v2777_v53 = vadd.s32 %v6777_v10, %v2648_v5  ;;  %v7588_v20 = vld [vmem:[#allocation39_spill] sm:$0xff] }
 0x2e6   : >> { %v3016_v11 = vsel %vm2888_vm5, %v2390_v22, 0.0  ;;  %v7116_v55 = vpop.permute.xlu0 %3226  ;;  %3541 = vperm.xlu1 %5401, %v3015_v7   ;;  %3879 = vmatmul.mubr.f32.vlgmr.msra.gmra.mrb[128].mxu0 %v7586_v61  ;;  %v2644_v61 = vadd.s32 904, %v6767_v3 }
 0x2e7   : >> { %4018 = vmatprep.mubr.f32.mxu0 %v7587_v56  ;;  %vm2903_vm1 = vcmp.lt.s32.totalorder %v2775_v17, 2496  ;;  %vm2905_vm3 = vcmp.lt.s32.totalorder %v2777_v53, 2496  ;;  %v2653_v53 = vadd.s32 976, %v6767_v3 }
 0x2e8   : >> { %3546 = vperm.xlu0 %5400, %v3016_v11   ;;  %v5146_v57 = vpop.f32.mrb[102].mxu1  ;;  %v2773_v63 = vadd.s32 %v6777_v10, %v2644_v61 }
 0x2e9   : >> { %v7124_v62 = vpop.permute.xlu1 %3231  ;;  %v2400_v51 = vpop.f32.mrb[103].mxu1  ;;  %v3019_v35 = vsel %vm2891_vm8, %v5146_v57, 0.0 }
 0x2ea   : >> { %v3018_v52 = vsel %vm2890_vm7, %v2400_v51, 0.0  ;;  %v7126_v60 = vpop.permute.xlu0 %3236  ;;  %3551 = vperm.xlu1 %5401, %v3017_v59   ;;  %vm2901_vm15 = vcmp.lt.s32.totalorder %v2773_v63, 2496  ;;  %v2649_v63 = vadd.s32 944, %v6767_v3 }
 0x2ec   : >> { %3556 = vperm.xlu0 %5400, %v3018_v52   ;;  %v5149_v15 = vpop.f32.mrb[104].mxu1 }
 0x2ed   : >> { %v7132_v9 = vpop.permute.xlu1 %3241  ;;  %v2410_v14 = vpop.f32.mrb[105].mxu1  ;;  %v3021_v54 = vsel %vm2893_vm10, %v5149_v15, 0.0 }
 0x2ee   : >> { %v3020_v13 = vsel %vm2892_vm9, %v2410_v14, 0.0  ;;  %v7134_v2 = vpop.permute.xlu0 %3246  ;;  %3561 = vperm.xlu1 %5401, %v3019_v35  }
 0x2f0   : >> { %3566 = vperm.xlu0 %5400, %v3020_v13   ;;  %v5152_v6 = vpop.f32.mrb[106].mxu1 }
 0x2f1   : >> { %v7139_v7 = vpop.permute.xlu1 %3251  ;;  %v2420_v22 = vpop.f32.mrb[107].mxu1  ;;  %v3023_v56 = vsel %vm2895_vm12, %v5152_v6, 0.0  ;;  %v2774_v6 = vadd.s32 %v6777_v10, %v2645_v0  ;;  %v3717_v0 = vmul.f32 %v7106_v8, %v7588_v20  ;;  %v2778_v8 = vadd.s32 %v6777_v10, %v2649_v63 }
 0x2f2   : >> { %v3022_v11 = vsel %vm2894_vm11, %v2420_v22, 0.0  ;;  %v7141_v58 = vpop.permute.xlu0 %3256  ;;  %3571 = vperm.xlu1 %5401, %v3021_v54   ;;  %v2647_v54 = vadd.s32 928, %v6767_v3 }
 0x2f3   : >> { %vm2902_vm2 = vcmp.lt.s32.totalorder %v2774_v6, 2496  ;;  %vm2906_vm6 = vcmp.lt.s32.totalorder %v2778_v8, 2496 }
 0x2f4   : >> { %3576 = vperm.xlu0 %5400, %v3022_v11   ;;  %v5155_v19 = vpop.f32.mrb[108].mxu1 }
 0x2f5   : >> { %v7146_v57 = vpop.permute.xlu1 %3261  ;;  %v2430_v59 = vpop.f32.mrb[109].mxu1  ;;  %v3025_v35 = vsel %vm2897_vm14, %v5155_v19, 0.0  ;;  %v2650_v19 = vadd.s32 952, %v6767_v3 }
 0x2f6   : >> { %v3024_v51 = vsel %vm2896_vm13, %v2430_v59, 0.0  ;;  %v7148_v52 = vpop.permute.xlu0 %3266  ;;  %3581 = vperm.xlu1 %5401, %v3023_v56  }
 0x2f7   : >> { %v2779_v5 = vadd.s32 %v6777_v10, %v2650_v19 }
 0x2f8   : >> { %3586 = vperm.xlu0 %5400, %v3024_v51   ;;  %v7154_v15 = vpop.f32.mrb[110].mxu1  ;;  %v2776_v51 = vadd.s32 %v6777_v10, %v2647_v54  ;;  %v2652_v54 = vadd.s32 968, %v6767_v3 }
 0x2f9   : >> { %v7156_v14 = vpop.permute.xlu1 %3271  ;;  %v7158_v13 = vpop.f32.mrb[111].mxu1  ;;  %vm2907_vm5 = vcmp.lt.s32.totalorder %v2779_v5, 2496  ;;  %v2655_v5 = vadd.s32 992, %v6767_v3 }
 0x2fa   : >> { %v7161_v1 = vpop.permute.xlu0 %3276  ;;  %3591 = vperm.xlu1 %5401, %v3025_v35   ;;  %vm2904_vm4 = vcmp.lt.s32.totalorder %v2776_v51, 2496  ;;  %v7594_v51 = vld [vmem:[#allocation57_spill] sm:$0xff] }
 0x2fc   : >> { %v5161_v22 = vpop.f32.mrb[112].mxu1 }
 0x2fd   : >> { %v3029_v11 = vsel %vm2901_vm15, %v5161_v22, 0.0  ;;  %v7166_v4 = vpop.permute.xlu1 %3281  ;;  %v2450_v61 = vpop.f32.mrb[113].mxu1 }
 0x2fe   : >> { %v3028_v56 = vsel %vm2900_vm0, %v2450_v61, 0.0  ;;  %v3287_v59 = vpop.permute.xlu0 %3286  ;;  %3611 = vperm.xlu1 %5401, %v3029_v11   ;;  %v7589_v61 = vld [vmem:[#allocation54_spill] sm:$0xff]  ;;  %v7590_v11 = vld [vmem:[#allocation55_spill] sm:$0xff] }
 0x2ff   : >> { %3606 = vperm.xlu0 %5400, %v3028_v56   ;;  %v3732_v24 = vmul.f32 %v3287_v59, %v7589_v61  ;;  %v2654_v59 = vadd.s32 984, %v6767_v3  ;;  %v5257_v61 = vpack.c.bf16 %v3717_v0, %v3716_v26 }
 0x300   : >> { %v5164_v16 = vpop.f32.mrb[114].mxu1 }
 0x301   : >> { %v3031_v35 = vsel %vm2903_vm1, %v5164_v16, 0.0  ;;  %v3292_v22 = vpop.permute.xlu1 %3291  ;;  %v2460_v23 = vpop.f32.mrb[115].mxu1  ;;  %v2651_v16 = vadd.s32 960, %v6767_v3 }
 0x302   : >> { %v3733_v17 = vmul.f32 %v3292_v22, %v7590_v11  ;;  %v3030_v56 = vsel %vm2902_vm2, %v2460_v23, 0.0  ;;  %v3297_v6 = vpop.permute.xlu0 %3296  ;;  %3621 = vperm.xlu1 %5401, %v3031_v35   ;;  %v7592_v22 = vld [vmem:[#allocation41_spill] sm:$0xff] }
 0x303   : >> { %3616 = vperm.xlu0 %5400, %v3030_v56   ;;  %v3719_v23 = vmul.f32 %v7114_v12, %v7592_v22  ;;  %v3734_v18 = vmul.f32 %v3297_v6, %v7593_v25  ;;  %v2780_v12 = vadd.s32 %v6777_v10, %v2651_v16  ;;  %v7598_v25 = vld [vmem:[#allocation59_spill] sm:$0xff] }
 0x304   : >> { %v5255_v20 = vpack.c.bf16 %v3733_v17, %v3732_v24  ;;  %v5167_v19 = vpop.f32.mrb[116].mxu1  ;;  %v2781_v24 = vadd.s32 %v6777_v10, %v2652_v54  ;;  %v7595_v17 = vld [vmem:[#allocation40_spill] sm:$0xff] }
 0x305   : >> { %v3033_v35 = vsel %vm2905_vm3, %v5167_v19, 0.0  ;;  %v3302_v11 = vpop.permute.xlu1 %3301  ;;  %v2470_v27 = vpop.f32.mrb[117].mxu1  ;;  %v3718_v26 = vmul.f32 %v7108_v21, %v7595_v17  ;;  %v2783_v19 = vadd.s32 %v6777_v10, %v2654_v59  ;;  %v2656_v21 = vadd.s32 1000, %v6767_v3  ;;  %v7599_v59 = vld [vmem:[#allocation42_spill] sm:$0xff]  ;;  %v7600_v17 = vld [vmem:[#allocation45_spill] sm:$0xff] }
 0x306   : >> { %v3735_v56 = vmul.f32 %v3302_v11, %v7594_v51  ;;  %v3032_v63 = vsel %vm2904_vm4, %v2470_v27, 0.0  ;;  %5256 = vmatprep.subr.bf16.mxu1 %v5255_v20  ;;  %v3307_v28 = vpop.permute.xlu0 %3306  ;;  %3631 = vperm.xlu1 %5401, %v3033_v35   ;;  %v7596_v20 = vld [vmem:[#allocation43_spill] sm:$0xff]  ;;  %vm2909_vm7 = vcmp.lt.s32.totalorder %v2781_v24, 2496  ;;  %vm2908_vm8 = vcmp.lt.s32.totalorder %v2780_v12, 2496 }
 0x307   : >> { %5258 = vmatpush3.bf16.msra.mxu1 %v5257_v61  ;;  %3626 = vperm.xlu0 %5400, %v3032_v63   ;;  %v5261_v27 = vpack.c.bf16 %v3719_v23, %v3718_v26  ;;  %v3721_v22 = vmul.f32 %v7124_v62, %v7596_v20  ;;  %v7597_v61 = vld [vmem:[#allocation58_spill] sm:$0xff]  ;;  %v3720_v23 = vmul.f32 %v7116_v55, %v7599_v59  ;;  %vm2911_vm9 = vcmp.lt.s32.totalorder %v2783_v19, 2496  ;;  %v7601_v55 = vld [vmem:[#allocation60_spill] sm:$0xff] }
 0x308   : >> { %v5259_v0 = vpack.c.bf16 %v3735_v56, %v3734_v18  ;;  %v5170_v6 = vpop.f32.mrb[118].mxu1  ;;  %v3736_v8 = vmul.f32 %v3307_v28, %v7597_v61  ;;  %v2782_v62 = vadd.s32 %v6777_v10, %v2653_v53  ;;  %v3723_v26 = vmul.f32 %v7132_v9, %v7600_v17  ;;  %v7603_v61 = vld [vmem:[#allocation44_spill] sm:$0xff] }
 0x309   : >> { %v3035_v54 = vsel %vm2907_vm5, %v5170_v6, 0.0  ;;  %v3312_v35 = vpop.permute.xlu1 %3311  ;;  %v2480_v11 = vpop.f32.mrb[119].mxu1  ;;  %v5265_v28 = vpack.c.bf16 %v3721_v22, %v3720_v23  ;;  %v2785_v20 = vadd.s32 %v6777_v10, %v2656_v21  ;;  %v3722_v22 = vmul.f32 %v7126_v60, %v7603_v61  ;;  %v7605_v60 = vld [vmem:[#allocation62_spill] sm:$0xff] }
 0x30a   : >> { %v3737_v16 = vmul.f32 %v3312_v35, %v7598_v25  ;;  %v3034_v51 = vsel %vm2906_vm6, %v2480_v11, 0.0  ;;  %5260 = vmatprep.subr.bf16.mxu1 %v5259_v0  ;;  %v3317_v18 = vpop.permute.xlu0 %3316  ;;  %3641 = vperm.xlu1 %5401, %v3035_v54   ;;  %v7602_v54 = vld [vmem:[#allocation61_spill] sm:$0xff]  ;;  %v2658_v11 = vadd.s32 1016, %v6767_v3  ;;  %vm2910_vm10 = vcmp.lt.s32.totalorder %v2782_v62, 2496  ;;  %v7606_v62 = vld [vmem:[#allocation63_spill] sm:$0xff] }
 0x30b   : >> { %5262 = vmatpush3.bf16.msra.mxu1 %v5261_v27  ;;  %3636 = vperm.xlu0 %5400, %v3034_v51   ;;  %v3738_v27 = vmul.f32 %v3317_v18, %v7601_v55  ;;  %v2784_v9 = vadd.s32 %v6777_v10, %v2655_v5  ;;  %v2657_v21 = vadd.s32 1008, %v6767_v3  ;;  %v5269_v51 = vpack.c.bf16 %v3723_v26, %v3722_v22  ;;  %v7604_v18 = vld [vmem:[#allocation47_spill] sm:$0xff] }
 0x30c   : >> { %v5263_v56 = vpack.c.bf16 %v3737_v16, %v3736_v8  ;;  %v5173_v63 = vpop.f32.mrb[120].mxu1  ;;  %v2642_v8 = vadd.s32 888, %v6767_v3  ;;  %v3725_v59 = vmul.f32 %v7139_v7, %v7604_v18  ;;  %vm2913_vm11 = vcmp.lt.s32.totalorder %v2785_v20, 2496 }
 0x30d   : >> { %v3037_v0 = vsel %vm2909_vm7, %v5173_v63, 0.0  ;;  %v3322_v6 = vpop.permute.xlu1 %3321  ;;  %v2490_v24 = vpop.f32.mrb[121].mxu1  ;;  %v2641_v7 = vadd.s32 880, %v6767_v3  ;;  %vm2912_vm12 = vcmp.lt.s32.totalorder %v2784_v9, 2496  ;;  %v2786_v19 = vadd.s32 %v6777_v10, %v2657_v21  ;;  %v7610_v3 = vld [vmem:[#allocation65_spill] sm:$0xff]  ;;  %v7611_v21 = vld [vmem:[#allocation48_spill] sm:$0xff] }
 0x30e   : >> { %v3739_v12 = vmul.f32 %v3322_v6, %v7602_v54  ;;  %v3036_v35 = vsel %vm2908_vm8, %v2490_v24, 0.0  ;;  %5264 = vmatprep.subr.bf16.mxu1 %v5263_v56  ;;  %v3327_v53 = vpop.permute.xlu0 %3326  ;;  %3651 = vperm.xlu1 %5401, %v3037_v0   ;;  %v2787_v6 = vadd.s32 %v6777_v10, %v2658_v11  ;;  %v7607_v24 = vld [vmem:[#allocation46_spill] sm:$0xff]  ;;  %v3726_v18 = vmul.f32 %v7141_v58, %v7611_v21 }
 0x30f   : >> { %5266 = vmatpush3.bf16.msra.mxu1 %v5265_v28  ;;  %3646 = vperm.xlu0 %5400, %v3036_v35   ;;  %v3740_v28 = vmul.f32 %v3327_v53, %v7605_v60  ;;  %v3724_v26 = vmul.f32 %v7134_v2, %v7607_v24  ;;  %v2771_v53 = vadd.s32 %v6777_v10, %v2642_v8  ;;  %v7609_v2 = vld [vmem:[#allocation64_spill] sm:$0xff]  ;;  %vm2914_vm14 = vcmp.lt.s32.totalorder %v2786_v19, 2496  ;;  %v7616_v19 = vld [vmem:[#allocation53_spill] sm:$0xff] }
 0x310   : >> { %v5267_v25 = vpack.c.bf16 %v3739_v12, %v3738_v27  ;;  %v5176_v16 = vpop.f32.mrb[122].mxu1  ;;  %v7608_v12 = vld [vmem:[#allocation49_spill] sm:$0xff]  ;;  %vm2915_vm13 = vcmp.lt.s32.totalorder %v2787_v6, 2496  ;;  %v7615_v6 = vld [vmem:[#allocation50_spill] sm:$0xff] }
 0x311   : >> { %v3039_v23 = vsel %vm2911_vm9, %v5176_v16, 0.0  ;;  %v3332_v56 = vpop.permute.xlu1 %3331  ;;  %v2500_v63 = vpop.f32.mrb[123].mxu1  ;;  %v5273_v54 = vpack.c.bf16 %v3725_v59, %v3724_v26  ;;  %v3727_v35 = vmul.f32 %v7146_v57, %v7608_v12  ;;  %v2770_v57 = vadd.s32 %v6777_v10, %v2641_v7  ;;  %v7617_v12 = vld [vmem:[#allocation68_spill] sm:$0xff] }
 0x312   : >> { %v3741_v17 = vmul.f32 %v3332_v56, %v7606_v62  ;;  %v3038_v5 = vsel %vm2910_vm10, %v2500_v63, 0.0  ;;  %5268 = vmatprep.subr.bf16.mxu1 %v5267_v25  ;;  %v3337_v0 = vpop.permute.xlu0 %3336  ;;  %3661 = vperm.xlu1 %5401, %v3039_v23   ;;  %v7612_v23 = vld [vmem:[#allocation51_spill] sm:$0xff]  ;;  %vm2899_vm15 = vcmp.lt.s32.totalorder %v2771_v53, 2496  ;;  %v7613_v62 = vld [vmem:[#allocation66_spill] sm:$0xff]  ;;  %v3728_v24 = vmul.f32 %v7148_v52, %v7615_v6  ;;  %v7618_v53 = vld [vmem:[#allocation69_spill] sm:$0xff] }
 0x313   : >> { %5270 = vmatpush3.bf16.msra.mxu1 %v5269_v51  ;;  %3656 = vperm.xlu0 %5400, %v3038_v5   ;;  %v3742_v25 = vmul.f32 %v3337_v0, %v7609_v2  ;;  %v5277_v59 = vpack.c.bf16 %v3727_v35, %v3726_v18  ;;  %v3729_v56 = vmul.f32 %v7156_v14, %v7612_v23  ;;  %v7614_v5 = vld [vmem:[#allocation67_spill] sm:$0xff]  ;;  %vm2898_vm0 = vcmp.lt.s32.totalorder %v2770_v57, 2496  ;;  %v7619_v52 = vld [vmem:[#allocation52_spill] sm:$0xff]  ;;  %v7625_v6 = vld [vmem:[#allocation70_spill] sm:$0xff] }
 0x314   : >> { %v5271_v55 = vpack.c.bf16 %v3741_v17, %v3740_v28  ;;  %v5179_v27 = vpop.f32.mrb[124].mxu1  ;;  %v3027_v7 = vsel %vm2899_vm15, %v7154_v15, 0.0 }
 0x315   : >> { %v3041_v11 = vsel %vm2913_vm11, %v5179_v27, 0.0  ;;  %v3342_v61 = vpop.permute.xlu1 %3341  ;;  %v2510_v22 = vpop.f32.mrb[125].mxu1  ;;  %v5281_v14 = vpack.c.bf16 %v3729_v56, %v3728_v24 }
 0x316   : >> { %v3743_v16 = vmul.f32 %v3342_v61, %v7610_v3  ;;  %v3040_v51 = vsel %vm2912_vm12, %v2510_v22, 0.0  ;;  %5272 = vmatprep.subr.bf16.mxu1 %v5271_v55  ;;  %v3347_v9 = vpop.permute.xlu0 %3346  ;;  %3671 = vperm.xlu1 %5401, %v3041_v11   ;;  %v3731_v55 = vmul.f32 %v7166_v4, %v7616_v19  ;;  %v3730_v22 = vmul.f32 %v7161_v1, %v7619_v52  ;;  %v7626_v19 = vld [vmem:[#allocation73_spill] sm:$0xff] }
 0x317   : >> { %5274 = vmatpush3.bf16.msra.mxu1 %v5273_v54  ;;  %3666 = vperm.xlu0 %5400, %v3040_v51   ;;  %v3744_v17 = vmul.f32 %v3347_v9, %v7613_v62  ;;  %v3026_v54 = vsel %vm2898_vm0, %v7158_v13, 0.0  ;;  %v7620_v13 = vld [vmem:[#allocation136_spill] sm:$0xff]  ;;  %v7621_v51 = vld [vmem:[#allocation141_spill] sm:$0xff] }
 0x318   : >> { %v5275_v20 = vpack.c.bf16 %v3743_v16, %v3742_v25  ;;  %v5182_v8 = vpop.f32.mrb[126].mxu1  ;;  %v5285_v15 = vpack.c.bf16 %v3731_v55, %v3730_v22 }
 0x319   : >> { %v3043_v63 = vsel %vm2915_vm13, %v5182_v8, 0.0  ;;  %v3352_v60 = vpop.permute.xlu1 %3351  ;;  %v2520_v28 = vpop.f32.mrb[127].mxu1 }
 0x31a   : >> { %v3745_v0 = vmul.f32 %v3352_v60, %v7614_v5  ;;  %v3042_v58 = vsel %vm2914_vm14, %v2520_v28, 0.0  ;;  %5276 = vmatprep.subr.bf16.mxu1 %v5275_v20  ;;  %v3357_v10 = vpop.permute.xlu0 %3356  ;;  %3681 = vperm.xlu1 %5401, %v3043_v63   ;;  %v7622_v28 = vld [vmem:[#allocation71_spill] sm:$0xff]  ;;  %v7623_v5 = vld [vmem:[#allocation86_spill] sm:$0xff] }
 0x31b   : >> { %5278 = vmatpush3.bf16.msra.mxu1 %v5277_v59  ;;  %3676 = vperm.xlu0 %5400, %v3042_v58   ;;  %v3746_v35 = vmul.f32 %v3357_v10, %v7617_v12  ;;  %v7624_v58 = vld [vmem:[#allocation87_spill] sm:$0xff] }
 0x31c   : >> { %v5279_v26 = vpack.c.bf16 %v3745_v0, %v3744_v17 }
 0x31d   : >> { %v3362_v27 = vpop.permute.xlu1 %3361 }
 0x31e   : >> { %v3747_v11 = vmul.f32 %v3362_v27, %v7618_v53  ;;  %5280 = vmatprep.subr.bf16.mxu1 %v5279_v26  ;;  %v3367_v61 = vpop.permute.xlu0 %3366  ;;  %3601 = vperm.xlu1 %5401, %v3027_v7  }
 0x31f   : >> { %5282 = vmatpush3.bf16.msra.mxu1 %v5281_v14  ;;  %3596 = vperm.xlu0 %5400, %v3026_v54   ;;  %v3748_v24 = vmul.f32 %v3367_v61, %v7625_v6  ;;  %v7627_v54 = vld [vmem:[#allocation88_spill] sm:$0xff] }
 0x320   : >> { %v5283_v2 = vpack.c.bf16 %v3747_v11, %v3746_v35  ;;  %v7628_v35 = vld [vmem:[#allocation89_spill] sm:$0xff]  ;;  %v7629_v11 = vld [vmem:[#allocation72_spill] sm:$0xff] }
 0x321   : >> { %v3372_v25 = vpop.permute.xlu1 %3371 }
 0x322   : >> { %5284 = vmatprep.subr.bf16.mxu1 %v5283_v2  ;;  %v3749_v62 = vmul.f32 %v3372_v25, %v7622_v28  ;;  %v7630_v25 = vld [vmem:[#allocation75_spill] sm:$0xff] }
 0x323   : >> { %v3377_v4 = vpop.permute.xlu0 %3376  ;;  %5286 = vmatpush3.bf16.msra.mxu1 %v5285_v15  ;;  %v7632_v28 = vld [vmem:[#allocation91_spill] sm:$0xff] }
 0x324   : >> { %v5289_v7 = vpack.c.bf16 %v3749_v62, %v3748_v24  ;;  %v3750_v52 = vmul.f32 %v3377_v4, %v7629_v11  ;;  %v7635_v24 = vld [vmem:[#allocation92_spill] sm:$0xff] }
 0x325   : >> { %v3382_v3 = vpop.permute.xlu1 %3381 }
 0x326   : >> { %3949 = vmatmul.mubr.f32.vlgmr.msra.gmra.mrb[128].mxu1 %v7620_v13  ;;  %v3751_v55 = vmul.f32 %v3382_v3, %v7626_v19  ;;  %v7633_v3 = vld [vmem:[#allocation74_spill] sm:$0xff] }
 0x327   : >> { %v3387_v16 = vpop.permute.xlu0 %3386  ;;  %4088 = vmatprep.mubr.f32.mxu1 %v7621_v51  ;;  %v7631_v51 = vld [vmem:[#allocation90_spill] sm:$0xff] }
 0x328   : >> { %v5293_v15 = vpack.c.bf16 %v3751_v55, %v3750_v52  ;;  %v7640_v52 = vld [vmem:[#allocation95_spill] sm:$0xff] }
 0x329   : >> { %v3392_v9 = vpop.permute.xlu1 %3391 }
 0x32a   : >> { %v3753_v13 = vmul.f32 %v3392_v9, %v7630_v25  ;;  %v7637_v9 = vld [vmem:[#allocation76_spill] sm:$0xff] }
 0x32b   : >> { %v3397_v21 = vpop.permute.xlu0 %3396 }
 0x32c   : >> { %v3754_v19 = vmul.f32 %v3397_v21, %v7637_v9 }
 0x32d   : >> { %v3402_v18 = vpop.permute.xlu1 %3401 }
 0x32f   : >> { %v3407_v57 = vpop.permute.xlu0 %3406 }
 0x331   : >> { %v3412_v20 = vpop.permute.xlu1 %3411 }
 0x333   : >> { %v3417_v1 = vpop.permute.xlu0 %3416 }
 0x335   : >> { %v3422_v8 = vpop.permute.xlu1 %3421 }
 0x337   : >> { %v7250_v59 = vpop.permute.xlu0 %3426 }
 0x339   : >> { %v3432_v23 = vpop.permute.xlu1 %3431 }
 0x33b   : >> { %v7252_v56 = vpop.permute.xlu0 %3436 }
 0x33d   : >> { %v7254_v63 = vpop.permute.xlu1 %3441 }
 0x33f   : >> { %v3447_v60 = vpop.permute.xlu0 %3446 }
 0x340   : >> { %v3764_v0 = vmul.f32 %v3447_v60, %v7623_v5 }
 0x341   : >> { %v3452_v17 = vpop.permute.xlu1 %3451 }
 0x342   : >> { %v3765_v10 = vmul.f32 %v3452_v17, %v7624_v58  ;;  %v3752_v17 = vmul.f32 %v3387_v16, %v7633_v3 }
 0x343   : >> { %v3457_v26 = vpop.permute.xlu0 %3456 }
 0x344   : >> { %v5287_v14 = vpack.c.bf16 %v3765_v10, %v3764_v0  ;;  %v3766_v12 = vmul.f32 %v3457_v26, %v7627_v54  ;;  %v5297_v58 = vpack.c.bf16 %v3753_v13, %v3752_v17  ;;  %v7634_v10 = vld [vmem:[#allocation77_spill] sm:$0xff] }
 0x345   : >> { %v3462_v27 = vpop.permute.xlu1 %3461  ;;  %v3755_v4 = vmul.f32 %v3402_v18, %v7634_v10  ;;  %v7641_v18 = vld [vmem:[#allocation78_spill] sm:$0xff]  ;;  %v7646_v10 = vld [vmem:[#allocation83_spill] sm:$0xff] }
 0x346   : >> { %v3767_v53 = vmul.f32 %v3462_v27, %v7628_v35  ;;  %5288 = vmatprep.subr.bf16.mxu0 %v5287_v14  ;;  %v7636_v14 = vld [vmem:[#allocation93_spill] sm:$0xff] }
 0x347   : >> { %v3467_v22 = vpop.permute.xlu0 %3466  ;;  %5290 = vmatpush3.bf16.msra.mxu0 %v5289_v7  ;;  %v5301_v54 = vpack.c.bf16 %v3755_v4, %v3754_v19 }
 0x348   : >> { %v5291_v2 = vpack.c.bf16 %v3767_v53, %v3766_v12  ;;  %v3768_v60 = vmul.f32 %v3467_v22, %v7631_v51  ;;  %v7638_v12 = vld [vmem:[#allocation79_spill] sm:$0xff]  ;;  %v7639_v53 = vld [vmem:[#allocation94_spill] sm:$0xff] }
 0x349   : >> { %v3472_v61 = vpop.permute.xlu1 %3471  ;;  %v3757_v16 = vmul.f32 %v3412_v20, %v7638_v12  ;;  %v7645_v20 = vld [vmem:[#allocation80_spill] sm:$0xff] }
 0x34a   : >> { %v3769_v62 = vmul.f32 %v3472_v61, %v7632_v28  ;;  %5292 = vmatprep.subr.bf16.mxu0 %v5291_v2  ;;  %v3756_v2 = vmul.f32 %v3407_v57, %v7641_v18  ;;  %v7642_v61 = vld [vmem:[#allocation81_spill] sm:$0xff]  ;;  %v3758_v17 = vmul.f32 %v3417_v1, %v7645_v20  ;;  %v3761_v57 = vmul.f32 %v3432_v23, %v7646_v10  ;;  %v7651_v12 = vld [vmem:[#allocation100_spill] sm:$0xff] }
 0x34b   : >> { %v3477_v5 = vpop.permute.xlu0 %3476  ;;  %5294 = vmatpush3.bf16.msra.mxu0 %v5293_v15  ;;  %v3759_v21 = vmul.f32 %v3422_v8, %v7642_v61  ;;  %v7649_v8 = vld [vmem:[#allocation82_spill] sm:$0xff]  ;;  %v7650_v1 = vld [vmem:[#allocation85_spill] sm:$0xff] }
 0x34c   : >> { %v5295_v0 = vpack.c.bf16 %v3769_v62, %v3768_v60  ;;  %v3770_v26 = vmul.f32 %v3477_v5, %v7635_v24  ;;  %v5305_v13 = vpack.c.bf16 %v3757_v16, %v3756_v2  ;;  %v7643_v60 = vld [vmem:[#allocation96_spill] sm:$0xff]  ;;  %v7644_v62 = vld [vmem:[#allocation97_spill] sm:$0xff] }
 0x34d   : >> { %v3482_v6 = vpop.permute.xlu1 %3481  ;;  %v7652_v23 = vld [vmem:[#allocation101_spill] sm:$0xff] }
 0x34e   : >> { %v3771_v7 = vmul.f32 %v3482_v6, %v7636_v14  ;;  %5296 = vmatprep.subr.bf16.mxu0 %v5295_v0  ;;  %v7647_v6 = vld [vmem:[#allocation98_spill] sm:$0xff] }
 0x34f   : >> { %v3487_v55 = vpop.permute.xlu0 %3486  ;;  %5298 = vmatpush3.bf16.msra.mxu0 %v5297_v58  ;;  %v5309_v58 = vpack.c.bf16 %v3759_v21, %v3758_v17  ;;  %v7655_v17 = vld [vmem:[#allocation103_spill] sm:$0xff] }
 0x350   : >> { %v5299_v27 = vpack.c.bf16 %v3771_v7, %v3770_v26  ;;  %v3772_v11 = vmul.f32 %v3487_v55, %v7639_v53  ;;  %v7648_v26 = vld [vmem:[#allocation99_spill] sm:$0xff]  ;;  %v3760_v7 = vmul.f32 %v7250_v59, %v7649_v8  ;;  %v7653_v53 = vld [vmem:[#allocation84_spill] sm:$0xff] }
 0x351   : >> { %v3492_v35 = vpop.permute.xlu1 %3491 }
 0x352   : >> { %v3773_v22 = vmul.f32 %v3492_v35, %v7640_v52  ;;  %5300 = vmatprep.subr.bf16.mxu0 %v5299_v27  ;;  %v5313_v55 = vpack.c.bf16 %v3761_v57, %v3760_v7  ;;  %v3763_v27 = vmul.f32 %v7254_v63, %v7650_v1  ;;  %v7657_v57 = vld [vmem:[#allocation118_spill] sm:$0xff]  ;;  %v7659_v7 = vld [vmem:[#allocation105_spill] sm:$0xff] }
 0x353   : >> { %v3497_v15 = vpop.permute.xlu0 %3496  ;;  %5302 = vmatpush3.bf16.msra.mxu0 %v5301_v54 }
 0x354   : >> { %v5303_v25 = vpack.c.bf16 %v3773_v22, %v3772_v11  ;;  %v3774_v28 = vmul.f32 %v3497_v15, %v7643_v60  ;;  %v3762_v11 = vmul.f32 %v7252_v56, %v7653_v53 }
 0x355   : >> { %v3502_v51 = vpop.permute.xlu1 %3501 }
 0x356   : >> { %v3775_v3 = vmul.f32 %v3502_v51, %v7644_v62  ;;  %5304 = vmatprep.subr.bf16.mxu0 %v5303_v25  ;;  %v5317_v59 = vpack.c.bf16 %v3763_v27, %v3762_v11  ;;  %v7654_v25 = vld [vmem:[#allocation138_spill] sm:$0xff]  ;;  %v7661_v27 = vld [vmem:[#allocation120_spill] sm:$0xff]  ;;  %v7663_v11 = vld [vmem:[#allocation107_spill] sm:$0xff] }
 0x357   : >> { %v3507_v5 = vpop.permute.xlu0 %3506  ;;  %5306 = vmatpush3.bf16.msra.mxu0 %v5305_v13 }
 0x358   : >> { %v5307_v0 = vpack.c.bf16 %v3775_v3, %v3774_v28  ;;  %v3776_v24 = vmul.f32 %v3507_v5, %v7647_v6  ;;  %v7658_v6 = vld [vmem:[#allocation102_spill] sm:$0xff] }
 0x359   : >> { %v3512_v4 = vpop.permute.xlu1 %3511 }
 0x35a   : >> { %v3777_v14 = vmul.f32 %v3512_v4, %v7648_v26  ;;  %5308 = vmatprep.subr.bf16.mxu0 %v5307_v0  ;;  %v7656_v0 = vld [vmem:[#allocation119_spill] sm:$0xff] }
 0x35b   : >> { %v3517_v9 = vpop.permute.xlu0 %3516  ;;  %5310 = vmatpush3.bf16.msra.mxu0 %v5309_v58 }
 0x35c   : >> { %v5311_v19 = vpack.c.bf16 %v3777_v14, %v3776_v24  ;;  %v3778_v16 = vmul.f32 %v3517_v9, %v7651_v12  ;;  %v7662_v12 = vld [vmem:[#allocation104_spill] sm:$0xff] }
 0x35d   : >> { %v3522_v54 = vpop.permute.xlu1 %3521 }
 0x35e   : >> { %v3779_v35 = vmul.f32 %v3522_v54, %v7652_v23  ;;  %5312 = vmatprep.subr.bf16.mxu0 %v5311_v19  ;;  %v7660_v19 = vld [vmem:[#allocation121_spill] sm:$0xff] }
 0x35f   : >> { %v3527_v52 = vpop.permute.xlu0 %3526  ;;  %5314 = vmatpush3.bf16.msra.mxu0 %v5313_v55 }
 0x360   : >> { %v5315_v22 = vpack.c.bf16 %v3779_v35, %v3778_v16  ;;  %v3780_v24 = vmul.f32 %v3527_v52, %v7658_v6  ;;  %v7664_v52 = vld [vmem:[#allocation123_spill] sm:$0xff] }
 0x361   : >> { %v3532_v18 = vpop.permute.xlu1 %3531 }
 0x362   : >> { %5316 = vmatprep.subr.bf16.mxu0 %v5315_v22  ;;  %v3781_v5 = vmul.f32 %v3532_v18, %v7655_v17 }
 0x363   : >> { %v3537_v2 = vpop.permute.xlu0 %3536  ;;  %5318 = vmatpush3.bf16.msra.mxu0 %v5317_v59 }
 0x364   : >> { %v5321_v8 = vpack.c.bf16 %v3781_v5, %v3780_v24  ;;  %v3782_v16 = vmul.f32 %v3537_v2, %v7662_v12  ;;  %v7669_v24 = vld [vmem:[#allocation124_spill] sm:$0xff] }
 0x365   : >> { %v3542_v15 = vpop.permute.xlu1 %3541 }
 0x366   : >> { %4019 = vmatmul.mubr.f32.vlgmr.msra.gmra.mrb[130].mxu0 %v7654_v25  ;;  %v3783_v9 = vmul.f32 %v3542_v15, %v7659_v7  ;;  %v7665_v25 = vld [vmem:[#allocation122_spill] sm:$0xff] }
 0x367   : >> { %v3547_v63 = vpop.permute.xlu0 %3546  ;;  %v7666_v15 = vld [vmem:[#allocation106_spill] sm:$0xff] }
 0x368   : >> { %v5325_v53 = vpack.c.bf16 %v3783_v9, %v3782_v16  ;;  %v3784_v17 = vmul.f32 %v3547_v63, %v7666_v15 }
 0x369   : >> { %v3552_v13 = vpop.permute.xlu1 %3551 }
 0x36a   : >> { %v3785_v22 = vmul.f32 %v3552_v13, %v7663_v11  ;;  %v7670_v13 = vld [vmem:[#allocation108_spill] sm:$0xff]  ;;  %v7675_v11 = vld [vmem:[#allocation113_spill] sm:$0xff] }
 0x36b   : >> { %v3557_v61 = vpop.permute.xlu0 %3556 }
 0x36d   : >> { %v3562_v21 = vpop.permute.xlu1 %3561 }
 0x36f   : >> { %v3567_v51 = vpop.permute.xlu0 %3566 }
 0x371   : >> { %v3572_v60 = vpop.permute.xlu1 %3571 }
 0x373   : >> { %v3577_v28 = vpop.permute.xlu0 %3576 }
 0x375   : >> { %v3582_v62 = vpop.permute.xlu1 %3581 }
 0x377   : >> { %v7292_v3 = vpop.permute.xlu0 %3586 }
 0x379   : >> { %v3592_v56 = vpop.permute.xlu1 %3591 }
 0x37d   : >> { %v3612_v20 = vpop.permute.xlu1 %3611 }
 0x37e   : >> { %v3797_v58 = vmul.f32 %v3612_v20, %v7656_v0  ;;  %v3607_v10 = vpop.permute.xlu0 %3606 }
 0x37f   : >> { %v3796_v4 = vmul.f32 %v3607_v10, %v7657_v57  ;;  %v7667_v10 = vld [vmem:[#allocation109_spill] sm:$0xff] }
 0x380   : >> { %v3787_v2 = vmul.f32 %v3562_v21, %v7667_v10  ;;  %v7668_v57 = vld [vmem:[#allocation125_spill] sm:$0xff]  ;;  %v7674_v21 = vld [vmem:[#allocation110_spill] sm:$0xff] }
 0x381   : >> { %v5319_v26 = vpack.c.bf16 %v3797_v58, %v3796_v4  ;;  %v3622_v14 = vpop.permute.xlu1 %3621  ;;  %v5329_v58 = vpack.c.bf16 %v3785_v22, %v3784_v17  ;;  %v3788_v16 = vmul.f32 %v3567_v51, %v7674_v21  ;;  %v7676_v22 = vld [vmem:[#allocation129_spill] sm:$0xff] }
 0x382   : >> { %v3799_v55 = vmul.f32 %v3622_v14, %v7660_v19  ;;  %v3617_v1 = vpop.permute.xlu0 %3616  ;;  %v3786_v14 = vmul.f32 %v3557_v61, %v7670_v13  ;;  %v7671_v19 = vld [vmem:[#allocation111_spill] sm:$0xff]  ;;  %v3791_v61 = vmul.f32 %v3582_v62, %v7675_v11  ;;  %v7682_v62 = vld [vmem:[#allocation114_spill] sm:$0xff] }
 0x383   : >> { %v3798_v54 = vmul.f32 %v3617_v1, %v7661_v27  ;;  %5320 = vmatprep.subr.bf16.mxu1 %v5319_v26  ;;  %v3789_v63 = vmul.f32 %v3572_v60, %v7671_v19  ;;  %v7678_v60 = vld [vmem:[#allocation112_spill] sm:$0xff] }
 0x384   : >> { %5322 = vmatpush3.bf16.msra.mxu1 %v5321_v8  ;;  %v5333_v9 = vpack.c.bf16 %v3787_v2, %v3786_v14 }
 0x385   : >> { %v5323_v23 = vpack.c.bf16 %v3799_v55, %v3798_v54  ;;  %v3632_v35 = vpop.permute.xlu1 %3631  ;;  %v7672_v55 = vld [vmem:[#allocation127_spill] sm:$0xff]  ;;  %v7673_v54 = vld [vmem:[#allocation126_spill] sm:$0xff] }
 0x386   : >> { %v3801_v59 = vmul.f32 %v3632_v35, %v7664_v52  ;;  %v3627_v18 = vpop.permute.xlu0 %3626 }
 0x387   : >> { %v3800_v20 = vmul.f32 %v3627_v18, %v7665_v25  ;;  %5324 = vmatprep.subr.bf16.mxu1 %v5323_v23  ;;  %v7677_v18 = vld [vmem:[#allocation128_spill] sm:$0xff] }
 0x388   : >> { %5326 = vmatpush3.bf16.msra.mxu1 %v5325_v53  ;;  %v5337_v53 = vpack.c.bf16 %v3789_v63, %v3788_v16  ;;  %v7685_v63 = vld [vmem:[#allocation117_spill] sm:$0xff] }
 0x389   : >> { %v5327_v5 = vpack.c.bf16 %v3801_v59, %v3800_v20  ;;  %v3642_v0 = vpop.permute.xlu1 %3641  ;;  %v3790_v20 = vmul.f32 %v3577_v28, %v7678_v60  ;;  %v7683_v28 = vld [vmem:[#allocation133_spill] sm:$0xff] }
 0x38a   : >> { %v3803_v4 = vmul.f32 %v3642_v0, %v7668_v57  ;;  %v3637_v6 = vpop.permute.xlu0 %3636  ;;  %v7679_v0 = vld [vmem:[#allocation115_spill] sm:$0xff]  ;;  %v7681_v57 = vld [vmem:[#allocation130_spill] sm:$0xff] }
 0x38b   : >> { %v3802_v26 = vmul.f32 %v3637_v6, %v7669_v24  ;;  %5328 = vmatprep.subr.bf16.mxu1 %v5327_v5  ;;  %v5341_v5 = vpack.c.bf16 %v3791_v61, %v3790_v20  ;;  %v3793_v51 = vmul.f32 %v3592_v56, %v7679_v0  ;;  %v3792_v6 = vmul.f32 %v7292_v3, %v7682_v62 }
 0x38c   : >> { %5330 = vmatpush3.bf16.msra.mxu1 %v5329_v58  ;;  %v7680_v58 = vld [vmem:[#allocation131_spill] sm:$0xff] }
 0x38d   : >> { %v5331_v8 = vpack.c.bf16 %v3803_v4, %v3802_v26  ;;  %v3652_v7 = vpop.permute.xlu1 %3651  ;;  %v5345_v13 = vpack.c.bf16 %v3793_v51, %v3792_v6 }
 0x38e   : >> { %v3805_v1 = vmul.f32 %v3652_v7, %v7672_v55  ;;  %v3647_v27 = vpop.permute.xlu0 %3646  ;;  %v7684_v7 = vld [vmem:[#allocation132_spill] sm:$0xff] }
 0x38f   : >> { %v3804_v12 = vmul.f32 %v3647_v27, %v7673_v54  ;;  %5332 = vmatprep.subr.bf16.mxu1 %v5331_v8  ;;  %v7686_v27 = vld [vmem:[#allocation116_spill] sm:$0xff] }
 0x390   : >> { %5334 = vmatpush3.bf16.msra.mxu1 %v5333_v9 }
 0x391   : >> { %v5335_v23 = vpack.c.bf16 %v3805_v1, %v3804_v12  ;;  %v3662_v35 = vpop.permute.xlu1 %3661  ;;  %v7687_v12 = vld [vmem:[#allocation140_spill] sm:$0xff] }
 0x392   : >> { %v3807_v52 = vmul.f32 %v3662_v35, %v7676_v22  ;;  %v3657_v59 = vpop.permute.xlu0 %3656  ;;  %v3813_v35 = vstv %s5627_s23 }
 0x393   : >> { %v3806_v25 = vmul.f32 %v3657_v59, %v7677_v18  ;;  %5336 = vmatprep.subr.bf16.mxu1 %v5335_v23 }
 0x394   : >> { %5338 = vmatpush3.bf16.msra.mxu1 %v5337_v53 }
 0x395   : >> { %v5339_v15 = vpack.c.bf16 %v3807_v52, %v3806_v25  ;;  %v3672_v17 = vpop.permute.xlu1 %3671 }
 0x396   : >> { %v3809_v10 = vmul.f32 %v3672_v17, %v7680_v58  ;;  %v3667_v2 = vpop.permute.xlu0 %3666 }
 0x397   : >> { %v3808_v4 = vmul.f32 %v3667_v2, %v7681_v57  ;;  %5340 = vmatprep.subr.bf16.mxu1 %v5339_v15 }
 0x398   : >> { %5342 = vmatpush3.bf16.msra.mxu1 %v5341_v5 }
 0x399   : >> { %v5343_v24 = vpack.c.bf16 %v3809_v10, %v3808_v4  ;;  %v3682_v26 = vpop.permute.xlu1 %3681 }
 0x39a   : >> { %v3811_v14 = vmul.f32 %v3682_v26, %v7683_v28  ;;  %v3677_v8 = vpop.permute.xlu0 %3676 }
 0x39b   : >> { %v3810_v9 = vmul.f32 %v3677_v8, %v7684_v7  ;;  %5344 = vmatprep.subr.bf16.mxu1 %v5343_v24 }
 0x39c   : >> { %5346 = vmatpush3.bf16.msra.mxu1 %v5345_v13 }
 0x39d   : >> { %v5347_v56 = vpack.c.bf16 %v3811_v14, %v3810_v9  ;;  %v3602_v19 = vpop.permute.xlu1 %3601 }
 0x39e   : >> { %v3795_v55 = vmul.f32 %v3602_v19, %v7685_v63  ;;  %v3597_v1 = vpop.permute.xlu0 %3596 }
 0x39f   : >> { %v3794_v54 = vmul.f32 %v3597_v1, %v7686_v27  ;;  %5348 = vmatprep.subr.bf16.mxu1 %v5347_v56 }
 0x3a1   : >> { %v5349_v3 = vpack.c.bf16 %v3795_v55, %v3794_v54 }
 0x3a3   : >> { %5350 = vmatpush3.bf16.msra.mxu1 %v5349_v3 }
 0x3a6   : >> { %4089 = vmatmul.mubr.f32.vlgmr.msra.gmra.mrb[130].mxu1 %v7687_v12 }
 0x3b9   : >> { %v4651_v21 = vpop.f32.mrb[128].mxu0 }
 0x3ba   : >> { %v4652_v16 = vpop.f32.mrb[129].mxu0 }
 0x3bb   : >> { %v4653_v23 = vadd.f32 %v4652_v16, %v4651_v21 }
 0x3bd   : >> { %v3881_v53 = vadd.f32 %v4653_v23, %v3813_v35 }
 0x3f9   : >> { %v4686_v11 = vpop.f32.mrb[128].mxu1 }
 0x3fa   : >> { %v4687_v61 = vpop.f32.mrb[129].mxu1 }
 0x3fb   : >> { %v4688_v22 = vadd.f32 %v4687_v61, %v4686_v11 }
 0x3fd   : >> { %v3951_v52 = vadd.f32 %v4688_v22, %v3881_v53 }
 0x439   : >> { %v4721_v59 = vpop.f32.mrb[130].mxu0 }
 0x43a   : >> { %v4722_v18 = vpop.f32.mrb[131].mxu0 }
 0x43b   : >> { %v4723_v25 = vadd.f32 %v4722_v18, %v4721_v59 }
 0x43d   : >> { %v4021_v60 = vadd.f32 %v4723_v25, %v3951_v52 }
 0x479   : >> { %v4756_v20 = vpop.f32.mrb[130].mxu1 }
 0x47a   : >> { %v4757_v15 = vpop.f32.mrb[131].mxu1 }
 0x47b   : >> { %v4758_v17 = vadd.f32 %v4757_v15, %v4756_v20 }
 0x47d   : >> { %v4091_v5 = vadd.f32 %v4758_v17, %v4021_v60 }
 0x47f   : >> { %v4332_v0 = vmul.f32 -1.442695, %v4091_v5 }
 0x481   : >> { %5402 = vpow2.f32 %v4332_v0 }
 0x48b   : >> { %v5403_v51 = vpop.eup %5402 }
 0x48c   : >> { %v4097_v58 = vadd.f32 1.0, %v5403_v51 }
 0x48e   : >> { %5404 = vrcp.f32 %v4097_v58 }
 0x493   : > { %468 = sbr.rel (!%p466_p11) target bundleno = 99 (0x63), region = 92 }
 0x498   : >> { %v5405_v10 = vpop.eup %5404 }
 0x499   : >> { %4101 = vst [vmem:[%s4100_s9] sm:$0xff] %v5405_v10 }
 0x49a   : > { %4109 = sbr.rel (!%p5563_p5) target bundleno = 1213 (0x4bd), region = 59  ;;  %s4334_s16 = sshll.u32 (%p5563_p5), %s5546_s6, 1 }
 0x49b   : > { %s4111_s19 = ssub.s32 (%p5563_p5), 3, %s4334_s16 }
 0x49c   : > { %p4112_p12 = scmp.lt.s32.totalorder (%p5563_p5), %s4111_s19, 2 }
 0x4a1   : > { %s7694_s19 = smov (!%p4112_p12, %s4111_s19), 2 }
 0x4a2   : > { %s7342_s20 = sshll.u32 %s7694_s19, 7 }
 0x4a3   : > { %s4116_s21 = ssub.s32 256, %s7342_s20 }
 0x4a4   : > { %4117 = vsyncadd %s7337_s24, %s4116_s21  ;;  %p4336_p13 = scmp.ne.s32.totalorder %s7342_s20, 0  ;;  %s7351_s23 = scalar_lea.hbm %s7406_s7, %s5575_s15 }
 0x4a5   : > { %s4122_s6 = sshll.u32 %s285_s17, 4  ;;  %s5479_s10 = smov [#allocation3]   ;;  %s7355_s6 = int_to_ptr.vmem [resolvable:$true] %s4122_s6 }
 0x4a6   : > { %s5406_s18 = scalar_lea.vmem %s7355_s6, %s7342_s20  ;;  %s5410_s25 = sshll.u32 %s5479_s10, 4  ;;  %s5411_s25 = int_to_ptr.vmem [resolvable:$false] %s5410_s25 }
 0x4a7   : > { %p5407_p0 = scmp.ne.s32.totalorder %s7355_s6, %s5406_s18  ;;  %s5412_s9 = scalar_lea.vmem %s5411_s25, 512 }
 0x4a8   : > { %p5413_p3 = scmp.lt.s32.totalorder %s7355_s6, %s5411_s25  ;;  %p5414_p4 = scmp.lt.s32.totalorder %s5412_s9, %s5406_s18 }
 0x4a9   : > { %p5408_p1 = pnand %p5407_p0, %p4336_p13 }
 0x4aa   : > { %p5415_p5 = por %p5414_p4, %p5413_p3 }
 0x4ab   : > { %p5409_p2 = pneg %p5408_p1 }
 0x4ad   : > { %p5416_p7 = pnand %p5415_p5, %p5409_p2 }
 0x4af   : > { %5419 = shalt.err (!%p5416_p7)
}
 0x4b0   : > { %s5420_s15 = scalar_lea.hbm %s7351_s23, %s7342_s20  ;;  %s5424_s30 = scalar_lea.hbm %s7406_s7, 384 }
 0x4b1   : > { %p5421_p8 = scmp.ne.s32.totalorder %s7351_s23, %s5420_s15  ;;  %p5425_p11 = scmp.lt.u32.totalorder %s7351_s23, %s7406_s7 }
 0x4b2   : > { %p5426_p12 = scmp.lt.u32.totalorder %s5424_s30, %s5420_s15  ;;  %p5428_p1 = scmp.lt.u32.totalorder %s5420_s15, %s7351_s23 }
 0x4b3   : > { %p5422_p9 = pnand %p5421_p8, %p4336_p13 }
 0x4b4   : > { %p5427_p0 = por %p5426_p12, %p5425_p11 }
 0x4b5   : > { %p5423_p10 = pneg %p5422_p9 }
 0x4b6   : > { %p5429_p2 = por %p5428_p1, %p5427_p0 }
 0x4b8   : > { %p5430_p3 = pnand %p5429_p2, %p5423_p10 }
 0x4ba   : > { %5433 = shalt.err (!%p5430_p3)
}
 0x4bb   : > { %s5480_s21 = smov 128   ;;  %s5481_s14 = smov 8  }
 0x4bc   : > { %4128 = dma.vmem_to_hbm [thread:$0]  (%p4336_p13), %s7355_s6, %s7342_s20, %s7351_s23, %s7337_s24, %s5480_s21, %s5480_s21, %s5481_s14  }
 0x4bd PF: > { %p5356_p4 = scmp.ge.s32.totalorder %s5472_s29, 2  ;;  %s4137_s12 = sand.u32 1, %s5460_s26  }
 0x4be   : > { %s4138_s18 = scalar_lea.sflag [#allocation4], %s4137_s12 }
 0x4bf   : > { %p5353_p5 = pnand %p5356_p4, %p5567_p6 }
 0x4c1   : > { %5455 = dma.done.wait (!%p5353_p5), %s4138_s18, 256  }
 0x4c2   : > { %5457 = vsyncadd (!%p5353_p5), %s4138_s18, 4294967040  ;;  %p18_p7 = scmp.ge.s32.totalorder %s5550_s8, 4   ;;  %s7689_s26 = smov %s5464_s27 }
 0x4c3   : > { %s7690_s27 = smov %s5468_s28  ;;  %s7691_s28 = smov %s5561_s11 }
 0x4c4   : > { %s7692_s29 = smov %s5550_s8  ;;  %20 = sbr.rel (!%p18_p7) target bundleno = 5 (0x5), region = 103 }
 0x4cb   :  { %4143 = vsyncpa [#allocation4], 1 }
 0x4cc   :  { %4145 = vsyncpa [#allocation4 + $0x1], 1 }

</bundles_post_ra>
